<compile_context>
chip_gen: v7x
topology: tpu7x:2x2x1
jax: 0.10.0
libtpu: 0.0.40
codegen_flags: <defaults>
</compile_context>

<pallas_src>
import functools

import jax
import jax.numpy as jnp
from jax import lax
from jax.experimental import pallas as pl
from jax.experimental.pallas import tpu as pltpu


# ----------------------------------------------------------------------------
# Kernel
# ----------------------------------------------------------------------------
def _gru_head_kernel(x_ref,        # (tb, t_chunk, Dp)  batch-major input chunk
                     wih_ref,      # (Dp, 3Hp)  W_ih^T, gate blocks [r|z|n]
                     whh_ref,      # (Hp, 3Hp)  W_hh^T, gate blocks [r|z|n]
                     bg_ref,       # (1, 3Hp)   f32: b_ih + [b_hr|b_hz|0]
                     bhn_ref,      # (1, Hp)    f32: b_hn (n-gate hidden bias)
                     w1_ref,       # (Hp, Fp)   fc1 weight^T
                     b1_ref,       # (1, Fp)    f32
                     w2_ref,       # (Fp, Cp)   fc2 weight^T
                     b2_ref,       # (1, Cp)    f32
                     out_ref,      # (tb, Cp)   f32
                     h_ref,        # VMEM scratch (tb, Hp) f32 — resident hidden
                     *, hidden_pad, t_chunk, seq_len, seq_pad):
    c = pl.program_id(1)           # time-chunk index (serial axis)
    Hp = hidden_pad
    tb = h_ref.shape[0]

    @pl.when(c == 0)
    def _():
        h_ref[...] = jnp.zeros_like(h_ref)

    # ---- Hoisted input projection: one well-shaped MXU matmul per chunk.
    #      Biases that are not multiplied by the reset gate are folded in here,
    #      off the serial per-step chain. ----
    xc = x_ref[...]                                         # (tb, t_chunk, Dp)
    gi = jnp.dot(xc.reshape(tb * t_chunk, xc.shape[-1]), wih_ref[...],
                 preferred_element_type=jnp.float32)        # (tb*t_chunk, 3Hp)
    gi = (gi + bg_ref[...]).reshape(tb, t_chunk, 3 * Hp)

    whh = whh_ref[...]
    bhn = bhn_ref[...]                                      # (1, Hp) f32
    h = h_ref[...]                                          # (tb, Hp) f32 carry

    # ---- Recurrence: only h @ W_hh + elementwise gate math per step.
    #      t_chunk is capped at <=16, so this modest unroll keeps LLO
    #      scheduling visibility without exploding vreg live ranges. ----
    for step in range(t_chunk):
        gh = jnp.dot(h.astype(whh.dtype), whh,
                     preferred_element_type=jnp.float32)    # (tb, 3Hp)
        g = gi[:, step, :]                                  # (tb, 3Hp) f32
        r = jax.nn.sigmoid(g[:, :Hp] + gh[:, :Hp])
        z = jax.nn.sigmoid(g[:, Hp:2 * Hp] + gh[:, Hp:2 * Hp])
        # PyTorch reset-after: n = tanh(i_n + b_in + r*(h@W_hn + b_hn))
        n = jnp.tanh(g[:, 2 * Hp:] + r * (gh[:, 2 * Hp:] + bhn))
        h_new = (1.0 - z) * n + z * h
        if seq_pad != seq_len:
            # Only emitted when T had to be padded: freeze h on padded steps.
            valid = (c * t_chunk + step) < seq_len
            h_new = jnp.where(valid, h_new, h)
        h = h_new

    h_ref[...] = h

    # ---- Fused classifier head on the final hidden state (lane-dense out). ----
    @pl.when(c == pl.num_programs(1) - 1)
    def _():
        w1 = w1_ref[...]
        y1 = jnp.dot(h.astype(w1.dtype), w1,
                     preferred_element_type=jnp.float32) + b1_ref[...]
        y1 = jnp.maximum(y1, 0.0)
        w2 = w2_ref[...]
        y2 = jnp.dot(y1.astype(w2.dtype), w2,
                     preferred_element_type=jnp.float32) + b2_ref[...]
        out_ref[...] = jax.nn.sigmoid(y2).astype(out_ref.dtype)


# ----------------------------------------------------------------------------
# Wrapper helpers
# ----------------------------------------------------------------------------
def _round_up(n, m):
    return (n + m - 1) // m * m


def _pad_axis(a, axis, new_size):
    pad = [(0, 0)] * a.ndim
    pad[axis] = (0, new_size - a.shape[axis])
    return jnp.pad(a, pad)


def _pad_gate_cols(w, h, hp):
    """Pad each of the 3 concatenated gate blocks [r|z|n] from h to hp cols."""
    parts = []
    for g in range(3):
        parts.append(_pad_axis(w[..., g * h:(g + 1) * h], -1, hp))
    return jnp.concatenate(parts, axis=-1)


def _chip_config():
    """(num_tensorcores, vmem_limit_bytes) chosen per TPU generation."""
    kind = ""
    try:
        kind = jax.devices()[0].device_kind.lower()
    except Exception:
        pass
    if "v7" in kind:
        # v7x: 2 TCs/chip but only 64 MiB physical VMEM per TC.
        return 2, 40 * 1024 * 1024
    # v5e/v6e (and fallback): single TensorCore, 128 MiB physical VMEM.
    return 1, 64 * 1024 * 1024


def _pick_t_chunk(T):
    """Time-chunk length: multiple of 8 (BlockSpec sublane rule), capped at 16,
    preferring a divisor of T so the per-step validity mask is never emitted."""
    for tc in (16, 8):
        if T % tc == 0:
            return tc
    if T <= 16:
        return T          # whole (short) sequence in one chunk: block dim == full dim
    return 8              # T padded to a multiple of 8; kernel masks padded steps


# ----------------------------------------------------------------------------
# Wrapper
# ----------------------------------------------------------------------------
def rnn_classifier_forward(x, params, *, t_chunk=None,
                           compute_dtype=jnp.float32):
    """x: (B, T, D) float32.  Returns (B, num_classes) float32."""
    B, T, D = x.shape
    H = params["whh_t"].shape[0]
    F = params["w1_t"].shape[1]
    C = params["w2_t"].shape[1]

    # MXU/vreg-friendly padded sizes (sublane=8, lane=128).
    Bp = _round_up(B, 8)
    Dp = _round_up(D, 128)
    Hp = _round_up(H, 128)
    Fp = _round_up(F, 128)
    Cp = _round_up(C, 128)

    num_tc, vmem_limit = _chip_config()
    cd = compute_dtype

    # Time chunk (capped, multiple-of-8, divisor of T when possible).
    if t_chunk is None or t_chunk <= 0 or (t_chunk != T and t_chunk % 8 != 0):
        t_chunk = _pick_t_chunk(T)
    t_chunk = min(t_chunk, T)
    Tp = _round_up(T, t_chunk)

    # Batch tile: split in two ONLY on two-TensorCore chips (v7x); on v5e/v6e
    # the split would just halve M of every recurrence matmul for no benefit.
    tb = Bp
    if num_tc >= 2 and Bp % 16 == 0:
        tb = Bp // 2
    # Safety valve for very large batches: keep the streamed x chunk modest.
    while tb % 16 == 0 and tb * t_chunk * Dp * jnp.dtype(cd).itemsize > (8 << 20):
        tb //= 2

    # Padded activations, batch-major (NO transpose — streamed directly).
    xp = jnp.pad(x, ((0, Bp - B), (0, Tp - T), (0, Dp - D))).astype(cd)

    # Padded / cast weights (gate blocks padded independently so in-kernel
    # 128-aligned gate slices stay correct).
    wih = _pad_axis(_pad_gate_cols(params["wih_t"], H, Hp), 0, Dp).astype(cd)
    whh = _pad_axis(_pad_gate_cols(params["whh_t"], H, Hp), 0, Hp).astype(cd)
    bih_p = _pad_gate_cols(params["bih"], H, Hp).astype(jnp.float32)
    bhh_p = _pad_gate_cols(params["bhh"], H, Hp).astype(jnp.float32)
    # Fold b_ih and the r/z hidden biases into the chunk prologue; keep only
    # the n-gate hidden bias on the serial chain (inside r*(...)).
    bg = bih_p + jnp.concatenate(
        [bhh_p[:, :2 * Hp], jnp.zeros((1, Hp), jnp.float32)], axis=1)
    bhn = bhh_p[:, 2 * Hp:]
    w1 = _pad_axis(_pad_axis(params["w1_t"], 0, Hp), 1, Fp).astype(cd)
    b1 = _pad_axis(params["b1"], 1, Fp).astype(jnp.float32)
    w2 = _pad_axis(_pad_axis(params["w2_t"], 0, Fp), 1, Cp).astype(cd)
    b2 = _pad_axis(params["b2"], 1, Cp).astype(jnp.float32)

    kernel = functools.partial(_gru_head_kernel, hidden_pad=Hp,
                               t_chunk=t_chunk, seq_len=T, seq_pad=Tp)

    # Loop-invariant operands: constant block index (fetched once).
    const = lambda shape: pl.BlockSpec(shape, lambda b, c: (0,) * len(shape))

    out_padded = pl.pallas_call(
        kernel,
        out_shape=jax.ShapeDtypeStruct((Bp, Cp), jnp.float32),
        grid_spec=pltpu.PrefetchScalarGridSpec(
            num_scalar_prefetch=0,
            grid=(Bp // tb, Tp // t_chunk),      # (batch blocks, time chunks)
            in_specs=[
                pl.BlockSpec((tb, t_chunk, Dp), lambda b, c: (b, c, 0)),  # x
                const((Dp, 3 * Hp)),             # W_ih^T
                const((Hp, 3 * Hp)),             # W_hh^T
                const((1, 3 * Hp)),              # folded input-side bias
                const((1, Hp)),                  # b_hn
                const((Hp, Fp)),                 # fc1 W^T
                const((1, Fp)),                  # fc1 b
                const((Fp, Cp)),                 # fc2 W^T
                const((1, Cp)),                  # fc2 b
            ],
            out_specs=pl.BlockSpec((tb, Cp), lambda b, c: (b, 0)),
            scratch_shapes=[pltpu.VMEM((tb, Hp), jnp.float32)],
        ),
        compiler_params=pltpu.CompilerParams(
            # Batch blocks are independent (megacore-parallel on v7x only);
            # the time axis is the serial recurrence -> "arbitrary".
            dimension_semantics=("parallel", "arbitrary"),
            vmem_limit_bytes=vmem_limit,
        ),
    )(xp, wih, whh, bg, bhn, w1, b1, w2, b2)

    return out_padded[:B, :C]


# ----------------------------------------------------------------------------
# Parameter init (mirrors the PyTorch module: GRU default init, Linear Xavier
# uniform with zero bias) and a pure-JAX reference for correctness checking.
# ----------------------------------------------------------------------------
def _xavier_uniform(key, fan_out, fan_in):
    limit = (6.0 / (fan_in + fan_out)) ** 0.5
    return jax.random.uniform(key, (fan_out, fan_in), jnp.float32, -limit, limit)


def init_params(key, input_dim, hidden_dim, fc_dim, num_classes):
    k = jax.random.split(key, 6)
    s = 1.0 / (hidden_dim ** 0.5)
    w_ih = jax.random.uniform(k[0], (3 * hidden_dim, input_dim), jnp.float32, -s, s)
    w_hh = jax.random.uniform(k[1], (3 * hidden_dim, hidden_dim), jnp.float32, -s, s)
    b_ih = jax.random.uniform(k[2], (3 * hidden_dim,), jnp.float32, -s, s)
    b_hh = jax.random.uniform(k[3], (3 * hidden_dim,), jnp.float32, -s, s)
    w1 = _xavier_uniform(k[4], fc_dim, hidden_dim)        # (F, H) PyTorch layout
    w2 = _xavier_uniform(k[5], num_classes, fc_dim)       # (C, F)
    return {
        "wih_t": w_ih.T,                       # (D, 3H)
        "whh_t": w_hh.T,                       # (H, 3H)
        "bih": b_ih.reshape(1, -1),            # (1, 3H)
        "bhh": b_hh.reshape(1, -1),            # (1, 3H)
        "w1_t": w1.T,                          # (H, F)
        "b1": jnp.zeros((1, fc_dim), jnp.float32),
        "w2_t": w2.T,                          # (F, C)
        "b2": jnp.zeros((1, num_classes), jnp.float32),
    }


def _reference_forward(x, params, compute_dtype=jnp.float32):
    """Pure-JAX reference of the PyTorch forward (same dtype policy)."""
    H = params["whh_t"].shape[0]
    cd = compute_dtype
    hi = jax.lax.Precision.HIGHEST
    wih = params["wih_t"].astype(cd)
    whh = params["whh_t"].astype(cd)
    w1 = params["w1_t"].astype(cd)
    w2 = params["w2_t"].astype(cd)

    def step(h, x_t):
        gi = jnp.dot(x_t.astype(cd), wih, precision=hi,
                     preferred_element_type=jnp.float32) + params["bih"]
        gh = jnp.dot(h.astype(cd), whh, precision=hi,
                     preferred_element_type=jnp.float32) + params["bhh"]
        i_r, i_z, i_n = gi[:, :H], gi[:, H:2 * H], gi[:, 2 * H:]
        h_r, h_z, h_n = gh[:, :H], gh[:, H:2 * H], gh[:, 2 * H:]
        r = jax.nn.sigmoid(i_r + h_r)
        z = jax.nn.sigmoid(i_z + h_z)
        n = jnp.tanh(i_n + r * h_n)
        return (1.0 - z) * n + z * h, None

    h0 = jnp.zeros((x.shape[0], H), jnp.float32)
    h_n, _ = lax.scan(step, h0, jnp.swapaxes(x, 0, 1))
    y1 = jnp.maximum(
        jnp.dot(h_n.astype(cd), w1, precision=hi,
                preferred_element_type=jnp.float32) + params["b1"], 0.0)
    y2 = jnp.dot(y1.astype(cd), w2, precision=hi,
                 preferred_element_type=jnp.float32) + params["b2"]
    return jax.nn.sigmoid(y2)


if __name__ == "__main__":
    # Small shapes consistent with the module (defaults are input_dim=768,
    # hidden_dim=256, fc=128, num_classes=200).
    B, T, D, H, F, C = 4, 8, 64, 32, 64, 16

    key = jax.random.PRNGKey(0)
    kx, kp = jax.random.split(key)
    x = jax.random.normal(kx, (B, T, D), jnp.float32)
    params = init_params(kp, D, H, F, C)

    # f32 path (default): faithful to the PyTorch module numerics.
    fwd_f32 = jax.jit(functools.partial(rnn_classifier_forward,
                                        compute_dtype=jnp.float32))
    out_f32 = jax.block_until_ready(fwd_f32(x, params))
    ref_f32 = jax.block_until_ready(_reference_forward(x, params, jnp.float32))
    assert out_f32.shape == (B, C)
    assert jnp.allclose(out_f32, ref_f32, atol=1e-3, rtol=1e-3), \
        "f32 mismatch vs JAX reference"

    # Optional bf16-weight path (v6e/v7x MXU rate, halved weight DMA), f32 accum.
    fwd_bf16 = jax.jit(functools.partial(rnn_classifier_forward,
                                         compute_dtype=jnp.bfloat16))
    out_bf16 = jax.block_until_ready(fwd_bf16(x, params))
    ref_bf16 = jax.block_until_ready(_reference_forward(x, params, jnp.bfloat16))
    assert jnp.allclose(out_bf16, ref_bf16, atol=3e-2, rtol=3e-2), \
        "bf16 mismatch vs JAX reference"

    print("KERNEL_OK")
</pallas_src>

<mosaic_0001>
module attributes {stable_mosaic.version = 11 : i64} {
  func.func @_gru_head_kernel(%arg0: i32, %arg1: i32, %arg2: memref<8x8x128xf32, #tpu.memory_space<vmem>>, %arg3: memref<128x384xf32, #tpu.memory_space<vmem>>, %arg4: memref<128x384xf32, #tpu.memory_space<vmem>>, %arg5: memref<1x384xf32, #tpu.memory_space<vmem>>, %arg6: memref<1x128xf32, #tpu.memory_space<vmem>>, %arg7: memref<128x128xf32, #tpu.memory_space<vmem>>, %arg8: memref<1x128xf32, #tpu.memory_space<vmem>>, %arg9: memref<128x128xf32, #tpu.memory_space<vmem>>, %arg10: memref<1x128xf32, #tpu.memory_space<vmem>>, %arg11: memref<8x128xf32, #tpu.memory_space<vmem>>, %arg12: memref<8x128xf32, #tpu.memory_space<vmem>>) attributes {dimension_semantics = [#tpu.dimension_semantics<parallel>, #tpu.dimension_semantics<arbitrary>], iteration_bounds = array<i64: 1, 1>, scalar_prefetch = 0 : i64, scratch_operands = 1 : i64, tpu.core_type = #tpu.core_type<tc>, window_params = [{transform_indices = @transform_0, window_bounds = array<i64: 8, 8, 128>}, {pipeline_mode = #tpu.pipeline_mode<synchronous>, transform_indices = @transform_1, window_bounds = array<i64: 128, 384>}, {pipeline_mode = #tpu.pipeline_mode<synchronous>, transform_indices = @transform_2, window_bounds = array<i64: 128, 384>}, {pipeline_mode = #tpu.pipeline_mode<synchronous>, transform_indices = @transform_3, window_bounds = array<i64: 1, 384>}, {pipeline_mode = #tpu.pipeline_mode<synchronous>, transform_indices = @transform_4, window_bounds = array<i64: 1, 128>}, {pipeline_mode = #tpu.pipeline_mode<synchronous>, transform_indices = @transform_5, window_bounds = array<i64: 128, 128>}, {pipeline_mode = #tpu.pipeline_mode<synchronous>, transform_indices = @transform_6, window_bounds = array<i64: 1, 128>}, {pipeline_mode = #tpu.pipeline_mode<synchronous>, transform_indices = @transform_7, window_bounds = array<i64: 128, 128>}, {pipeline_mode = #tpu.pipeline_mode<synchronous>, transform_indices = @transform_8, window_bounds = array<i64: 1, 128>}, {transform_indices = @transform_9, window_bounds = array<i64: 8, 128>}]} {
    %c0_i32 = arith.constant 0 : i32
    %0 = arith.cmpi eq, %arg1, %c0_i32 : i32
    %1 = arith.extui %0 : i1 to i32
    %c0_i32_0 = arith.constant 0 : i32
    %2 = arith.cmpi ne, %1, %c0_i32_0 : i32
    scf.if %2 {
      %cst_49 = arith.constant 0.000000e+00 : f32
      %266 = vector.broadcast %cst_49 : f32 to vector<8x128xf32>
      %c0_50 = arith.constant 0 : index
      %c0_51 = arith.constant 0 : index
      %267 = vector.load %arg12[%c0_50, %c0_51] : memref<8x128xf32, #tpu.memory_space<vmem>>, vector<8x128xf32>
      tpu.vector_store %arg12[%c0_50, %c0_51], %266 {strides = array<i32>} : memref<8x128xf32, #tpu.memory_space<vmem>>, vector<8x128xf32>,
    } else {
    }
    %c0 = arith.constant 0 : index
    %c0_1 = arith.constant 0 : index
    %c0_2 = arith.constant 0 : index
    %3 = vector.load %arg2[%c0, %c0_1, %c0_2] : memref<8x8x128xf32, #tpu.memory_space<vmem>>, vector<8x8x128xf32>
    %4 = vector.shape_cast %3 : vector<8x8x128xf32> to vector<64x128xf32>
    %c0_3 = arith.constant 0 : index
    %c0_4 = arith.constant 0 : index
    %5 = vector.load %arg3[%c0_3, %c0_4] : memref<128x384xf32, #tpu.memory_space<vmem>>, vector<128x384xf32>
    %cst = arith.constant dense<0.000000e+00> : vector<64x384xf32>
    %6 = tpu.matmul %4, %5, %cst {dimension_numbers = #tpu.dot_dimension_numbers<[1], [0], [0], [1], [0, 0, 1, 1], [], []>} : vector<64x128xf32>, vector<128x384xf32>, vector<64x384xf32> -> vector<64x384xf32>
    %c0_5 = arith.constant 0 : index
    %c0_6 = arith.constant 0 : index
    %7 = vector.load %arg5[%c0_5, %c0_6] : memref<1x384xf32, #tpu.memory_space<vmem>>, vector<1x384xf32>
    %8 = vector.broadcast %7 : vector<1x384xf32> to vector<64x384xf32>
    %9 = arith.addf %6, %8 : vector<64x384xf32>
    %10 = vector.shape_cast %9 : vector<64x384xf32> to vector<8x8x384xf32>
    %c0_7 = arith.constant 0 : index
    %c0_8 = arith.constant 0 : index
    %11 = vector.load %arg4[%c0_7, %c0_8] : memref<128x384xf32, #tpu.memory_space<vmem>>, vector<128x384xf32>
    %c0_9 = arith.constant 0 : index
    %c0_10 = arith.constant 0 : index
    %12 = vector.load %arg6[%c0_9, %c0_10] : memref<1x128xf32, #tpu.memory_space<vmem>>, vector<1x128xf32>
    %c0_11 = arith.constant 0 : index
    %c0_12 = arith.constant 0 : index
    %13 = vector.load %arg12[%c0_11, %c0_12] : memref<8x128xf32, #tpu.memory_space<vmem>>, vector<8x128xf32>
    %cst_13 = arith.constant dense<0.000000e+00> : vector<8x384xf32>
    %14 = tpu.matmul %13, %11, %cst_13 {dimension_numbers = #tpu.dot_dimension_numbers<[1], [0], [0], [1], [0, 0, 1, 1], [], []>} : vector<8x128xf32>, vector<128x384xf32>, vector<8x384xf32> -> vector<8x384xf32>
    %15 = vector.extract_strided_slice %10 {offsets = [0, 0, 0], sizes = [8, 1, 384], strides = [1, 1, 1]} : vector<8x8x384xf32> to vector<8x1x384xf32>
    %16 = vector.shape_cast %15 : vector<8x1x384xf32> to vector<8x384xf32>
    %17 = vector.extract_strided_slice %16 {offsets = [0, 0], sizes = [8, 128], strides = [1, 1]} : vector<8x384xf32> to vector<8x128xf32>
    %18 = vector.extract_strided_slice %14 {offsets = [0, 0], sizes = [8, 128], strides = [1, 1]} : vector<8x384xf32> to vector<8x128xf32>
    %19 = arith.addf %17, %18 : vector<8x128xf32>
    %20 = arith.negf %19 : vector<8x128xf32>
    %21 = math.exp %20 : vector<8x128xf32>
    %cst_14 = arith.constant 1.000000e+00 : f32
    %22 = vector.broadcast %cst_14 : f32 to vector<8x128xf32>
    %23 = arith.addf %22, %21 : vector<8x128xf32>
    %24 = arith.divf %22, %23 : vector<8x128xf32>
    %25 = vector.extract_strided_slice %16 {offsets = [0, 128], sizes = [8, 128], strides = [1, 1]} : vector<8x384xf32> to vector<8x128xf32>
    %26 = vector.extract_strided_slice %14 {offsets = [0, 128], sizes = [8, 128], strides = [1, 1]} : vector<8x384xf32> to vector<8x128xf32>
    %27 = arith.addf %25, %26 : vector<8x128xf32>
    %28 = arith.negf %27 : vector<8x128xf32>
    %29 = math.exp %28 : vector<8x128xf32>
    %cst_15 = arith.constant 1.000000e+00 : f32
    %30 = vector.broadcast %cst_15 : f32 to vector<8x128xf32>
    %31 = arith.addf %30, %29 : vector<8x128xf32>
    %32 = arith.divf %30, %31 : vector<8x128xf32>
    %33 = vector.extract_strided_slice %16 {offsets = [0, 256], sizes = [8, 128], strides = [1, 1]} : vector<8x384xf32> to vector<8x128xf32>
    %34 = vector.extract_strided_slice %14 {offsets = [0, 256], sizes = [8, 128], strides = [1, 1]} : vector<8x384xf32> to vector<8x128xf32>
    %35 = vector.broadcast %12 : vector<1x128xf32> to vector<8x128xf32>
    %36 = arith.addf %34, %35 : vector<8x128xf32>
    %37 = arith.mulf %24, %36 : vector<8x128xf32>
    %38 = arith.addf %33, %37 : vector<8x128xf32>
    %39 = math.tanh %38 : vector<8x128xf32>
    %cst_16 = arith.constant 1.000000e+00 : f32
    %40 = vector.broadcast %cst_16 : f32 to vector<8x128xf32>
    %41 = arith.subf %40, %32 : vector<8x128xf32>
    %42 = arith.mulf %41, %39 : vector<8x128xf32>
    %43 = arith.mulf %32, %13 : vector<8x128xf32>
    %44 = arith.addf %42, %43 : vector<8x128xf32>
    %cst_17 = arith.constant dense<0.000000e+00> : vector<8x384xf32>
    %45 = tpu.matmul %44, %11, %cst_17 {dimension_numbers = #tpu.dot_dimension_numbers<[1], [0], [0], [1], [0, 0, 1, 1], [], []>} : vector<8x128xf32>, vector<128x384xf32>, vector<8x384xf32> -> vector<8x384xf32>
    %46 = vector.extract_strided_slice %10 {offsets = [0, 1, 0], sizes = [8, 1, 384], strides = [1, 1, 1]} : vector<8x8x384xf32> to vector<8x1x384xf32>
    %47 = vector.shape_cast %46 : vector<8x1x384xf32> to vector<8x384xf32>
    %48 = vector.extract_strided_slice %47 {offsets = [0, 0], sizes = [8, 128], strides = [1, 1]} : vector<8x384xf32> to vector<8x128xf32>
    %49 = vector.extract_strided_slice %45 {offsets = [0, 0], sizes = [8, 128], strides = [1, 1]} : vector<8x384xf32> to vector<8x128xf32>
    %50 = arith.addf %48, %49 : vector<8x128xf32>
    %51 = arith.negf %50 : vector<8x128xf32>
    %52 = math.exp %51 : vector<8x128xf32>
    %cst_18 = arith.constant 1.000000e+00 : f32
    %53 = vector.broadcast %cst_18 : f32 to vector<8x128xf32>
    %54 = arith.addf %53, %52 : vector<8x128xf32>
    %55 = arith.divf %53, %54 : vector<8x128xf32>
    %56 = vector.extract_strided_slice %47 {offsets = [0, 128], sizes = [8, 128], strides = [1, 1]} : vector<8x384xf32> to vector<8x128xf32>
    %57 = vector.extract_strided_slice %45 {offsets = [0, 128], sizes = [8, 128], strides = [1, 1]} : vector<8x384xf32> to vector<8x128xf32>
    %58 = arith.addf %56, %57 : vector<8x128xf32>
    %59 = arith.negf %58 : vector<8x128xf32>
    %60 = math.exp %59 : vector<8x128xf32>
    %cst_19 = arith.constant 1.000000e+00 : f32
    %61 = vector.broadcast %cst_19 : f32 to vector<8x128xf32>
    %62 = arith.addf %61, %60 : vector<8x128xf32>
    %63 = arith.divf %61, %62 : vector<8x128xf32>
    %64 = vector.extract_strided_slice %47 {offsets = [0, 256], sizes = [8, 128], strides = [1, 1]} : vector<8x384xf32> to vector<8x128xf32>
    %65 = vector.extract_strided_slice %45 {offsets = [0, 256], sizes = [8, 128], strides = [1, 1]} : vector<8x384xf32> to vector<8x128xf32>
    %66 = vector.broadcast %12 : vector<1x128xf32> to vector<8x128xf32>
    %67 = arith.addf %65, %66 : vector<8x128xf32>
    %68 = arith.mulf %55, %67 : vector<8x128xf32>
    %69 = arith.addf %64, %68 : vector<8x128xf32>
    %70 = math.tanh %69 : vector<8x128xf32>
    %cst_20 = arith.constant 1.000000e+00 : f32
    %71 = vector.broadcast %cst_20 : f32 to vector<8x128xf32>
    %72 = arith.subf %71, %63 : vector<8x128xf32>
    %73 = arith.mulf %72, %70 : vector<8x128xf32>
    %74 = arith.mulf %63, %44 : vector<8x128xf32>
    %75 = arith.addf %73, %74 : vector<8x128xf32>
    %cst_21 = arith.constant dense<0.000000e+00> : vector<8x384xf32>
    %76 = tpu.matmul %75, %11, %cst_21 {dimension_numbers = #tpu.dot_dimension_numbers<[1], [0], [0], [1], [0, 0, 1, 1], [], []>} : vector<8x128xf32>, vector<128x384xf32>, vector<8x384xf32> -> vector<8x384xf32>
    %77 = vector.extract_strided_slice %10 {offsets = [0, 2, 0], sizes = [8, 1, 384], strides = [1, 1, 1]} : vector<8x8x384xf32> to vector<8x1x384xf32>
    %78 = vector.shape_cast %77 : vector<8x1x384xf32> to vector<8x384xf32>
    %79 = vector.extract_strided_slice %78 {offsets = [0, 0], sizes = [8, 128], strides = [1, 1]} : vector<8x384xf32> to vector<8x128xf32>
    %80 = vector.extract_strided_slice %76 {offsets = [0, 0], sizes = [8, 128], strides = [1, 1]} : vector<8x384xf32> to vector<8x128xf32>
    %81 = arith.addf %79, %80 : vector<8x128xf32>
    %82 = arith.negf %81 : vector<8x128xf32>
    %83 = math.exp %82 : vector<8x128xf32>
    %cst_22 = arith.constant 1.000000e+00 : f32
    %84 = vector.broadcast %cst_22 : f32 to vector<8x128xf32>
    %85 = arith.addf %84, %83 : vector<8x128xf32>
    %86 = arith.divf %84, %85 : vector<8x128xf32>
    %87 = vector.extract_strided_slice %78 {offsets = [0, 128], sizes = [8, 128], strides = [1, 1]} : vector<8x384xf32> to vector<8x128xf32>
    %88 = vector.extract_strided_slice %76 {offsets = [0, 128], sizes = [8, 128], strides = [1, 1]} : vector<8x384xf32> to vector<8x128xf32>
    %89 = arith.addf %87, %88 : vector<8x128xf32>
    %90 = arith.negf %89 : vector<8x128xf32>
    %91 = math.exp %90 : vector<8x128xf32>
    %cst_23 = arith.constant 1.000000e+00 : f32
    %92 = vector.broadcast %cst_23 : f32 to vector<8x128xf32>
    %93 = arith.addf %92, %91 : vector<8x128xf32>
    %94 = arith.divf %92, %93 : vector<8x128xf32>
    %95 = vector.extract_strided_slice %78 {offsets = [0, 256], sizes = [8, 128], strides = [1, 1]} : vector<8x384xf32> to vector<8x128xf32>
    %96 = vector.extract_strided_slice %76 {offsets = [0, 256], sizes = [8, 128], strides = [1, 1]} : vector<8x384xf32> to vector<8x128xf32>
    %97 = vector.broadcast %12 : vector<1x128xf32> to vector<8x128xf32>
    %98 = arith.addf %96, %97 : vector<8x128xf32>
    %99 = arith.mulf %86, %98 : vector<8x128xf32>
    %100 = arith.addf %95, %99 : vector<8x128xf32>
    %101 = math.tanh %100 : vector<8x128xf32>
    %cst_24 = arith.constant 1.000000e+00 : f32
    %102 = vector.broadcast %cst_24 : f32 to vector<8x128xf32>
    %103 = arith.subf %102, %94 : vector<8x128xf32>
    %104 = arith.mulf %103, %101 : vector<8x128xf32>
    %105 = arith.mulf %94, %75 : vector<8x128xf32>
    %106 = arith.addf %104, %105 : vector<8x128xf32>
    %cst_25 = arith.constant dense<0.000000e+00> : vector<8x384xf32>
    %107 = tpu.matmul %106, %11, %cst_25 {dimension_numbers = #tpu.dot_dimension_numbers<[1], [0], [0], [1], [0, 0, 1, 1], [], []>} : vector<8x128xf32>, vector<128x384xf32>, vector<8x384xf32> -> vector<8x384xf32>
    %108 = vector.extract_strided_slice %10 {offsets = [0, 3, 0], sizes = [8, 1, 384], strides = [1, 1, 1]} : vector<8x8x384xf32> to vector<8x1x384xf32>
    %109 = vector.shape_cast %108 : vector<8x1x384xf32> to vector<8x384xf32>
    %110 = vector.extract_strided_slice %109 {offsets = [0, 0], sizes = [8, 128], strides = [1, 1]} : vector<8x384xf32> to vector<8x128xf32>
    %111 = vector.extract_strided_slice %107 {offsets = [0, 0], sizes = [8, 128], strides = [1, 1]} : vector<8x384xf32> to vector<8x128xf32>
    %112 = arith.addf %110, %111 : vector<8x128xf32>
    %113 = arith.negf %112 : vector<8x128xf32>
    %114 = math.exp %113 : vector<8x128xf32>
    %cst_26 = arith.constant 1.000000e+00 : f32
    %115 = vector.broadcast %cst_26 : f32 to vector<8x128xf32>
    %116 = arith.addf %115, %114 : vector<8x128xf32>
    %117 = arith.divf %115, %116 : vector<8x128xf32>
    %118 = vector.extract_strided_slice %109 {offsets = [0, 128], sizes = [8, 128], strides = [1, 1]} : vector<8x384xf32> to vector<8x128xf32>
    %119 = vector.extract_strided_slice %107 {offsets = [0, 128], sizes = [8, 128], strides = [1, 1]} : vector<8x384xf32> to vector<8x128xf32>
    %120 = arith.addf %118, %119 : vector<8x128xf32>
    %121 = arith.negf %120 : vector<8x128xf32>
    %122 = math.exp %121 : vector<8x128xf32>
    %cst_27 = arith.constant 1.000000e+00 : f32
    %123 = vector.broadcast %cst_27 : f32 to vector<8x128xf32>
    %124 = arith.addf %123, %122 : vector<8x128xf32>
    %125 = arith.divf %123, %124 : vector<8x128xf32>
    %126 = vector.extract_strided_slice %109 {offsets = [0, 256], sizes = [8, 128], strides = [1, 1]} : vector<8x384xf32> to vector<8x128xf32>
    %127 = vector.extract_strided_slice %107 {offsets = [0, 256], sizes = [8, 128], strides = [1, 1]} : vector<8x384xf32> to vector<8x128xf32>
    %128 = vector.broadcast %12 : vector<1x128xf32> to vector<8x128xf32>
    %129 = arith.addf %127, %128 : vector<8x128xf32>
    %130 = arith.mulf %117, %129 : vector<8x128xf32>
    %131 = arith.addf %126, %130 : vector<8x128xf32>
    %132 = math.tanh %131 : vector<8x128xf32>
    %cst_28 = arith.constant 1.000000e+00 : f32
    %133 = vector.broadcast %cst_28 : f32 to vector<8x128xf32>
    %134 = arith.subf %133, %125 : vector<8x128xf32>
    %135 = arith.mulf %134, %132 : vector<8x128xf32>
    %136 = arith.mulf %125, %106 : vector<8x128xf32>
    %137 = arith.addf %135, %136 : vector<8x128xf32>
    %cst_29 = arith.constant dense<0.000000e+00> : vector<8x384xf32>
    %138 = tpu.matmul %137, %11, %cst_29 {dimension_numbers = #tpu.dot_dimension_numbers<[1], [0], [0], [1], [0, 0, 1, 1], [], []>} : vector<8x128xf32>, vector<128x384xf32>, vector<8x384xf32> -> vector<8x384xf32>
    %139 = vector.extract_strided_slice %10 {offsets = [0, 4, 0], sizes = [8, 1, 384], strides = [1, 1, 1]} : vector<8x8x384xf32> to vector<8x1x384xf32>
    %140 = vector.shape_cast %139 : vector<8x1x384xf32> to vector<8x384xf32>
    %141 = vector.extract_strided_slice %140 {offsets = [0, 0], sizes = [8, 128], strides = [1, 1]} : vector<8x384xf32> to vector<8x128xf32>
    %142 = vector.extract_strided_slice %138 {offsets = [0, 0], sizes = [8, 128], strides = [1, 1]} : vector<8x384xf32> to vector<8x128xf32>
    %143 = arith.addf %141, %142 : vector<8x128xf32>
    %144 = arith.negf %143 : vector<8x128xf32>
    %145 = math.exp %144 : vector<8x128xf32>
    %cst_30 = arith.constant 1.000000e+00 : f32
    %146 = vector.broadcast %cst_30 : f32 to vector<8x128xf32>
    %147 = arith.addf %146, %145 : vector<8x128xf32>
    %148 = arith.divf %146, %147 : vector<8x128xf32>
    %149 = vector.extract_strided_slice %140 {offsets = [0, 128], sizes = [8, 128], strides = [1, 1]} : vector<8x384xf32> to vector<8x128xf32>
    %150 = vector.extract_strided_slice %138 {offsets = [0, 128], sizes = [8, 128], strides = [1, 1]} : vector<8x384xf32> to vector<8x128xf32>
    %151 = arith.addf %149, %150 : vector<8x128xf32>
    %152 = arith.negf %151 : vector<8x128xf32>
    %153 = math.exp %152 : vector<8x128xf32>
    %cst_31 = arith.constant 1.000000e+00 : f32
    %154 = vector.broadcast %cst_31 : f32 to vector<8x128xf32>
    %155 = arith.addf %154, %153 : vector<8x128xf32>
    %156 = arith.divf %154, %155 : vector<8x128xf32>
    %157 = vector.extract_strided_slice %140 {offsets = [0, 256], sizes = [8, 128], strides = [1, 1]} : vector<8x384xf32> to vector<8x128xf32>
    %158 = vector.extract_strided_slice %138 {offsets = [0, 256], sizes = [8, 128], strides = [1, 1]} : vector<8x384xf32> to vector<8x128xf32>
    %159 = vector.broadcast %12 : vector<1x128xf32> to vector<8x128xf32>
    %160 = arith.addf %158, %159 : vector<8x128xf32>
    %161 = arith.mulf %148, %160 : vector<8x128xf32>
    %162 = arith.addf %157, %161 : vector<8x128xf32>
    %163 = math.tanh %162 : vector<8x128xf32>
    %cst_32 = arith.constant 1.000000e+00 : f32
    %164 = vector.broadcast %cst_32 : f32 to vector<8x128xf32>
    %165 = arith.subf %164, %156 : vector<8x128xf32>
    %166 = arith.mulf %165, %163 : vector<8x128xf32>
    %167 = arith.mulf %156, %137 : vector<8x128xf32>
    %168 = arith.addf %166, %167 : vector<8x128xf32>
    %cst_33 = arith.constant dense<0.000000e+00> : vector<8x384xf32>
    %169 = tpu.matmul %168, %11, %cst_33 {dimension_numbers = #tpu.dot_dimension_numbers<[1], [0], [0], [1], [0, 0, 1, 1], [], []>} : vector<8x128xf32>, vector<128x384xf32>, vector<8x384xf32> -> vector<8x384xf32>
    %170 = vector.extract_strided_slice %10 {offsets = [0, 5, 0], sizes = [8, 1, 384], strides = [1, 1, 1]} : vector<8x8x384xf32> to vector<8x1x384xf32>
    %171 = vector.shape_cast %170 : vector<8x1x384xf32> to vector<8x384xf32>
    %172 = vector.extract_strided_slice %171 {offsets = [0, 0], sizes = [8, 128], strides = [1, 1]} : vector<8x384xf32> to vector<8x128xf32>
    %173 = vector.extract_strided_slice %169 {offsets = [0, 0], sizes = [8, 128], strides = [1, 1]} : vector<8x384xf32> to vector<8x128xf32>
    %174 = arith.addf %172, %173 : vector<8x128xf32>
    %175 = arith.negf %174 : vector<8x128xf32>
    %176 = math.exp %175 : vector<8x128xf32>
    %cst_34 = arith.constant 1.000000e+00 : f32
    %177 = vector.broadcast %cst_34 : f32 to vector<8x128xf32>
    %178 = arith.addf %177, %176 : vector<8x128xf32>
    %179 = arith.divf %177, %178 : vector<8x128xf32>
    %180 = vector.extract_strided_slice %171 {offsets = [0, 128], sizes = [8, 128], strides = [1, 1]} : vector<8x384xf32> to vector<8x128xf32>
    %181 = vector.extract_strided_slice %169 {offsets = [0, 128], sizes = [8, 128], strides = [1, 1]} : vector<8x384xf32> to vector<8x128xf32>
    %182 = arith.addf %180, %181 : vector<8x128xf32>
    %183 = arith.negf %182 : vector<8x128xf32>
    %184 = math.exp %183 : vector<8x128xf32>
    %cst_35 = arith.constant 1.000000e+00 : f32
    %185 = vector.broadcast %cst_35 : f32 to vector<8x128xf32>
    %186 = arith.addf %185, %184 : vector<8x128xf32>
    %187 = arith.divf %185, %186 : vector<8x128xf32>
    %188 = vector.extract_strided_slice %171 {offsets = [0, 256], sizes = [8, 128], strides = [1, 1]} : vector<8x384xf32> to vector<8x128xf32>
    %189 = vector.extract_strided_slice %169 {offsets = [0, 256], sizes = [8, 128], strides = [1, 1]} : vector<8x384xf32> to vector<8x128xf32>
    %190 = vector.broadcast %12 : vector<1x128xf32> to vector<8x128xf32>
    %191 = arith.addf %189, %190 : vector<8x128xf32>
    %192 = arith.mulf %179, %191 : vector<8x128xf32>
    %193 = arith.addf %188, %192 : vector<8x128xf32>
    %194 = math.tanh %193 : vector<8x128xf32>
    %cst_36 = arith.constant 1.000000e+00 : f32
    %195 = vector.broadcast %cst_36 : f32 to vector<8x128xf32>
    %196 = arith.subf %195, %187 : vector<8x128xf32>
    %197 = arith.mulf %196, %194 : vector<8x128xf32>
    %198 = arith.mulf %187, %168 : vector<8x128xf32>
    %199 = arith.addf %197, %198 : vector<8x128xf32>
    %cst_37 = arith.constant dense<0.000000e+00> : vector<8x384xf32>
    %200 = tpu.matmul %199, %11, %cst_37 {dimension_numbers = #tpu.dot_dimension_numbers<[1], [0], [0], [1], [0, 0, 1, 1], [], []>} : vector<8x128xf32>, vector<128x384xf32>, vector<8x384xf32> -> vector<8x384xf32>
    %201 = vector.extract_strided_slice %10 {offsets = [0, 6, 0], sizes = [8, 1, 384], strides = [1, 1, 1]} : vector<8x8x384xf32> to vector<8x1x384xf32>
    %202 = vector.shape_cast %201 : vector<8x1x384xf32> to vector<8x384xf32>
    %203 = vector.extract_strided_slice %202 {offsets = [0, 0], sizes = [8, 128], strides = [1, 1]} : vector<8x384xf32> to vector<8x128xf32>
    %204 = vector.extract_strided_slice %200 {offsets = [0, 0], sizes = [8, 128], strides = [1, 1]} : vector<8x384xf32> to vector<8x128xf32>
    %205 = arith.addf %203, %204 : vector<8x128xf32>
    %206 = arith.negf %205 : vector<8x128xf32>
    %207 = math.exp %206 : vector<8x128xf32>
    %cst_38 = arith.constant 1.000000e+00 : f32
    %208 = vector.broadcast %cst_38 : f32 to vector<8x128xf32>
    %209 = arith.addf %208, %207 : vector<8x128xf32>
    %210 = arith.divf %208, %209 : vector<8x128xf32>
    %211 = vector.extract_strided_slice %202 {offsets = [0, 128], sizes = [8, 128], strides = [1, 1]} : vector<8x384xf32> to vector<8x128xf32>
    %212 = vector.extract_strided_slice %200 {offsets = [0, 128], sizes = [8, 128], strides = [1, 1]} : vector<8x384xf32> to vector<8x128xf32>
    %213 = arith.addf %211, %212 : vector<8x128xf32>
    %214 = arith.negf %213 : vector<8x128xf32>
    %215 = math.exp %214 : vector<8x128xf32>
    %cst_39 = arith.constant 1.000000e+00 : f32
    %216 = vector.broadcast %cst_39 : f32 to vector<8x128xf32>
    %217 = arith.addf %216, %215 : vector<8x128xf32>
    %218 = arith.divf %216, %217 : vector<8x128xf32>
    %219 = vector.extract_strided_slice %202 {offsets = [0, 256], sizes = [8, 128], strides = [1, 1]} : vector<8x384xf32> to vector<8x128xf32>
    %220 = vector.extract_strided_slice %200 {offsets = [0, 256], sizes = [8, 128], strides = [1, 1]} : vector<8x384xf32> to vector<8x128xf32>
    %221 = vector.broadcast %12 : vector<1x128xf32> to vector<8x128xf32>
    %222 = arith.addf %220, %221 : vector<8x128xf32>
    %223 = arith.mulf %210, %222 : vector<8x128xf32>
    %224 = arith.addf %219, %223 : vector<8x128xf32>
    %225 = math.tanh %224 : vector<8x128xf32>
    %cst_40 = arith.constant 1.000000e+00 : f32
    %226 = vector.broadcast %cst_40 : f32 to vector<8x128xf32>
    %227 = arith.subf %226, %218 : vector<8x128xf32>
    %228 = arith.mulf %227, %225 : vector<8x128xf32>
    %229 = arith.mulf %218, %199 : vector<8x128xf32>
    %230 = arith.addf %228, %229 : vector<8x128xf32>
    %cst_41 = arith.constant dense<0.000000e+00> : vector<8x384xf32>
    %231 = tpu.matmul %230, %11, %cst_41 {dimension_numbers = #tpu.dot_dimension_numbers<[1], [0], [0], [1], [0, 0, 1, 1], [], []>} : vector<8x128xf32>, vector<128x384xf32>, vector<8x384xf32> -> vector<8x384xf32>
    %232 = vector.extract_strided_slice %10 {offsets = [0, 7, 0], sizes = [8, 1, 384], strides = [1, 1, 1]} : vector<8x8x384xf32> to vector<8x1x384xf32>
    %233 = vector.shape_cast %232 : vector<8x1x384xf32> to vector<8x384xf32>
    %234 = vector.extract_strided_slice %233 {offsets = [0, 0], sizes = [8, 128], strides = [1, 1]} : vector<8x384xf32> to vector<8x128xf32>
    %235 = vector.extract_strided_slice %231 {offsets = [0, 0], sizes = [8, 128], strides = [1, 1]} : vector<8x384xf32> to vector<8x128xf32>
    %236 = arith.addf %234, %235 : vector<8x128xf32>
    %237 = arith.negf %236 : vector<8x128xf32>
    %238 = math.exp %237 : vector<8x128xf32>
    %cst_42 = arith.constant 1.000000e+00 : f32
    %239 = vector.broadcast %cst_42 : f32 to vector<8x128xf32>
    %240 = arith.addf %239, %238 : vector<8x128xf32>
    %241 = arith.divf %239, %240 : vector<8x128xf32>
    %242 = vector.extract_strided_slice %233 {offsets = [0, 128], sizes = [8, 128], strides = [1, 1]} : vector<8x384xf32> to vector<8x128xf32>
    %243 = vector.extract_strided_slice %231 {offsets = [0, 128], sizes = [8, 128], strides = [1, 1]} : vector<8x384xf32> to vector<8x128xf32>
    %244 = arith.addf %242, %243 : vector<8x128xf32>
    %245 = arith.negf %244 : vector<8x128xf32>
    %246 = math.exp %245 : vector<8x128xf32>
    %cst_43 = arith.constant 1.000000e+00 : f32
    %247 = vector.broadcast %cst_43 : f32 to vector<8x128xf32>
    %248 = arith.addf %247, %246 : vector<8x128xf32>
    %249 = arith.divf %247, %248 : vector<8x128xf32>
    %250 = vector.extract_strided_slice %233 {offsets = [0, 256], sizes = [8, 128], strides = [1, 1]} : vector<8x384xf32> to vector<8x128xf32>
    %251 = vector.extract_strided_slice %231 {offsets = [0, 256], sizes = [8, 128], strides = [1, 1]} : vector<8x384xf32> to vector<8x128xf32>
    %252 = vector.broadcast %12 : vector<1x128xf32> to vector<8x128xf32>
    %253 = arith.addf %251, %252 : vector<8x128xf32>
    %254 = arith.mulf %241, %253 : vector<8x128xf32>
    %255 = arith.addf %250, %254 : vector<8x128xf32>
    %256 = math.tanh %255 : vector<8x128xf32>
    %cst_44 = arith.constant 1.000000e+00 : f32
    %257 = vector.broadcast %cst_44 : f32 to vector<8x128xf32>
    %258 = arith.subf %257, %249 : vector<8x128xf32>
    %259 = arith.mulf %258, %256 : vector<8x128xf32>
    %260 = arith.mulf %249, %230 : vector<8x128xf32>
    %261 = arith.addf %259, %260 : vector<8x128xf32>
    %c0_45 = arith.constant 0 : index
    %c0_46 = arith.constant 0 : index
    %262 = vector.load %arg12[%c0_45, %c0_46] : memref<8x128xf32, #tpu.memory_space<vmem>>, vector<8x128xf32>
    tpu.vector_store %arg12[%c0_45, %c0_46], %261 {strides = array<i32>} : memref<8x128xf32, #tpu.memory_space<vmem>>, vector<8x128xf32>,
    %c0_i32_47 = arith.constant 0 : i32
    %263 = arith.cmpi eq, %arg1, %c0_i32_47 : i32
    %264 = arith.extui %263 : i1 to i32
    %c0_i32_48 = arith.constant 0 : i32
    %265 = arith.cmpi ne, %264, %c0_i32_48 : i32
    scf.if %265 {
      %c0_49 = arith.constant 0 : index
      %c0_50 = arith.constant 0 : index
      %266 = vector.load %arg7[%c0_49, %c0_50] : memref<128x128xf32, #tpu.memory_space<vmem>>, vector<128x128xf32>
      %cst_51 = arith.constant dense<0.000000e+00> : vector<8x128xf32>
      %267 = tpu.matmul %261, %266, %cst_51 {dimension_numbers = #tpu.dot_dimension_numbers<[1], [0], [0], [1], [0, 0, 1, 1], [], []>} : vector<8x128xf32>, vector<128x128xf32>, vector<8x128xf32> -> vector<8x128xf32>
      %c0_52 = arith.constant 0 : index
      %c0_53 = arith.constant 0 : index
      %268 = vector.load %arg8[%c0_52, %c0_53] : memref<1x128xf32, #tpu.memory_space<vmem>>, vector<1x128xf32>
      %269 = vector.broadcast %268 : vector<1x128xf32> to vector<8x128xf32>
      %270 = arith.addf %267, %269 : vector<8x128xf32>
      %cst_54 = arith.constant 0.000000e+00 : f32
      %271 = vector.broadcast %cst_54 : f32 to vector<8x128xf32>
      %272 = arith.maximumf %270, %271 : vector<8x128xf32>
      %c0_55 = arith.constant 0 : index
      %c0_56 = arith.constant 0 : index
      %273 = vector.load %arg9[%c0_55, %c0_56] : memref<128x128xf32, #tpu.memory_space<vmem>>, vector<128x128xf32>
      %cst_57 = arith.constant dense<0.000000e+00> : vector<8x128xf32>
      %274 = tpu.matmul %272, %273, %cst_57 {dimension_numbers = #tpu.dot_dimension_numbers<[1], [0], [0], [1], [0, 0, 1, 1], [], []>} : vector<8x128xf32>, vector<128x128xf32>, vector<8x128xf32> -> vector<8x128xf32>
      %c0_58 = arith.constant 0 : index
      %c0_59 = arith.constant 0 : index
      %275 = vector.load %arg10[%c0_58, %c0_59] : memref<1x128xf32, #tpu.memory_space<vmem>>, vector<1x128xf32>
      %276 = vector.broadcast %275 : vector<1x128xf32> to vector<8x128xf32>
      %277 = arith.addf %274, %276 : vector<8x128xf32>
      %278 = arith.negf %277 : vector<8x128xf32>
      %279 = math.exp %278 : vector<8x128xf32>
      %cst_60 = arith.constant 1.000000e+00 : f32
      %280 = vector.broadcast %cst_60 : f32 to vector<8x128xf32>
      %281 = arith.addf %280, %279 : vector<8x128xf32>
      %282 = arith.divf %280, %281 : vector<8x128xf32>
      %c0_61 = arith.constant 0 : index
      %c0_62 = arith.constant 0 : index
      %283 = vector.load %arg11[%c0_61, %c0_62] : memref<8x128xf32, #tpu.memory_space<vmem>>, vector<8x128xf32>
      tpu.vector_store %arg11[%c0_61, %c0_62], %282 {strides = array<i32>} : memref<8x128xf32, #tpu.memory_space<vmem>>, vector<8x128xf32>,
    } else {
    }
    return
  }
  func.func @transform_0(%arg0: i32, %arg1: i32) -> (i32, i32, i32) {
    %c0_i32 = arith.constant 0 : i32
    %c0_i32_0 = arith.constant 0 : i32
    return %arg0, %arg1, %c0_i32 : i32, i32, i32
  }
  func.func @transform_1(%arg0: i32, %arg1: i32) -> (i32, i32) {
    %c0_i32 = arith.constant 0 : i32
    %c0_i32_0 = arith.constant 0 : i32
    %c0_i32_1 = arith.constant 0 : i32
    return %c0_i32, %c0_i32_0 : i32, i32
  }
  func.func @transform_2(%arg0: i32, %arg1: i32) -> (i32, i32) {
    %c0_i32 = arith.constant 0 : i32
    %c0_i32_0 = arith.constant 0 : i32
    %c0_i32_1 = arith.constant 0 : i32
    return %c0_i32, %c0_i32_0 : i32, i32
  }
  func.func @transform_3(%arg0: i32, %arg1: i32) -> (i32, i32) {
    %c0_i32 = arith.constant 0 : i32
    %c0_i32_0 = arith.constant 0 : i32
    %c0_i32_1 = arith.constant 0 : i32
    return %c0_i32, %c0_i32_0 : i32, i32
  }
  func.func @transform_4(%arg0: i32, %arg1: i32) -> (i32, i32) {
    %c0_i32 = arith.constant 0 : i32
    %c0_i32_0 = arith.constant 0 : i32
    %c0_i32_1 = arith.constant 0 : i32
    return %c0_i32, %c0_i32_0 : i32, i32
  }
  func.func @transform_5(%arg0: i32, %arg1: i32) -> (i32, i32) {
    %c0_i32 = arith.constant 0 : i32
    %c0_i32_0 = arith.constant 0 : i32
    %c0_i32_1 = arith.constant 0 : i32
    return %c0_i32, %c0_i32_0 : i32, i32
  }
  func.func @transform_6(%arg0: i32, %arg1: i32) -> (i32, i32) {
    %c0_i32 = arith.constant 0 : i32
    %c0_i32_0 = arith.constant 0 : i32
    %c0_i32_1 = arith.constant 0 : i32
    return %c0_i32, %c0_i32_0 : i32, i32
  }
  func.func @transform_7(%arg0: i32, %arg1: i32) -> (i32, i32) {
    %c0_i32 = arith.constant 0 : i32
    %c0_i32_0 = arith.constant 0 : i32
    %c0_i32_1 = arith.constant 0 : i32
    return %c0_i32, %c0_i32_0 : i32, i32
  }
  func.func @transform_8(%arg0: i32, %arg1: i32) -> (i32, i32) {
    %c0_i32 = arith.constant 0 : i32
    %c0_i32_0 = arith.constant 0 : i32
    %c0_i32_1 = arith.constant 0 : i32
    return %c0_i32, %c0_i32_0 : i32, i32
  }
  func.func @transform_9(%arg0: i32, %arg1: i32) -> (i32, i32) {
    %c0_i32 = arith.constant 0 : i32
    %c0_i32_0 = arith.constant 0 : i32
    return %arg0, %c0_i32 : i32, i32
  }
}

</mosaic_0001>

<bundles_post_ra>
// kernel: rnn_classifier_forward.1
= control target key start
LH: loop header
LB: loop body
LE: loop exit
PB: predicated region body
PF: predicated region fallthrough
CT: control target
= control target key end

     0   :  { %14 = vsyncpa [#allocation4], 0  ;;  %s7405_s0 = inlined_call_operand.hbm [shape: f32[8,8,128], index: 0, kind: input, shape index: {}]   ;;  %s7406_s1 = inlined_call_operand.hbm [shape: f32[128,384], index: 1, kind: input, shape index: {}]   ;;  %s7407_s2 = inlined_call_operand.hbm [shape: f32[128,384], index: 2, kind: input, shape index: {}]   ;;  %s7408_s3 = inlined_call_operand.hbm [shape: f32[1,384], index: 3, kind: input, shape index: {}]   ;;  %s7409_s4 = inlined_call_operand.hbm [shape: f32[1,128], index: 4, kind: input, shape index: {}]   ;;  %s7410_s5 = inlined_call_operand.hbm [shape: f32[128,128], index: 5, kind: input, shape index: {}]   ;;  %s7411_s6 = inlined_call_operand.hbm [shape: f32[1,128], index: 6, kind: input, shape index: {}]   ;;  %s7412_s7 = inlined_call_operand.hbm [shape: f32[128,128], index: 7, kind: input, shape index: {}]   ;;  %s7413_s8 = inlined_call_operand.hbm [shape: f32[1,128], index: 8, kind: input, shape index: {}]   ;;  %s7414_s9 = inlined_call_operand.hbm [shape: f32[8,128], index: 9, kind: output, shape index: {}]  }
   0x1   :  { %15 = vsyncpa [#allocation7], 0 }
   0x2   :  { %16 = vsyncpa [#allocation10], 0 }
   0x3   :  { %17 = vsyncpa [#allocation13], 0 }
   0x4   :  { %18 = vsyncpa [#allocation16], 0 }
   0x5   :  { %19 = vsyncpa [#allocation5], 0  ;;  %s6088_s30 = smov [#allocation6]   ;;  %s5856_s13 = scalar_lea.hbm %s7406_s1, 6144 }
   0x6   :  { %s37_s10 = sshll.u32 %s6088_s30, 4  ;;  %p5857_p0 = scmp.ne.s32.totalorder %s7406_s1, %s5856_s13  ;;  %s38_s10 = int_to_ptr.vmem [resolvable:$true] %s37_s10 }
   0x7   :  { %p5860_p1 = scmp.lt.u32.totalorder %s5856_s13, %s7406_s1 }
   0x9   :  { %p5862_p2 = pnand %p5860_p1, %p5857_p0 }
   0xb   :  { %5865 = shalt.err (!%p5862_p2)
}
   0xc   :  { %s5866_s18 = scalar_lea.vmem %s38_s10, 6144  ;;  %p5871_p4 = scmp.lt.s32.totalorder %s38_s10, %s38_s10 }
   0xd   :  { %p5867_p3 = scmp.ne.s32.totalorder %s38_s10, %s5866_s18  ;;  %p5872_p5 = scmp.lt.s32.totalorder %s5866_s18, %s5866_s18 }
   0xf   :  { %p5873_p6 = por %p5872_p5, %p5871_p4 }
  0x11   :  { %p5874_p7 = pnand %p5873_p6, %p5867_p3 }
  0x13   :  { %5877 = shalt.err (!%p5874_p7)
}
  0x14   :  { %s6089_s19 = smov 384   ;;  %s6090_s20 = smov 24  }
  0x15   :  { %43 = dma.hbm_to_vmem [thread:$0]  %s7406_s1, 6144, %s38_s10, [#allocation7], %s6089_s19, %s6089_s19, %s6090_s20  }
  0x16   :  { %s6091_s23 = smov [#allocation9]   ;;  %s5878_s27 = scalar_lea.hbm %s7408_s3, 48 }
  0x17   :  { %s62_s24 = sshll.u32 %s6091_s23, 4  ;;  %p5879_p8 = scmp.ne.s32.totalorder %s7408_s3, %s5878_s27  ;;  %s63_s24 = int_to_ptr.vmem [resolvable:$true] %s62_s24 }
  0x18   :  { %p5882_p9 = scmp.lt.u32.totalorder %s5878_s27, %s7408_s3 }
  0x1a   :  { %p5884_p10 = pnand %p5882_p9, %p5879_p8 }
  0x1c   :  { %5887 = shalt.err (!%p5884_p10)
}
  0x1d   :  { %s5888_s12 = scalar_lea.vmem %s63_s24, 48  ;;  %s5892_s1 = scalar_lea.vmem %s63_s24, 64 }
  0x1e   :  { %p5889_p11 = scmp.ne.s32.totalorder %s63_s24, %s5888_s12  ;;  %p5893_p12 = scmp.lt.s32.totalorder %s63_s24, %s63_s24 }
  0x1f   :  { %p5894_p13 = scmp.lt.s32.totalorder %s5892_s1, %s5888_s12 }
  0x21   :  { %p5895_p0 = por %p5894_p13, %p5893_p12 }
  0x23   :  { %p5896_p1 = pnand %p5895_p0, %p5889_p11 }
  0x25   :  { %5899 = shalt.err (!%p5896_p1)
}
  0x26   :  { %65 = dma.hbm_to_vmem [thread:$0]  %s7408_s3, 48, %s63_s24, [#allocation10]  }
  0x27   :  { %s6092_s14 = smov [#allocation12]   ;;  %s6093_s16 = smov [#allocation15]  }
  0x28   :  { %s81_s15 = sshll.u32 %s6092_s14, 4  ;;  %s103_s17 = sshll.u32 %s6093_s16, 4  ;;  %s82_s15 = int_to_ptr.vmem [resolvable:$true] %s81_s15  ;;  %s6182_s17 = int_to_ptr.vmem [resolvable:$true] %s103_s17 }
  0x29   :  { %s5900_s22 = scalar_lea.hbm %s7410_s5, 2048 }
  0x2a   :  { %p5901_p2 = scmp.ne.s32.totalorder %s7410_s5, %s5900_s22  ;;  %p5904_p3 = scmp.lt.u32.totalorder %s5900_s22, %s7410_s5 }
  0x2c   :  { %p5906_p4 = pnand %p5904_p3, %p5901_p2 }
  0x2e   :  { %5909 = shalt.err (!%p5906_p4)
}
  0x2f   :  { %s5910_s3 = scalar_lea.vmem %s82_s15, 2048  ;;  %p5915_p6 = scmp.lt.s32.totalorder %s82_s15, %s82_s15 }
  0x30   :  { %p5911_p5 = scmp.ne.s32.totalorder %s82_s15, %s5910_s3  ;;  %p5916_p7 = scmp.lt.s32.totalorder %s5910_s3, %s5910_s3 }
  0x32   :  { %p5917_p8 = por %p5916_p7, %p5915_p6 }
  0x34   :  { %p5918_p9 = pnand %p5917_p8, %p5911_p5 }
  0x36   :  { %5921 = shalt.err (!%p5918_p9)
}
  0x37   :  { %s6094_s24 = smov 128   ;;  %s6095_s28 = smov 8  }
  0x38   :  { %87 = dma.hbm_to_vmem [thread:$0]  %s7410_s5, 2048, %s82_s15, [#allocation13], %s6094_s24, %s6094_s24, %s6095_s28  }
  0x39   :  { %s5922_s1 = scalar_lea.hbm %s7412_s7, 2048 }
  0x3a   :  { %p5923_p10 = scmp.ne.s32.totalorder %s7412_s7, %s5922_s1  ;;  %p5926_p11 = scmp.lt.u32.totalorder %s5922_s1, %s7412_s7 }
  0x3c   :  { %p5928_p12 = pnand %p5926_p11, %p5923_p10 }
  0x3e   :  { %5931 = shalt.err (!%p5928_p12)
}
  0x3f   :  { %s5932_s18 = scalar_lea.vmem %s6182_s17, 2048  ;;  %p5937_p0 = scmp.lt.s32.totalorder %s6182_s17, %s6182_s17 }
  0x40   :  { %p5933_p13 = scmp.ne.s32.totalorder %s6182_s17, %s5932_s18  ;;  %p5938_p1 = scmp.lt.s32.totalorder %s5932_s18, %s5932_s18 }
  0x42   :  { %p5939_p2 = por %p5938_p1, %p5937_p0 }
  0x44   :  { %p5940_p3 = pnand %p5939_p2, %p5933_p13 }
  0x46   :  { %5943 = shalt.err (!%p5940_p3)
}
  0x47   :  { %109 = dma.hbm_to_vmem [thread:$0]  %s7412_s7, 2048, %s6182_s17, [#allocation16], %s6094_s24, %s6094_s24, %s6095_s28  }
  0x48   :  { %s6096_s21 = smov [#allocation3]   ;;  %s6097_s23 = smov [#allocation8]  }
  0x49   :  { %s25_s22 = sshll.u32 %s6096_s21, 4  ;;  %s49_s25 = sshll.u32 %s6097_s23, 4  ;;  %s26_s22 = int_to_ptr.vmem [resolvable:$true] %s25_s22  ;;  %s6219_s25 = int_to_ptr.vmem [resolvable:$true] %s49_s25 }
  0x4a   :  { %s5944_s3 = scalar_lea.hbm %s7405_s0, 1024 }
  0x4b   :  { %p5945_p4 = scmp.ne.s32.totalorder %s7405_s0, %s5944_s3  ;;  %p5948_p5 = scmp.lt.u32.totalorder %s5944_s3, %s7405_s0 }
  0x4d   :  { %p5950_p6 = pnand %p5948_p5, %p5945_p4 }
  0x4f   :  { %5953 = shalt.err (!%p5950_p6)
}
  0x50   :  { %s5954_s7 = scalar_lea.vmem %s26_s22, 1024  ;;  %p5959_p8 = scmp.lt.s32.totalorder %s26_s22, %s26_s22 }
  0x51   :  { %p5955_p7 = scmp.ne.s32.totalorder %s26_s22, %s5954_s7  ;;  %p5960_p9 = scmp.lt.s32.totalorder %s5954_s7, %s5954_s7 }
  0x53   :  { %p5961_p10 = por %p5960_p9, %p5959_p8 }
  0x55   :  { %p5962_p11 = pnand %p5961_p10, %p5955_p7 }
  0x57   :  { %5965 = shalt.err (!%p5962_p11)
}
  0x58   :  { %31 = dma.hbm_to_vmem [thread:$0]  %s7405_s0, 1024, %s26_s22, [#allocation4], %s6094_s24, %s6094_s24, %s6095_s28  }
  0x59   :  { %s5966_s14 = scalar_lea.hbm %s7407_s2, 6144 }
  0x5a   :  { %p5967_p12 = scmp.ne.s32.totalorder %s7407_s2, %s5966_s14  ;;  %p5970_p13 = scmp.lt.u32.totalorder %s5966_s14, %s7407_s2 }
  0x5c   :  { %p5972_p0 = pnand %p5970_p13, %p5967_p12 }
  0x5e   :  { %5975 = shalt.err (!%p5972_p0)
}
  0x5f   :  { %s5976_s21 = scalar_lea.vmem %s6219_s25, 6144  ;;  %p5981_p2 = scmp.lt.s32.totalorder %s6219_s25, %s6219_s25 }
  0x60   :  { %p5977_p1 = scmp.ne.s32.totalorder %s6219_s25, %s5976_s21  ;;  %p5982_p3 = scmp.lt.s32.totalorder %s5976_s21, %s5976_s21 }
  0x62   :  { %p5983_p4 = por %p5982_p3, %p5981_p2 }
  0x64   :  { %p5984_p5 = pnand %p5983_p4, %p5977_p1 }
  0x66   :  { %5987 = shalt.err (!%p5984_p5)
}
  0x67   :  { %55 = dma.hbm_to_vmem [thread:$0]  %s7407_s2, 6144, %s6219_s25, [#allocation7], %s6089_s19, %s6089_s19, %s6090_s20  }
  0x68   :  { %s6098_s28 = smov [#allocation11]   ;;  %s6099_s23 = smov [#allocation14]  }
  0x69   :  { %s72_s22 = sshll.u32 %s6098_s28, 4  ;;  %s94_s26 = sshll.u32 %s6099_s23, 4  ;;  %s73_s22 = int_to_ptr.vmem [resolvable:$true] %s72_s22  ;;  %s95_s26 = int_to_ptr.vmem [resolvable:$true] %s94_s26 }
  0x6a   :  { %s5988_s29 = scalar_lea.hbm %s7409_s4, 16 }
  0x6b   :  { %p5989_p6 = scmp.ne.s32.totalorder %s7409_s4, %s5988_s29  ;;  %p5992_p7 = scmp.lt.u32.totalorder %s5988_s29, %s7409_s4 }
  0x6d   :  { %p5994_p8 = pnand %p5992_p7, %p5989_p6 }
  0x6f   :  { %5997 = shalt.err (!%p5994_p8)
}
  0x70   :  { %s5998_s2 = scalar_lea.vmem %s73_s22, 16  ;;  %s6002_s19 = scalar_lea.vmem %s73_s22, 32 }
  0x71   :  { %p5999_p9 = scmp.ne.s32.totalorder %s73_s22, %s5998_s2  ;;  %p6003_p10 = scmp.lt.s32.totalorder %s73_s22, %s73_s22 }
  0x72   :  { %p6004_p11 = scmp.lt.s32.totalorder %s6002_s19, %s5998_s2 }
  0x74   :  { %p6005_p12 = por %p6004_p11, %p6003_p10 }
  0x76   :  { %p6006_p13 = pnand %p6005_p12, %p5999_p9 }
  0x78   :  { %6009 = shalt.err (!%p6006_p13)
}
  0x79   :  { %75 = dma.hbm_to_vmem [thread:$0]  %s7409_s4, 16, %s73_s22, [#allocation10]  }
  0x7a   :  { %s6010_s10 = scalar_lea.hbm %s7411_s6, 16 }
  0x7b   :  { %p6011_p0 = scmp.ne.s32.totalorder %s7411_s6, %s6010_s10  ;;  %p6014_p1 = scmp.lt.u32.totalorder %s6010_s10, %s7411_s6 }
  0x7d   :  { %p6016_p2 = pnand %p6014_p1, %p6011_p0 }
  0x7f   :  { %6019 = shalt.err (!%p6016_p2)
}
  0x80   :  { %s6020_s5 = scalar_lea.vmem %s95_s26, 16  ;;  %s6024_s15 = scalar_lea.vmem %s95_s26, 32 }
  0x81   :  { %p6021_p3 = scmp.ne.s32.totalorder %s95_s26, %s6020_s5  ;;  %p6025_p4 = scmp.lt.s32.totalorder %s95_s26, %s95_s26 }
  0x82   :  { %p6026_p5 = scmp.lt.s32.totalorder %s6024_s15, %s6020_s5 }
  0x84   :  { %p6027_p6 = por %p6026_p5, %p6025_p4 }
  0x86   :  { %p6028_p7 = pnand %p6027_p6, %p6021_p3 }
  0x88   :  { %6031 = shalt.err (!%p6028_p7)
}
  0x89   :  { %97 = dma.hbm_to_vmem [thread:$0]  %s7411_s6, 16, %s95_s26, [#allocation13]  }
  0x8a   :  { %s6100_s0 = smov [#allocation17]   ;;  %s6032_s23 = scalar_lea.hbm %s7413_s8, 16 }
  0x8b   :  { %s116_s24 = sshll.u32 %s6100_s0, 4  ;;  %p6033_p8 = scmp.ne.s32.totalorder %s7413_s8, %s6032_s23  ;;  %s117_s24 = int_to_ptr.vmem [resolvable:$true] %s116_s24 }
  0x8c   :  { %p6036_p9 = scmp.lt.u32.totalorder %s6032_s23, %s7413_s8 }
  0x8e   :  { %p6038_p10 = pnand %p6036_p9, %p6033_p8 }
  0x90   :  { %6041 = shalt.err (!%p6038_p10)
}
  0x91   :  { %s6042_s11 = scalar_lea.vmem %s117_s24, 16  ;;  %s6046_s6 = scalar_lea.vmem %s117_s24, 32 }
  0x92   :  { %p6043_p11 = scmp.ne.s32.totalorder %s117_s24, %s6042_s11  ;;  %p6047_p12 = scmp.lt.s32.totalorder %s117_s24, %s117_s24 }
  0x93   :  { %p6048_p13 = scmp.lt.s32.totalorder %s6046_s6, %s6042_s11 }
  0x95   :  { %p6049_p0 = por %p6048_p13, %p6047_p12 }
  0x97   :  { %p6050_p1 = pnand %p6049_p0, %p6043_p11 }
  0x99   :  { %6053 = shalt.err (!%p6050_p1)
}
  0x9a   :  { %119 = dma.hbm_to_vmem [thread:$0]  %s7413_s8, 16, %s117_s24, [#allocation16]  }
  0x9b   :  { %6076 = dma.done.wait [#allocation4], 1024  }
  0x9c   :  { %6077 = vsyncadd [#allocation4], 4294966272 }
  0x9d   :  { %6078 = dma.done.wait [#allocation7], 12288  }
  0x9e   :  { %6079 = vsyncadd [#allocation7], 4294955008 }
  0x9f   :  { %6080 = dma.done.wait [#allocation10], 64  }
  0xa0   :  { %6081 = vsyncadd [#allocation10], 4294967232 }
  0xa1   :  { %6082 = dma.done.wait [#allocation13], 2064  }
  0xa2   :  { %6083 = vsyncadd [#allocation13], 4294965232 }
  0xa3   :  { %6084 = dma.done.wait [#allocation16], 2064  }
  0xa4   :  { %6085 = vsyncadd [#allocation16], 4294965232  ;;  %v7417_v0 = vmov 0.0   ;;  %v161_v1 = vld [vmem:[#allocation6 + $0x8] sm:$0xff]  ;;  %v164_v2 = vld [vmem:[#allocation6 + $0x20] sm:$0xff]  ;;  %vm6103_vm0 = vmmov 0  }
  0xa5   :  { %289 = vmatprep.mubr.f32.mxu0 %v7417_v0  ;;  %151 = vst [vmem:[#allocation2] sm:$0xff] %v7417_v0  ;;  %v160_v3 = vld [vmem:[#allocation6] sm:$0xff]  ;;  %v4628_v4 = vpack.c.bf16 %v164_v2, %v161_v1  ;;  %v163_v5 = vld [vmem:[#allocation6 + $0x18] sm:$0xff]  ;;  %v170_v7 = vld [vmem:[#allocation6 + $0x50] sm:$0xff]  ;;  %vm882_vm1 = vcmask 1041409   ;;  %vm885_vm2 = vcmask 1042434  }
  0xa6   :  { %v167_v6 = vld [vmem:[#allocation6 + $0x38] sm:$0xff]  ;;  %v4630_v8 = vpack.c.bf16 %v163_v5, %v160_v3  ;;  %v166_v10 = vld [vmem:[#allocation6 + $0x30] sm:$0xff]  ;;  %v169_v11 = vld [vmem:[#allocation6 + $0x48] sm:$0xff]  ;;  %vm888_vm3 = vcmask 1043459   ;;  %vm891_vm4 = vcmask 1044484   ;;  %vm894_vm5 = vcmask 1045509  }
  0xa7   :  { %v4632_v9 = vpack.c.bf16 %v170_v7, %v167_v6  ;;  %v173_v12 = vld [vmem:[#allocation6 + $0x68] sm:$0xff]  ;;  %4629 = vmatprep.subr.bf16.mxu0 %v4628_v4  ;;  %v176_v13 = vld [vmem:[#allocation6 + $0x80] sm:$0xff]  ;;  %v4634_v14 = vpack.c.bf16 %v169_v11, %v166_v10  ;;  %v175_v17 = vld [vmem:[#allocation6 + $0x78] sm:$0xff]  ;;  %vm897_vm6 = vcmask 1046534   ;;  %vm900_vm7 = vcmask 1047559   ;;  %s6104_s8 = smov [#allocation18]  }
  0xa8   :  { %4631 = vmatpush1.bf16.msra.mxu0 %v4630_v8  ;;  %v4636_v15 = vpack.c.bf16 %v176_v13, %v173_v12  ;;  %v172_v16 = vld [vmem:[#allocation6 + $0x60] sm:$0xff]  ;;  %v179_v18 = vld [vmem:[#allocation6 + $0x98] sm:$0xff]  ;;  %v182_v19 = vld [vmem:[#allocation6 + $0xb0] sm:$0xff]  ;;  %s3895_s7 = sshll.u32 %s6104_s8, 4  ;;  %s3896_s7 = int_to_ptr.vmem [resolvable:$true] %s3895_s7 }
  0xa9   :  { %4633 = vmatprep.subr.bf16.mxu0 %v4632_v9  ;;  %v4638_v20 = vpack.c.bf16 %v175_v17, %v172_v16  ;;  %v178_v21 = vld [vmem:[#allocation6 + $0x90] sm:$0xff]  ;;  %v4640_v22 = vpack.c.bf16 %v182_v19, %v179_v18  ;;  %v181_v23 = vld [vmem:[#allocation6 + $0xa8] sm:$0xff]  ;;  %v188_v27 = vld [vmem:[#allocation6 + $0xe0] sm:$0xff]  ;;  %s6054_s2 = scalar_lea.vmem %s3896_s7, 128  ;;  %p6059_p3 = scmp.lt.s32.totalorder %s3896_s7, %s3896_s7 }
  0xaa   :  { %v162_v24 = vld [vmem:[#allocation6 + $0x10] sm:$0xff]  ;;  %v165_v25 = vld [vmem:[#allocation6 + $0x28] sm:$0xff]  ;;  %v168_v29 = vld [vmem:[#allocation6 + $0x40] sm:$0xff]  ;;  %v4642_v31 = vpack.c.bf16 %v181_v23, %v178_v21  ;;  %p6055_p2 = scmp.ne.s32.totalorder %s3896_s7, %s6054_s2  ;;  %p6060_p4 = scmp.lt.s32.totalorder %s6054_s2, %s6054_s2 }
  0xab   :  { %v185_v26 = vld [vmem:[#allocation6 + $0xc8] sm:$0xff]  ;;  %v4660_v28 = vpack.c.bf16 %v165_v25, %v162_v24  ;;  %v171_v30 = vld [vmem:[#allocation6 + $0x58] sm:$0xff]  ;;  %v184_v32 = vld [vmem:[#allocation6 + $0xc0] sm:$0xff] }
  0xac   :  { %4635 = vmatpush1.bf16.msra.mxu0 %v4634_v14  ;;  %v4664_v33 = vpack.c.bf16 %v171_v30, %v168_v29  ;;  %v4644_v34 = vpack.c.bf16 %v188_v27, %v185_v26  ;;  %v187_v35 = vld [vmem:[#allocation6 + $0xd8] sm:$0xff]  ;;  %v6294_v36 = vld [vmem:[#allocation3] sm:$0xff]  ;;  %v174_v37 = vld [vmem:[#allocation6 + $0x70] sm:$0xff]  ;;  %p6061_p5 = por %p6060_p4, %p6059_p3 }
  0xad   :  { %4637 = vmatprep.subr.bf16.mxu0 %v4636_v15  ;;  %4661 = vmatprep.subr.bf16.mxu1 %v4660_v28  ;;  %v191_v38 = vld [vmem:[#allocation6 + $0xf8] sm:$0xff]  ;;  %v194_v39 = vld [vmem:[#allocation6 + $0x110] sm:$0xff]  ;;  %v177_v40 = vld [vmem:[#allocation6 + $0x88] sm:$0xff]  ;;  %v4646_v42 = vpack.c.bf16 %v187_v35, %v184_v32 }
  0xae   :  { %4663 = vmatpush3.bf16.msra.mxu1 %v4660_v28  ;;  %4266 = vmatprep.mubr.f32.mxu1 %v6294_v36  ;;  %v4668_v41 = vpack.c.bf16 %v177_v40, %v174_v37  ;;  %v180_v43 = vld [vmem:[#allocation6 + $0xa0] sm:$0xff]  ;;  %v183_v44 = vld [vmem:[#allocation6 + $0xb8] sm:$0xff]  ;;  %v4648_v45 = vpack.c.bf16 %v194_v39, %v191_v38  ;;  %v190_v46 = vld [vmem:[#allocation6 + $0xf0] sm:$0xff]  ;;  %v7415_v40 = vmov 0.0|0.0   ;;  %p6062_p6 = pnand %p6061_p5, %p6055_p2 }
  0xaf   :  { %4665 = vmatprep.subr.bf16.mxu1 %v4664_v33  ;;  %v193_v47 = vld [vmem:[#allocation6 + $0x108] sm:$0xff]  ;;  %v200_v49 = vld [vmem:[#allocation6 + $0x140] sm:$0xff]  ;;  %v4672_v50 = vpack.c.bf16 %v183_v44, %v180_v43  ;;  %v186_v51 = vld [vmem:[#allocation6 + $0xd0] sm:$0xff] }
  0xb0   :  { %4639 = vmatpush1.bf16.msra.mxu0 %v4638_v20  ;;  %v197_v48 = vld [vmem:[#allocation6 + $0x128] sm:$0xff]  ;;  %v4650_v53 = vpack.c.bf16 %v193_v47, %v190_v46  ;;  %v196_v55 = vld [vmem:[#allocation6 + $0x120] sm:$0xff]  ;;  %v199_v56 = vld [vmem:[#allocation6 + $0x138] sm:$0xff] }
  0xb1   :  { %4641 = vmatprep.subr.bf16.mxu0 %v4640_v22  ;;  %v189_v52 = vld [vmem:[#allocation6 + $0xe8] sm:$0xff]  ;;  %v4652_v54 = vpack.c.bf16 %v200_v49, %v197_v48  ;;  %v203_v57 = vld [vmem:[#allocation6 + $0x158] sm:$0xff]  ;;  %v206_v58 = vld [vmem:[#allocation6 + $0x170] sm:$0xff]  ;;  %v4654_v62 = vpack.c.bf16 %v199_v56, %v196_v55 }
  0xb2   :  { %4667 = vmatpush3.bf16.msra.mxu1 %v4664_v33  ;;  %v4676_v59 = vpack.c.bf16 %v189_v52, %v186_v51  ;;  %v192_v60 = vld [vmem:[#allocation6 + $0x100] sm:$0xff]  ;;  %v195_v61 = vld [vmem:[#allocation6 + $0x118] sm:$0xff]  ;;  %v4656_v63 = vpack.c.bf16 %v206_v58, %v203_v57  ;;  %v202_v1 = vld [vmem:[#allocation6 + $0x150] sm:$0xff] }
  0xb3   :  { %4669 = vmatprep.subr.bf16.mxu1 %v4668_v41  ;;  %v205_v2 = vld [vmem:[#allocation6 + $0x168] sm:$0xff]  ;;  %v447_v4 = vld [vmem:[#allocation8 + $0x20] sm:$0xff]  ;;  %v4680_v5 = vpack.c.bf16 %v195_v61, %v192_v60  ;;  %v198_v6 = vld [vmem:[#allocation6 + $0x130] sm:$0xff] }
  0xb4   :  { %4643 = vmatpush1.bf16.msra.mxu0 %v4642_v31  ;;  %v444_v3 = vld [vmem:[#allocation8 + $0x8] sm:$0xff]  ;;  %v4658_v8 = vpack.c.bf16 %v205_v2, %v202_v1  ;;  %v443_v10 = vld [vmem:[#allocation8] sm:$0xff]  ;;  %v446_v11 = vld [vmem:[#allocation8 + $0x18] sm:$0xff] }
  0xb5   :  { %4645 = vmatprep.subr.bf16.mxu0 %v4644_v34  ;;  %v201_v7 = vld [vmem:[#allocation6 + $0x148] sm:$0xff]  ;;  %v6297_v9 = vpack.c.bf16 %v447_v4, %v444_v3  ;;  %v450_v12 = vld [vmem:[#allocation8 + $0x38] sm:$0xff]  ;;  %v453_v13 = vld [vmem:[#allocation8 + $0x50] sm:$0xff]  ;;  %v6299_v17 = vpack.c.bf16 %v446_v11, %v443_v10 }
  0xb6   :  { %4671 = vmatpush3.bf16.msra.mxu1 %v4668_v41  ;;  %v4684_v14 = vpack.c.bf16 %v201_v7, %v198_v6  ;;  %v204_v15 = vld [vmem:[#allocation6 + $0x160] sm:$0xff]  ;;  %v207_v16 = vld [vmem:[#allocation6 + $0x178] sm:$0xff]  ;;  %v6302_v18 = vpack.c.bf16 %v453_v13, %v450_v12  ;;  %v449_v19 = vld [vmem:[#allocation8 + $0x30] sm:$0xff] }
  0xb7   :  { %4673 = vmatprep.subr.bf16.mxu1 %v4672_v50  ;;  %7490 = vst [vmem:[#allocation25_spill] sm:$0xff] %v6297_v9  ;;  %v452_v20 = vld [vmem:[#allocation8 + $0x48] sm:$0xff]  ;;  %v459_v22 = vld [vmem:[#allocation8 + $0x80] sm:$0xff]  ;;  %v4688_v23 = vpack.c.bf16 %v207_v16, %v204_v15  ;;  %v458_v28 = vld [vmem:[#allocation8 + $0x78] sm:$0xff] }
  0xb8   :  { %4647 = vmatpush1.bf16.msra.mxu0 %v4646_v42  ;;  %v456_v21 = vld [vmem:[#allocation8 + $0x68] sm:$0xff]  ;;  %v6307_v25 = vpack.c.bf16 %v452_v20, %v449_v19  ;;  %v455_v27 = vld [vmem:[#allocation8 + $0x60] sm:$0xff]  ;;  %v462_v29 = vld [vmem:[#allocation8 + $0x98] sm:$0xff] }
  0xb9   :  { %4649 = vmatprep.subr.bf16.mxu0 %v4648_v45  ;;  %v153_v24 = vld [vmem:[#allocation3 + $0x8] sm:$0xff]  ;;  %v6310_v26 = vpack.c.bf16 %v459_v22, %v456_v21  ;;  %v465_v30 = vld [vmem:[#allocation8 + $0xb0] sm:$0xff]  ;;  %v6314_v34 = vpack.c.bf16 %v458_v28, %v455_v27  ;;  %v471_v39 = vld [vmem:[#allocation8 + $0xe0] sm:$0xff] }
  0xba   :  { %4675 = vmatpush3.bf16.msra.mxu1 %v4672_v50  ;;  %v445_v31 = vld [vmem:[#allocation8 + $0x10] sm:$0xff]  ;;  %v448_v32 = vld [vmem:[#allocation8 + $0x28] sm:$0xff]  ;;  %v6317_v35 = vpack.c.bf16 %v465_v30, %v462_v29  ;;  %v451_v42 = vld [vmem:[#allocation8 + $0x40] sm:$0xff] }
  0xbb   :  { %4677 = vmatprep.subr.bf16.mxu1 %v4676_v59  ;;  %v154_v33 = vld [vmem:[#allocation3 + $0x10] sm:$0xff]  ;;  %v464_v37 = vld [vmem:[#allocation8 + $0xa8] sm:$0xff]  ;;  %v6320_v41 = vpack.c.bf16 %v448_v32, %v445_v31  ;;  %v454_v43 = vld [vmem:[#allocation8 + $0x58] sm:$0xff] }
  0xbc   :  { %4651 = vmatpush1.bf16.msra.mxu0 %v4650_v53  ;;  %v468_v38 = vld [vmem:[#allocation8 + $0xc8] sm:$0xff]  ;;  %v155_v44 = vld [vmem:[#allocation3 + $0x18] sm:$0xff]  ;;  %v467_v47 = vld [vmem:[#allocation8 + $0xc0] sm:$0xff]  ;;  %v6330_v51 = vpack.c.bf16 %v454_v43, %v451_v42 }
  0xbd   :  { %4653 = vmatprep.subr.bf16.mxu0 %v4652_v54  ;;  %v6327_v46 = vpack.c.bf16 %v471_v39, %v468_v38  ;;  %v470_v48 = vld [vmem:[#allocation8 + $0xd8] sm:$0xff]  ;;  %v477_v50 = vld [vmem:[#allocation8 + $0x110] sm:$0xff]  ;;  %v460_v53 = vld [vmem:[#allocation8 + $0x88] sm:$0xff] }
  0xbe   :  { %4679 = vmatpush3.bf16.msra.mxu1 %v4676_v59  ;;  %v474_v49 = vld [vmem:[#allocation8 + $0xf8] sm:$0xff]  ;;  %v457_v52 = vld [vmem:[#allocation8 + $0x70] sm:$0xff]  ;;  %v156_v54 = vld [vmem:[#allocation3 + $0x20] sm:$0xff]  ;;  %v6335_v55 = vpack.c.bf16 %v470_v48, %v467_v47 }
  0xbf   :  { %4681 = vmatprep.subr.bf16.mxu1 %v4680_v5  ;;  %v6338_v56 = vpack.c.bf16 %v477_v50, %v474_v49  ;;  %v473_v57 = vld [vmem:[#allocation8 + $0xf0] sm:$0xff]  ;;  %v476_v58 = vld [vmem:[#allocation8 + $0x108] sm:$0xff]  ;;  %v483_v60 = vld [vmem:[#allocation8 + $0x140] sm:$0xff]  ;;  %v6341_v61 = vpack.c.bf16 %v460_v53, %v457_v52  ;;  %v210_v49 = vlaneseq }
  0xc0   :  { %4655 = vmatpush1.bf16.msra.mxu0 %v4654_v62  ;;  %v480_v59 = vld [vmem:[#allocation8 + $0x128] sm:$0xff]  ;;  %v463_v62 = vld [vmem:[#allocation8 + $0xa0] sm:$0xff]  ;;  %v6346_v2 = vpack.c.bf16 %v476_v58, %v473_v57  ;;  %v158_v3 = vld [vmem:[#allocation3 + $0x30] sm:$0xff] }
  0xc1   :  { %4657 = vmatprep.subr.bf16.mxu0 %v4656_v63  ;;  %v466_v63 = vld [vmem:[#allocation8 + $0xb8] sm:$0xff]  ;;  %v157_v1 = vld [vmem:[#allocation3 + $0x28] sm:$0xff]  ;;  %v6349_v4 = vpack.c.bf16 %v483_v60, %v480_v59  ;;  %v469_v11 = vld [vmem:[#allocation8 + $0xd0] sm:$0xff]  ;;  %v6435_v57 = vshrl.u32 %v210_v49, 7 }
  0xc2   :  { %4683 = vmatpush3.bf16.msra.mxu1 %v4680_v5  ;;  %7491 = vst [vmem:[#allocation26_spill] sm:$0xff] %v6346_v2  ;;  %v479_v5 = vld [vmem:[#allocation8 + $0x120] sm:$0xff]  ;;  %v482_v6 = vld [vmem:[#allocation8 + $0x138] sm:$0xff]  ;;  %v6352_v10 = vpack.c.bf16 %v466_v63, %v463_v62  ;;  %v472_v12 = vld [vmem:[#allocation8 + $0xe8] sm:$0xff] }
  0xc3   :  { %4685 = vmatprep.subr.bf16.mxu1 %v4684_v14  ;;  %7492 = vst [vmem:[#allocation27_spill] sm:$0xff] %v6349_v4  ;;  %v486_v7 = vld [vmem:[#allocation8 + $0x158] sm:$0xff]  ;;  %v6357_v13 = vpack.c.bf16 %v482_v6, %v479_v5  ;;  %v485_v16 = vld [vmem:[#allocation8 + $0x150] sm:$0xff]  ;;  %v488_v19 = vld [vmem:[#allocation8 + $0x168] sm:$0xff]  ;;  %v6363_v20 = vpack.c.bf16 %v472_v12, %v469_v11  ;;  %v212_v63 = vsub.s32 0, %v6435_v57 }
  0xc4   :  { %4659 = vmatpush1.bf16.msra.mxu0 %v4658_v8  ;;  %v489_v8 = vld [vmem:[#allocation8 + $0x170] sm:$0xff]  ;;  %v475_v21 = vld [vmem:[#allocation8 + $0x100] sm:$0xff]  ;;  %v478_v22 = vld [vmem:[#allocation8 + $0x118] sm:$0xff] }
  0xc5   :  { %4693 = vmatprep.subr.bf16.mxu0 %v6297_v9  ;;  %7493 = vst [vmem:[#allocation28_spill] sm:$0xff] %v6357_v13  ;;  %v6360_v15 = vpack.c.bf16 %v489_v8, %v486_v7  ;;  %v481_v27 = vld [vmem:[#allocation8 + $0x130] sm:$0xff]  ;;  %v484_v28 = vld [vmem:[#allocation8 + $0x148] sm:$0xff]  ;;  %v487_v30 = vld [vmem:[#allocation8 + $0x160] sm:$0xff] }
  0xc6   :  { %4687 = vmatpush3.bf16.msra.mxu1 %v4684_v14  ;;  %v159_v14 = vld [vmem:[#allocation3 + $0x38] sm:$0xff]  ;;  %v6381_v29 = vpack.c.bf16 %v484_v28, %v481_v27  ;;  %v6447_v5 = vld [vmem:[#allocation9] sm:$0x7] }
  0xc7   :  { %290 = vmatmul.mubr.f32.vlgmr.msra.gmra.mrb[0].mxu0 %v6294_v36  ;;  %4689 = vmatprep.subr.bf16.mxu1 %v4688_v23  ;;  %v461_v36 = vld [vmem:[#allocation8 + $0x90] sm:$0xff]  ;;  %7494 = vst [vmem:[#allocation29_spill] sm:$0xff] %v6360_v15  ;;  %v490_v31 = vld [vmem:[#allocation8 + $0x178] sm:$0xff]  ;;  %v213_v11 = vrot.slane %v6447_v5, %v212_v63 }
  0xc8   :  { %4695 = vmatpush1.bf16.msra.mxu0 %v6299_v17  ;;  %295 = vmatprep.mubr.f32.mxu0 %v7417_v0  ;;  %v6324_v45 = vpack.c.bf16 %v464_v37, %v461_v36  ;;  %7497 = vst [vmem:[#allocation32_spill] sm:$0xff] %v6381_v29  ;;  %v6389_v32 = vpack.c.bf16 %v490_v31, %v487_v30 }
  0xc9   :  { %4697 = vmatprep.subr.bf16.mxu0 %v6302_v18 }
  0xca   :  { %4691 = vmatpush3.bf16.msra.mxu1 %v4688_v23  ;;  %v6370_v23 = vpack.c.bf16 %v488_v19, %v485_v16  ;;  %7498 = vst [vmem:[#allocation33_spill] sm:$0xff] %v6389_v32 }
  0xcb   :  { %296 = vmatmul.mubr.f32.gmra.mrb[2].mxu0 %v153_v24  ;;  %4724 = vmatprep.subr.bf16.mxu1 %v7415_v40 }
  0xcc   :  { %4699 = vmatpush1.bf16.msra.mxu0 %v6307_v25  ;;  %301 = vmatprep.mubr.f32.mxu0 %v7417_v0  ;;  %7495 = vst [vmem:[#allocation30_spill] sm:$0xff] %v6370_v23 }
  0xcd   :  { %4701 = vmatprep.subr.bf16.mxu0 %v6310_v26  ;;  %4267 = vmatmul.mubr.f32.vlgmr.msra.gmra.mrb[0].mxu1 %v153_v24  ;;  %v6374_v24 = vpack.c.bf16 %v478_v22, %v475_v21 }
  0xce   :  { %4726 = vmatpush3.bf16.msra.mxu1 %v6320_v41  ;;  %4269 = vmatprep.mubr.f32.mxu1 %v154_v33 }
  0xcf   :  { %302 = vmatmul.mubr.f32.gmra.mrb[4].mxu0 %v154_v33  ;;  %4727 = vmatprep.subr.bf16.mxu1 %v7415_v40  ;;  %7496 = vst [vmem:[#allocation31_spill] sm:$0xff] %v6374_v24 }
  0xd0   :  { %4703 = vmatpush1.bf16.msra.mxu0 %v6314_v34  ;;  %307 = vmatprep.mubr.f32.mxu0 %v7417_v0 }
  0xd1   :  { %4705 = vmatprep.subr.bf16.mxu0 %v6317_v35  ;;  %4270 = vmatmul.mubr.f32.gmra.mrb[2].mxu1 %v155_v44 }
  0xd2   :  { %4729 = vmatpush3.bf16.msra.mxu1 %v6330_v51  ;;  %4272 = vmatprep.mubr.f32.mxu1 %v156_v54 }
  0xd3   :  { %308 = vmatmul.mubr.f32.gmra.mrb[6].mxu0 %v155_v44  ;;  %4730 = vmatprep.subr.bf16.mxu1 %v7415_v40 }
  0xd4   :  { %4707 = vmatpush1.bf16.msra.mxu0 %v6324_v45  ;;  %313 = vmatprep.mubr.f32.mxu0 %v7417_v0 }
  0xd5   :  { %4709 = vmatprep.subr.bf16.mxu0 %v6327_v46  ;;  %4273 = vmatmul.mubr.f32.gmra.mrb[4].mxu1 %v157_v1 }
  0xd6   :  { %4732 = vmatpush3.bf16.msra.mxu1 %v6341_v61  ;;  %4275 = vmatprep.mubr.f32.mxu1 %v158_v3 }
  0xd7   :  { %314 = vmatmul.mubr.f32.gmra.mrb[8].mxu0 %v156_v54  ;;  %4733 = vmatprep.subr.bf16.mxu1 %v7415_v40 }
  0xd8   :  { %4711 = vmatpush1.bf16.msra.mxu0 %v6335_v55  ;;  %319 = vmatprep.mubr.f32.mxu0 %v7417_v0 }
  0xd9   :  { %4713 = vmatprep.subr.bf16.mxu0 %v6338_v56  ;;  %4276 = vmatmul.mubr.f32.gmra.mrb[6].mxu1 %v159_v14 }
  0xda   :  { %4735 = vmatpush3.bf16.msra.mxu1 %v6352_v10  ;;  %4310 = vmatprep.mubr.msk.f32.mxu1 %vm6103_vm0, %v7417_v0 }
  0xdb   :  { %320 = vmatmul.mubr.f32.gmra.mrb[10].mxu0 %v157_v1  ;;  %4736 = vmatprep.subr.bf16.mxu1 %v7415_v40  ;;  %v216_v1 = vsub.s32 1, %v6435_v57 }
  0xdc   :  { %4715 = vmatpush1.bf16.msra.mxu0 %v6346_v2  ;;  %325 = vmatprep.mubr.f32.mxu0 %v7417_v0 }
  0xdd   :  { %4717 = vmatprep.subr.bf16.mxu0 %v6349_v4  ;;  %v6455_v12 = vrot.slane %v6447_v5, %v216_v1 }
  0xde   :  { %4738 = vmatpush3.bf16.msra.mxu1 %v6363_v20 }
  0xdf   :  { %326 = vmatmul.mubr.f32.gmra.mrb[12].mxu0 %v158_v3  ;;  %4739 = vmatprep.subr.bf16.mxu1 %v7415_v40 }
  0xe0   :  { %4719 = vmatpush1.bf16.msra.mxu0 %v6357_v13  ;;  %331 = vmatprep.mubr.f32.mxu0 %v7417_v0 }
  0xe1   :  { %4721 = vmatprep.subr.bf16.mxu0 %v6360_v15 }
  0xe2   :  { %4741 = vmatpush3.bf16.msra.mxu1 %v6374_v24 }
  0xe3   :  { %332 = vmatmul.mubr.f32.gmra.mrb[14].mxu0 %v159_v14  ;;  %4742 = vmatprep.subr.bf16.mxu1 %v7415_v40 }
  0xe4   :  { %4723 = vmatpush1.bf16.msra.mxu0 %v6370_v23  ;;  %557 = vmatprep.mubr.f32.mxu0 %v7417_v0 }
  0xe5   :  { %4749 = vmatprep.subr.bf16.mxu0 %v6297_v9 }
  0xe6   :  { %4744 = vmatpush3.bf16.msra.mxu1 %v6381_v29 }
  0xe7   :  { %558 = vmatmul.mubr.f32.vlgmr.msra.gmra.mrb[16].mxu0 %v7417_v0  ;;  %4745 = vmatprep.subr.bf16.mxu1 %v7415_v40 }
  0xe8   :  { %4751 = vmatpush1.bf16.msra.mxu0 %v6299_v17  ;;  %967 = vmatprep.mubr.f32.mxu0 %v7417_v0 }
  0xe9   :  { %4753 = vmatprep.subr.bf16.mxu0 %v6302_v18 }
  0xea   :  { %4747 = vmatpush3.bf16.msra.mxu1 %v6389_v32 }
  0xeb   :  { %4780 = vmatprep.subr.bf16.mxu1 %v7415_v40 }
  0xec   :  { %4755 = vmatpush1.bf16.msra.mxu0 %v6307_v25 }
  0xed   :  { %4757 = vmatprep.subr.bf16.mxu0 %v6310_v26  ;;  %4311 = vmatmul.mubr.f32.vlgmr.msra.gmra.mrb[8].mxu1 %v7417_v0 }
  0xee   :  { %4782 = vmatpush3.bf16.msra.mxu1 %v6320_v41  ;;  %4345 = vmatprep.mubr.msk.f32.mxu1 %vm6103_vm0, %v7417_v0 }
  0xef   :  { %4783 = vmatprep.subr.bf16.mxu1 %v7415_v40 }
  0xf0   :  { %4759 = vmatpush1.bf16.msra.mxu0 %v6314_v34 }
  0xf1   :  { %4761 = vmatprep.subr.bf16.mxu0 %v6317_v35 }
  0xf2   :  { %4785 = vmatpush3.bf16.msra.mxu1 %v6330_v51 }
  0xf3   :  { %4786 = vmatprep.subr.bf16.mxu1 %v7415_v40 }
  0xf4   :  { %4763 = vmatpush1.bf16.msra.mxu0 %v6324_v45 }
  0xf5   :  { %4765 = vmatprep.subr.bf16.mxu0 %v6327_v46 }
  0xf6   :  { %4788 = vmatpush3.bf16.msra.mxu1 %v6341_v61 }
  0xf7   :  { %4789 = vmatprep.subr.bf16.mxu1 %v7415_v40 }
  0xf8   :  { %4767 = vmatpush1.bf16.msra.mxu0 %v6335_v55 }
  0xf9   :  { %4769 = vmatprep.subr.bf16.mxu0 %v6338_v56 }
  0xfa   :  { %4791 = vmatpush3.bf16.msra.mxu1 %v6352_v10 }
  0xfb   :  { %4792 = vmatprep.subr.bf16.mxu1 %v7415_v40 }
  0xfc   :  { %4771 = vmatpush1.bf16.msra.mxu0 %v6346_v2 }
  0xfd   :  { %4773 = vmatprep.subr.bf16.mxu0 %v6349_v4 }
  0xfe   :  { %4794 = vmatpush3.bf16.msra.mxu1 %v6363_v20 }
  0xff   :  { %4795 = vmatprep.subr.bf16.mxu1 %v7415_v40 }
 0x100   :  { %4775 = vmatpush1.bf16.msra.mxu0 %v6357_v13 }
 0x101   :  { %4777 = vmatprep.subr.bf16.mxu0 %v6360_v15 }
 0x102   :  { %4797 = vmatpush3.bf16.msra.mxu1 %v6374_v24 }
 0x103   :  { %4798 = vmatprep.subr.bf16.mxu1 %v7415_v40 }
 0x104   :  { %4779 = vmatpush1.bf16.msra.mxu0 %v6370_v23 }
 0x105   :  { %4805 = vmatprep.subr.bf16.mxu0 %v6297_v9 }
 0x106   :  { %4800 = vmatpush3.bf16.msra.mxu1 %v6381_v29 }
 0x107   :  { %4801 = vmatprep.subr.bf16.mxu1 %v7415_v40 }
 0x10a   :  { %4803 = vmatpush3.bf16.msra.mxu1 %v6389_v32 }
 0x10b   :  { %4836 = vmatprep.subr.bf16.mxu1 %v7415_v40 }
 0x19a   :  { %v291_v33 = vpop.f32.mrb[0].mxu0 }
 0x19b   :  { %v293_v36 = vpop.f32.mrb[1].mxu0  ;;  %v6459_v19 = vadd.f32 %v291_v33, %v213_v11 }
 0x19c   :  { %v6462_v21 = vadd.f32 %v293_v36, %v6455_v12 }
 0x19d   :  { %7499 = vst [vmem:[#allocation34_spill] sm:$0xff] %v6459_v19 }
 0x19e   :  { %v297_v37 = vpop.f32.mrb[2].mxu0  ;;  %7500 = vst [vmem:[#allocation35_spill] sm:$0xff] %v6462_v21 }
 0x19f   :  { %v299_v38 = vpop.f32.mrb[3].mxu0  ;;  %v6464_v22 = vadd.f32 %v297_v37, %v213_v11 }
 0x1a0   :  { %v6427_v43 = vpop.f32.mrb[0].mxu1  ;;  %v6467_v27 = vadd.f32 %v299_v38, %v6455_v12 }
 0x1a1   :  { %v6429_v44 = vpop.f32.mrb[1].mxu1 }
 0x1a2   :  { %v303_v39 = vpop.f32.mrb[4].mxu0  ;;  %7501 = vst [vmem:[#allocation36_spill] sm:$0xff] %v6467_v27 }
 0x1a3   :  { %v305_v42 = vpop.f32.mrb[5].mxu0  ;;  %v6469_v28 = vadd.f32 %v303_v39, %v213_v11 }
 0x1a4   :  { %v6431_v50 = vpop.f32.mrb[2].mxu1  ;;  %v6472_v30 = vadd.f32 %v305_v42, %v6455_v12 }
 0x1a5   :  { %v6433_v52 = vpop.f32.mrb[3].mxu1 }
 0x1a6   :  { %v309_v47 = vpop.f32.mrb[6].mxu0  ;;  %7502 = vst [vmem:[#allocation37_spill] sm:$0xff] %v6472_v30 }
 0x1a7   :  { %v311_v48 = vpop.f32.mrb[7].mxu0  ;;  %v6474_v31 = vadd.f32 %v309_v47, %v213_v11 }
 0x1a8   :  { %v6437_v58 = vpop.f32.mrb[4].mxu1 }
 0x1a9   :  { %v6439_v59 = vpop.f32.mrb[5].mxu1 }
 0x1aa   :  { %v315_v53 = vpop.f32.mrb[8].mxu0 }
 0x1ab   :  { %v317_v54 = vpop.f32.mrb[9].mxu0  ;;  %v6476_v49 = vadd.f32 %v315_v53, %v213_v11 }
 0x1ac   :  { %v6445_v3 = vpop.f32.mrb[6].mxu1 }
 0x1ad   :  { %v6449_v6 = vpop.f32.mrb[7].mxu1 }
 0x1ae   :  { %v321_v60 = vpop.f32.mrb[10].mxu0 }
 0x1af   :  { %v6441_v62 = vpop.f32.mrb[11].mxu0  ;;  %v6478_v63 = vadd.f32 %v321_v60, %v213_v11 }
 0x1b1   :  { %7503 = vst [vmem:[#allocation38_spill] sm:$0xff] %v6478_v63 }
 0x1b2   :  { %v327_v7 = vpop.f32.mrb[12].mxu0 }
 0x1b3   :  { %v6451_v8 = vpop.f32.mrb[13].mxu0  ;;  %v6480_v33 = vadd.f32 %v327_v7, %v213_v11 }
 0x1b5   :  { %7504 = vst [vmem:[#allocation39_spill] sm:$0xff] %v6480_v33 }
 0x1b6   :  { %v333_v14 = vpop.f32.mrb[14].mxu0 }
 0x1b7   :  { %v6457_v16 = vpop.f32.mrb[15].mxu0  ;;  %v6482_v36 = vadd.f32 %v333_v14, %v213_v11  ;;  %v6492_v14 = vadd.f32 %v311_v48, %v6455_v12 }
 0x1b9   :  { %7505 = vst [vmem:[#allocation40_spill] sm:$0xff] %v6482_v36  ;;  %7506 = vst [vmem:[#allocation41_spill] sm:$0xff] %v6492_v14 }
 0x1ba   :  { %v559_v37 = vpop.f32.mrb[16].mxu0 }
 0x1bb   :  { %v635_v1 = vrot.slane %v559_v37, 1  ;;  %v636_v40 = vrot.slane %v559_v37, 2  ;;  %v637_v38 = vrot.slane %v559_v37, 3  ;;  %v638_v0 = vrot.slane %v559_v37, 4  ;;  %v6484_v39 = vpop.f32.mrb[17].mxu0 }
 0x1bc   :  { %v639_v9 = vrot.slane %v559_v37, 5  ;;  %v640_v42 = vrot.slane %v559_v37, 6  ;;  %v641_v32 = vrot.slane %v559_v37, 7  ;;  %v650_v47 = vadd.f32 %v559_v37, %v6459_v19 }
 0x1bd   :  { %v651_v53 = vadd.f32 %v635_v1, %v6464_v22  ;;  %v652_v60 = vadd.f32 %v636_v40, %v6469_v28  ;;  %v653_v7 = vadd.f32 %v637_v38, %v6474_v31  ;;  %v654_v11 = vadd.f32 %v638_v0, %v6476_v49 }
 0x1be   :  { %v655_v23 = vadd.f32 %v639_v9, %v6478_v63  ;;  %v656_v15 = vadd.f32 %v640_v42, %v6480_v33  ;;  %v3908_v29 = vmul.f32 -1.442695, %v650_v47  ;;  %v657_v13 = vadd.f32 %v641_v32, %v6482_v36 }
 0x1bf   :  { %v3909_v4 = vmul.f32 -1.442695, %v651_v53  ;;  %v3910_v37 = vmul.f32 -1.442695, %v652_v60  ;;  %v3911_v19 = vmul.f32 -1.442695, %v653_v7  ;;  %v6498_v1 = vadd.f32 %v317_v54, %v6455_v12 }
 0x1c0   :  { %5205 = vpow2.f32 %v3908_v29  ;;  %v3912_v40 = vmul.f32 -1.442695, %v654_v11  ;;  %v722_v0 = vadd.f32 %v6484_v39, %v6462_v21  ;;  %v3913_v48 = vmul.f32 -1.442695, %v655_v23  ;;  %v630_v60 = vpop.f32.mrb[8].mxu1 }
 0x1c1   :  { %7507 = vst [vmem:[#allocation42_spill] sm:$0xff] %v6498_v1  ;;  %5207 = vpow2.f32 %v3909_v4  ;;  %v707_v9 = vrot.slane %v6484_v39, 1  ;;  %v708_v38 = vrot.slane %v6484_v39, 2  ;;  %v3914_v42 = vmul.f32 -1.442695, %v656_v15  ;;  %v4312_v7 = vpop.f32.mrb[9].mxu1 }
 0x1c2   :  { %5209 = vpow2.f32 %v3910_v37  ;;  %v709_v32 = vrot.slane %v6484_v39, 3  ;;  %v710_v47 = vrot.slane %v6484_v39, 4  ;;  %v3915_v54 = vmul.f32 -1.442695, %v657_v13 }
 0x1c3   :  { %5211 = vpow2.f32 %v3911_v19  ;;  %v723_v29 = vadd.f32 %v707_v9, %v6467_v27  ;;  %v724_v53 = vadd.f32 %v708_v38, %v6472_v30  ;;  %v3916_v15 = vmul.f32 -1.442695, %v722_v0 }
 0x1c4   :  { %5213 = vpow2.f32 %v3912_v40  ;;  %v725_v4 = vadd.f32 %v709_v32, %v6492_v14  ;;  %v726_v23 = vadd.f32 %v710_v47, %v6498_v1  ;;  %v711_v19 = vrot.slane %v6484_v39, 5 }
 0x1c5   :  { %5215 = vpow2.f32 %v3913_v48  ;;  %v3917_v11 = vmul.f32 -1.442695, %v723_v29  ;;  %v3918_v37 = vmul.f32 -1.442695, %v724_v53  ;;  %v712_v9 = vrot.slane %v6484_v39, 6 }
 0x1c6   :  { %5217 = vpow2.f32 %v3914_v42  ;;  %v3919_v21 = vmul.f32 -1.442695, %v725_v4  ;;  %v3920_v13 = vmul.f32 -1.442695, %v726_v23  ;;  %v6514_v48 = vadd.f32 %v6441_v62, %v6455_v12 }
 0x1c7   :  { %5219 = vpow2.f32 %v3915_v54  ;;  %v713_v0 = vrot.slane %v6484_v39, 7  ;;  %v6519_v47 = vadd.f32 %v6451_v8, %v6455_v12  ;;  %v220_v54 = vsub.s32 2, %v6435_v57  ;;  %v6528_v8 = vld [vmem:[#allocation11] ss:$0 sm:$0xff] }
 0x1c8   :  { %5221 = vpow2.f32 %v3916_v15  ;;  %7508 = vst [vmem:[#allocation43_spill] sm:$0xff] %v6514_v48  ;;  %v6524_v4 = vadd.f32 %v6457_v16, %v6455_v12  ;;  %v727_v23 = vadd.f32 %v711_v19, %v6514_v48  ;;  %7511 = vst [vmem:[#allocation46_spill] sm:$0xff] %v6528_v8 }
 0x1c9   :  { %5223 = vpow2.f32 %v3917_v11  ;;  %7509 = vst [vmem:[#allocation44_spill] sm:$0xff] %v6519_v47  ;;  %v728_v7 = vadd.f32 %v712_v9, %v6519_v47  ;;  %v6532_v12 = vrot.slane %v6447_v5, %v220_v54 }
 0x1ca   :  { %v5206_v40 = vpop.eup %5205  ;;  %5225 = vpow2.f32 %v3918_v37  ;;  %7510 = vst [vmem:[#allocation45_spill] sm:$0xff] %v6524_v4  ;;  %v729_v11 = vadd.f32 %v713_v0, %v6524_v4 }
 0x1cb   :  { %v5208_v38 = vpop.eup %5207  ;;  %v682_v42 = vadd.f32 1.0, %v5206_v40  ;;  %5227 = vpow2.f32 %v3919_v21  ;;  %v3921_v40 = vmul.f32 -1.442695, %v727_v23  ;;  %v6537_v54 = vadd.f32 %v6427_v43, %v6532_v12 }
 0x1cc   :  { %v5210_v32 = vpop.eup %5209  ;;  %v683_v29 = vadd.f32 1.0, %v5208_v38  ;;  %5229 = vpow2.f32 %v3920_v13  ;;  %v784_v38 = vadd.f32 %v6528_v8, %v630_v60  ;;  %v6541_v60 = vadd.f32 %v6429_v44, %v6532_v12 }
 0x1cd   :  { %v5212_v53 = vpop.eup %5211  ;;  %v684_v62 = vadd.f32 1.0, %v5210_v32  ;;  %5231 = vrcp.f32 %v682_v42  ;;  %v3922_v32 = vmul.f32 -1.442695, %v728_v7  ;;  %7512 = vst [vmem:[#allocation47_spill] sm:$0xff] %v6537_v54  ;;  %v6549_v44 = vadd.f32 %v6433_v52, %v6532_v12 }
 0x1ce   :  { %v5214_v39 = vpop.eup %5213  ;;  %v685_v21 = vadd.f32 1.0, %v5212_v53  ;;  %5233 = vrcp.f32 %v683_v29  ;;  %v3923_v53 = vmul.f32 -1.442695, %v729_v11  ;;  %v786_v23 = vrot.slane %v784_v38, 1  ;;  %7513 = vst [vmem:[#allocation48_spill] sm:$0xff] %v6541_v60 }
 0x1cf   :  { %v5216_v15 = vpop.eup %5215  ;;  %v686_v57 = vadd.f32 1.0, %v5214_v39  ;;  %5235 = vrcp.f32 %v684_v62  ;;  %v788_v43 = vrot.slane %v784_v38, 3  ;;  %7515 = vst [vmem:[#allocation50_spill] sm:$0xff] %v6549_v44  ;;  %v6555_v52 = vadd.f32 %v6439_v59, %v6532_v12 }
 0x1d0   :  { %v5218_v37 = vpop.eup %5217  ;;  %v687_v16 = vadd.f32 1.0, %v5216_v15  ;;  %5237 = vrcp.f32 %v685_v21  ;;  %v787_v15 = vrot.slane %v784_v38, 2 }
 0x1d1   :  { %v5220_v13 = vpop.eup %5219  ;;  %v688_v19 = vadd.f32 1.0, %v5218_v37  ;;  %5239 = vrcp.f32 %v686_v57  ;;  %v6545_v37 = vadd.f32 %v6431_v50, %v6532_v12  ;;  %7516 = vst [vmem:[#allocation51_spill] sm:$0xff] %v6555_v52 }
 0x1d2   :  { %v5222_v9 = vpop.eup %5221  ;;  %v689_v42 = vadd.f32 1.0, %v5220_v13  ;;  %5241 = vrcp.f32 %v687_v16 }
 0x1d3   :  { %v5224_v29 = vpop.eup %5223  ;;  %5243 = vrcp.f32 %v688_v19  ;;  %v754_v62 = vadd.f32 1.0, %v5222_v9  ;;  %7514 = vst [vmem:[#allocation49_spill] sm:$0xff] %v6545_v37  ;;  %v789_v19 = vrot.slane %v784_v38, 4 }
 0x1d4   :  { %v5226_v0 = vpop.eup %5225  ;;  %5245 = vrcp.f32 %v689_v42  ;;  %v755_v39 = vadd.f32 1.0, %v5224_v29 }
 0x1d5   :  { %v5228_v5 = vpop.eup %5227  ;;  %5247 = vpow2.f32 %v3921_v40  ;;  %v756_v7 = vadd.f32 1.0, %v5226_v0  ;;  %v791_v0 = vrot.slane %v784_v38, 6 }
 0x1d6   :  { %v5230_v21 = vpop.eup %5229  ;;  %5249 = vpow2.f32 %v3922_v32  ;;  %v757_v11 = vadd.f32 1.0, %v5228_v5  ;;  %v790_v32 = vrot.slane %v784_v38, 5 }
 0x1d7   :  { %v5232_v57 = vpop.eup %5231  ;;  %5251 = vpow2.f32 %v3923_v53  ;;  %v758_v13 = vadd.f32 1.0, %v5230_v21  ;;  %v792_v21 = vrot.slane %v784_v38, 7 }
 0x1d8   :  { %v5234_v16 = vpop.eup %5233  ;;  %5253 = vrcp.f32 %v754_v62  ;;  %v801_v40 = vmul.f32 %v5232_v57, %v784_v38 }
 0x1d9   :  { %v5236_v9 = vpop.eup %5235  ;;  %5255 = vrcp.f32 %v755_v39  ;;  %v802_v42 = vmul.f32 %v5234_v16, %v786_v23 }
 0x1da   :  { %v5238_v29 = vpop.eup %5237  ;;  %5257 = vrcp.f32 %v756_v7  ;;  %v803_v53 = vmul.f32 %v5236_v9, %v787_v15  ;;  %v809_v50 = vadd.f32 %v801_v40, %v6541_v60 }
 0x1db   :  { %v5240_v5 = vpop.eup %5239  ;;  %5259 = vrcp.f32 %v757_v11  ;;  %v804_v62 = vmul.f32 %v5238_v29, %v788_v43  ;;  %v810_v57 = vadd.f32 %v802_v42, %v6537_v54  ;;  %v6570_v29 = vadd.f32 %v6445_v3, %v6532_v12 }
 0x1dc   :  { %v5242_v8 = vpop.eup %5241  ;;  %5261 = vrcp.f32 %v758_v13  ;;  %v805_v39 = vmul.f32 %v5240_v5, %v789_v19  ;;  %v811_v23 = vadd.f32 %v803_v53, %v6549_v44  ;;  %v6562_v13 = vadd.f32 %v6437_v58, %v6532_v12 }
 0x1dd   :  { %v5244_v7 = vpop.eup %5243  ;;  %v806_v15 = vmul.f32 %v5242_v8, %v790_v32  ;;  %v812_v16 = vadd.f32 %v804_v62, %v6545_v37  ;;  %5263 = vtanh.f32 %v809_v50  ;;  %v6566_v8 = vadd.f32 %v6449_v6, %v6532_v12  ;;  %7519 = vst [vmem:[#allocation54_spill] sm:$0xff] %v6570_v29 }
 0x1de   :  { %v5246_v40 = vpop.eup %5245  ;;  %v807_v11 = vmul.f32 %v5244_v7, %v791_v0  ;;  %v813_v38 = vadd.f32 %v805_v39, %v6555_v52  ;;  %5265 = vtanh.f32 %v810_v57  ;;  %7517 = vst [vmem:[#allocation52_spill] sm:$0xff] %v6562_v13  ;;  %v7520_v57 = vmov 0.0  }
 0x1df   :  { %v5248_v43 = vpop.eup %5247  ;;  %v808_v59 = vmul.f32 %v5246_v40, %v792_v21  ;;  %5267 = vtanh.f32 %v811_v23  ;;  %7518 = vst [vmem:[#allocation53_spill] sm:$0xff] %v6566_v8  ;;  %v814_v53 = vadd.f32 %v806_v15, %v6562_v13  ;;  %v842_v39 = vrot.slane %v7520_v57, 1 }
 0x1e0   :  { %v5250_v19 = vpop.eup %5249  ;;  %v759_v9 = vadd.f32 1.0, %v5248_v43  ;;  %5269 = vtanh.f32 %v812_v16  ;;  %v815_v0 = vadd.f32 %v807_v11, %v6566_v8  ;;  %v843_v23 = vrot.slane %v7520_v57, 2 }
 0x1e1   :  { %v5252_v42 = vpop.eup %5251  ;;  %v760_v32 = vadd.f32 1.0, %v5250_v19  ;;  %5271 = vtanh.f32 %v813_v38  ;;  %v816_v6 = vadd.f32 %v808_v59, %v6570_v29  ;;  %v844_v16 = vrot.slane %v7520_v57, 3 }
 0x1e2   :  { %v5254_v58 = vpop.eup %5253  ;;  %5273 = vrcp.f32 %v759_v9  ;;  %v761_v50 = vadd.f32 1.0, %v5252_v42  ;;  %v845_v40 = vrot.slane %v7520_v57, 4  ;;  %v846_v59 = vrot.slane %v7520_v57, 5 }
 0x1e3   :  { %v5256_v5 = vpop.eup %5255  ;;  %5275 = vrcp.f32 %v760_v32  ;;  %v825_v12 = vsub.f32 1.0, %v5254_v58  ;;  %v857_v19 = vmul.f32 0.0, %v5254_v58 }
 0x1e4   :  { %v5258_v21 = vpop.eup %5257  ;;  %5277 = vrcp.f32 %v761_v50  ;;  %v826_v15 = vsub.f32 1.0, %v5256_v5 }
 0x1e5   :  { %v5260_v62 = vpop.eup %5259  ;;  %5279 = vtanh.f32 %v814_v53  ;;  %v827_v38 = vsub.f32 1.0, %v5258_v21  ;;  %v6580_v53 = vld [vmem:[#allocation2] sm:$0xff]  ;;  %v859_v13 = vmul.f32 %v5258_v21, %v843_v23 }
 0x1e6   :  { %v5262_v3 = vpop.eup %5261  ;;  %5281 = vtanh.f32 %v815_v0  ;;  %v828_v42 = vsub.f32 1.0, %v5260_v62  ;;  %v847_v50 = vrot.slane %v6580_v53, 6  ;;  %v858_v0 = vmul.f32 %v5256_v5, %v842_v39 }
 0x1e7   :  { %v5264_v7 = vpop.eup %5263  ;;  %5283 = vtanh.f32 %v816_v6  ;;  %v829_v29 = vsub.f32 1.0, %v5262_v3  ;;  %v860_v57 = vmul.f32 %v5260_v62, %v844_v16 }
 0x1e8   :  { %v5266_v11 = vpop.eup %5265  ;;  %v833_v43 = vmul.f32 %v5264_v7, %v825_v12  ;;  %v848_v12 = vrot.slane %v6580_v53, 7 }
 0x1e9   :  { %v5268_v9 = vpop.eup %5267  ;;  %v834_v32 = vmul.f32 %v5266_v11, %v826_v15  ;;  %v861_v11 = vmul.f32 %v5262_v3, %v845_v40 }
 0x1ea   :  { %v5270_v6 = vpop.eup %5269  ;;  %v835_v8 = vmul.f32 %v5268_v9, %v827_v38  ;;  %v6583_v52 = vadd.f32 %v857_v19, %v833_v43 }
 0x1eb   :  { %v5272_v37 = vpop.eup %5271  ;;  %v836_v44 = vmul.f32 %v5270_v6, %v828_v42  ;;  %v6586_v58 = vadd.f32 %v858_v0, %v834_v32 }
 0x1ec   :  { %v5274_v7 = vpop.eup %5273  ;;  %v837_v15 = vmul.f32 %v5272_v37, %v829_v29  ;;  %v6588_v60 = vadd.f32 %v859_v13, %v835_v8 }
 0x1ed   :  { %v5276_v5 = vpop.eup %5275  ;;  %v6590_v39 = vadd.f32 %v860_v57, %v836_v44  ;;  %v7452_v21 = vrot.slane %v6586_v58, 7  ;;  %v830_v38 = vsub.f32 1.0, %v5274_v7  ;;  %v862_v29 = vmul.f32 %v5274_v7, %v846_v59 }
 0x1ee   :  { %v5278_v23 = vpop.eup %5277  ;;  %v6593_v43 = vadd.f32 %v861_v11, %v837_v15  ;;  %v884_v62 = vrot.slane %v6588_v60, 6  ;;  %v831_v37 = vsub.f32 1.0, %v5276_v5  ;;  %v863_v0 = vmul.f32 %v5276_v5, %v847_v50 }
 0x1ef   :  { %v5280_v16 = vpop.eup %5279  ;;  %v883_v44 = vsel %vm882_vm1, %v7452_v21, %v6583_v52  ;;  %v887_v13 = vrot.slane %v6590_v39, 5  ;;  %v832_v3 = vsub.f32 1.0, %v5278_v23  ;;  %v864_v57 = vmul.f32 %v5278_v23, %v848_v12 }
 0x1f0   :  { %v5282_v8 = vpop.eup %5281  ;;  %v838_v40 = vmul.f32 %v5280_v16, %v830_v38  ;;  %v886_v19 = vsel %vm885_vm2, %v884_v62, %v883_v44  ;;  %v890_v9 = vrot.slane %v6593_v43, 4  ;;  %v7521_v16 = vmov 0.0|0.0   ;;  %v7524_v44 = vld [vmem:[#allocation32_spill] sm:$0xff] }
 0x1f1   :  { %v5284_v42 = vpop.eup %5283  ;;  %v839_v32 = vmul.f32 %v5282_v8, %v831_v37  ;;  %v889_v6 = vsel %vm888_vm3, %v887_v13, %v886_v19  ;;  %v7522_v37 = vld [vmem:[#allocation27_spill] sm:$0xff]  ;;  %v7525_v13 = vld [vmem:[#allocation29_spill] sm:$0xff]  ;;  %v7526_v8 = vld [vmem:[#allocation30_spill] sm:$0xff] }
 0x1f2   :  { %v840_v59 = vmul.f32 %v5284_v42, %v832_v3  ;;  %v6604_v7 = vadd.f32 %v862_v29, %v838_v40  ;;  %v892_v15 = vsel %vm891_vm4, %v890_v9, %v889_v6  ;;  %v7523_v29 = vld [vmem:[#allocation28_spill] sm:$0xff]  ;;  %v7527_v3 = vld [vmem:[#allocation33_spill] sm:$0xff] }
 0x1f3   :  { %v6607_v11 = vadd.f32 %v863_v0, %v839_v32  ;;  %v7528_v40 = vld [vmem:[#allocation25_spill] sm:$0xff] }
 0x1f4   :  { %v6609_v21 = vadd.f32 %v864_v57, %v840_v59  ;;  %v893_v38 = vrot.slane %v6604_v7, 3 }
 0x1f5   :  { %v896_v62 = vrot.slane %v6607_v11, 2 }
 0x1f6   :  { %v895_v50 = vsel %vm894_vm5, %v893_v38, %v892_v15  ;;  %v899_v5 = vrot.slane %v6609_v21, 1 }
 0x1f7   :  { %v898_v12 = vsel %vm897_vm6, %v896_v62, %v895_v50 }
 0x1f8   :  { %v901_v23 = vsel %vm900_vm7, %v899_v5, %v898_v12  ;;  %v7529_v5 = vld [vmem:[#allocation34_spill] sm:$0xff] }
 0x1f9   :  { %968 = vmatmul.mubr.f32.vlgmr.msra.gmra.mrb[18].mxu0 %v901_v23  ;;  %4346 = vmatmul.mubr.f32.vlgmr.msra.gmra.mrb[10].mxu1 %v901_v23 }
 0x1fa   :  { %4807 = vmatpush1.bf16.msra.mxu0 %v6299_v17  ;;  %4838 = vmatpush3.bf16.msra.mxu1 %v6320_v41 }
 0x1fb   :  { %4809 = vmatprep.subr.bf16.mxu0 %v6302_v18  ;;  %4839 = vmatprep.subr.bf16.mxu1 %v7521_v16 }
 0x1fc   :  { %1363 = vmatprep.mubr.f32.mxu0 %v6580_v53  ;;  %4380 = vmatprep.mubr.msk.f32.mxu1 %vm6103_vm0, %v6580_v53 }
 0x1fe   :  { %4811 = vmatpush1.bf16.msra.mxu0 %v6307_v25  ;;  %4841 = vmatpush3.bf16.msra.mxu1 %v6330_v51 }
 0x1ff   :  { %4813 = vmatprep.subr.bf16.mxu0 %v6310_v26  ;;  %4842 = vmatprep.subr.bf16.mxu1 %v7521_v16 }
 0x202   :  { %4815 = vmatpush1.bf16.msra.mxu0 %v6314_v34  ;;  %4844 = vmatpush3.bf16.msra.mxu1 %v6341_v61 }
 0x203   :  { %4817 = vmatprep.subr.bf16.mxu0 %v6317_v35  ;;  %4845 = vmatprep.subr.bf16.mxu1 %v7521_v16 }
 0x206   :  { %4819 = vmatpush1.bf16.msra.mxu0 %v6324_v45  ;;  %4847 = vmatpush3.bf16.msra.mxu1 %v6352_v10 }
 0x207   :  { %4821 = vmatprep.subr.bf16.mxu0 %v6327_v46  ;;  %4848 = vmatprep.subr.bf16.mxu1 %v7521_v16 }
 0x20a   :  { %4823 = vmatpush1.bf16.msra.mxu0 %v6335_v55  ;;  %4850 = vmatpush3.bf16.msra.mxu1 %v6363_v20 }
 0x20b   :  { %4825 = vmatprep.subr.bf16.mxu0 %v6338_v56  ;;  %4851 = vmatprep.subr.bf16.mxu1 %v7521_v16 }
 0x20e   :  { %4827 = vmatpush1.bf16.msra.mxu0 %v6346_v2  ;;  %4853 = vmatpush3.bf16.msra.mxu1 %v6374_v24 }
 0x20f   :  { %4829 = vmatprep.subr.bf16.mxu0 %v7522_v37  ;;  %4854 = vmatprep.subr.bf16.mxu1 %v7521_v16 }
 0x212   :  { %4831 = vmatpush1.bf16.msra.mxu0 %v7523_v29  ;;  %4856 = vmatpush3.bf16.msra.mxu1 %v7524_v44 }
 0x213   :  { %4833 = vmatprep.subr.bf16.mxu0 %v7525_v13  ;;  %4857 = vmatprep.subr.bf16.mxu1 %v7521_v16 }
 0x216   :  { %4835 = vmatpush1.bf16.msra.mxu0 %v7526_v8  ;;  %4859 = vmatpush3.bf16.msra.mxu1 %v7527_v3 }
 0x217   :  { %4861 = vmatprep.subr.bf16.mxu0 %v7528_v40  ;;  %4892 = vmatprep.subr.bf16.mxu1 %v7521_v16 }
 0x2cc   :  { %v969_v19 = vpop.f32.mrb[18].mxu0  ;;  %v6652_v9 = vpop.f32.mrb[10].mxu1 }
 0x2cd   :  { %v1045_v42 = vrot.slane %v969_v19, 7  ;;  %v1046_v32 = vrot.slane %v969_v19, 1  ;;  %v1047_v0 = vrot.slane %v969_v19, 2  ;;  %v1048_v6 = vrot.slane %v969_v19, 3  ;;  %v6654_v59 = vpop.f32.mrb[19].mxu0  ;;  %v4347_v57 = vpop.f32.mrb[11].mxu1 }
 0x2ce   :  { %v1049_v15 = vrot.slane %v969_v19, 4  ;;  %v1050_v38 = vrot.slane %v969_v19, 5  ;;  %v1051_v62 = vrot.slane %v969_v19, 6  ;;  %v1061_v50 = vadd.f32 %v969_v19, %v6464_v22 }
 0x2cf   :  { %v1060_v12 = vadd.f32 %v1045_v42, %v7529_v5  ;;  %v1062_v23 = vadd.f32 %v1046_v32, %v6469_v28  ;;  %v1063_v40 = vadd.f32 %v1047_v0, %v6474_v31  ;;  %v1064_v3 = vadd.f32 %v1048_v6, %v6476_v49 }
 0x2d0   :  { %v1065_v8 = vadd.f32 %v1049_v15, %v6478_v63  ;;  %v1066_v13 = vadd.f32 %v1050_v38, %v6480_v33  ;;  %v3926_v44 = vmul.f32 -1.442695, %v1061_v50  ;;  %v1067_v57 = vadd.f32 %v1051_v62, %v6482_v36  ;;  %v7530_v62 = vld [vmem:[#allocation35_spill] sm:$0xff] }
 0x2d1   :  { %v3925_v29 = vmul.f32 -1.442695, %v1060_v12  ;;  %v3927_v37 = vmul.f32 -1.442695, %v1062_v23  ;;  %v3928_v24 = vmul.f32 -1.442695, %v1063_v40 }
 0x2d2   :  { %5285 = vpow2.f32 %v3926_v44  ;;  %v3929_v19 = vmul.f32 -1.442695, %v1064_v3  ;;  %v3930_v42 = vmul.f32 -1.442695, %v1065_v8  ;;  %v3931_v32 = vmul.f32 -1.442695, %v1066_v13 }
 0x2d3   :  { %5287 = vpow2.f32 %v3925_v29  ;;  %v1117_v0 = vrot.slane %v6654_v59, 7  ;;  %v3932_v6 = vmul.f32 -1.442695, %v1067_v57  ;;  %v1118_v15 = vrot.slane %v6654_v59, 1 }
 0x2d4   :  { %5289 = vpow2.f32 %v3927_v37  ;;  %v1119_v38 = vrot.slane %v6654_v59, 2  ;;  %v1133_v44 = vadd.f32 %v6654_v59, %v6467_v27  ;;  %v1120_v40 = vrot.slane %v6654_v59, 3 }
 0x2d5   :  { %5291 = vpow2.f32 %v3928_v24  ;;  %v1132_v50 = vadd.f32 %v1117_v0, %v7530_v62  ;;  %v1134_v29 = vadd.f32 %v1118_v15, %v6472_v30  ;;  %v1121_v23 = vrot.slane %v6654_v59, 4  ;;  %v7534_v30 = vld [vmem:[#allocation49_spill] sm:$0xff] }
 0x2d6   :  { %5293 = vpow2.f32 %v3929_v19  ;;  %v1135_v37 = vadd.f32 %v1119_v38, %v6492_v14  ;;  %v3934_v24 = vmul.f32 -1.442695, %v1133_v44 }
 0x2d7   :  { %5295 = vpow2.f32 %v3930_v42  ;;  %v3933_v13 = vmul.f32 -1.442695, %v1132_v50  ;;  %v3935_v8 = vmul.f32 -1.442695, %v1134_v29  ;;  %v1122_v42 = vrot.slane %v6654_v59, 5 }
 0x2d8   :  { %5297 = vpow2.f32 %v3931_v32  ;;  %v3936_v3 = vmul.f32 -1.442695, %v1135_v37  ;;  %v1136_v50 = vadd.f32 %v1120_v40, %v6498_v1  ;;  %v1137_v37 = vadd.f32 %v1121_v23, %v6514_v48  ;;  %v7531_v23 = vld [vmem:[#allocation46_spill] sm:$0xff] }
 0x2d9   :  { %5299 = vpow2.f32 %v3932_v6  ;;  %v1123_v6 = vrot.slane %v6654_v59, 6 }
 0x2da   :  { %5301 = vpow2.f32 %v3933_v13 }
 0x2db   :  { %5303 = vpow2.f32 %v3934_v24  ;;  %v1139_v59 = vadd.f32 %v1123_v6, %v6524_v4 }
 0x2dc   :  { %v5286_v12 = vpop.eup %5285  ;;  %5305 = vpow2.f32 %v3935_v8  ;;  %v1138_v8 = vadd.f32 %v1122_v42, %v6519_v47 }
 0x2dd   :  { %v5288_v57 = vpop.eup %5287  ;;  %v1093_v19 = vadd.f32 1.0, %v5286_v12  ;;  %5307 = vpow2.f32 %v3936_v3  ;;  %v3940_v42 = vmul.f32 -1.442695, %v1139_v59 }
 0x2de   :  { %v5290_v32 = vpop.eup %5289  ;;  %v1092_v0 = vadd.f32 1.0, %v5288_v57 }
 0x2df   :  { %v5292_v15 = vpop.eup %5291  ;;  %v1094_v38 = vadd.f32 1.0, %v5290_v32  ;;  %5309 = vrcp.f32 %v1093_v19  ;;  %v3937_v19 = vmul.f32 -1.442695, %v1136_v50 }
 0x2e0   :  { %v5294_v44 = vpop.eup %5293  ;;  %v1095_v29 = vadd.f32 1.0, %v5292_v15  ;;  %5311 = vrcp.f32 %v1092_v0  ;;  %v3938_v15 = vmul.f32 -1.442695, %v1137_v37 }
 0x2e1   :  { %v5296_v13 = vpop.eup %5295  ;;  %v1096_v24 = vadd.f32 1.0, %v5294_v44  ;;  %5313 = vrcp.f32 %v1094_v38  ;;  %v1188_v44 = vadd.f32 %v7531_v23, %v6652_v9  ;;  %v3939_v38 = vmul.f32 -1.442695, %v1138_v8 }
 0x2e2   :  { %v5298_v12 = vpop.eup %5297  ;;  %v1097_v57 = vadd.f32 1.0, %v5296_v13  ;;  %5315 = vrcp.f32 %v1095_v29 }
 0x2e3   :  { %v5300_v3 = vpop.eup %5299  ;;  %v1098_v32 = vadd.f32 1.0, %v5298_v12  ;;  %5317 = vrcp.f32 %v1096_v24  ;;  %v1190_v50 = vrot.slane %v1188_v44, 7  ;;  %v1192_v8 = vrot.slane %v1188_v44, 2 }
 0x2e4   :  { %v1099_v40 = vadd.f32 1.0, %v5300_v3  ;;  %5319 = vrcp.f32 %v1097_v57  ;;  %v5302_v0 = vpop.eup %5301  ;;  %v1191_v3 = vrot.slane %v1188_v44, 1 }
 0x2e5   :  { %5321 = vrcp.f32 %v1098_v32  ;;  %v5304_v48 = vpop.eup %5303  ;;  %v1164_v29 = vadd.f32 1.0, %v5302_v0 }
 0x2e6   :  { %5323 = vrcp.f32 %v1099_v40  ;;  %v5306_v13 = vpop.eup %5305  ;;  %v1165_v12 = vadd.f32 1.0, %v5304_v48  ;;  %v1193_v40 = vrot.slane %v1188_v44, 3 }
 0x2e7   :  { %5325 = vpow2.f32 %v3937_v19  ;;  %v5308_v6 = vpop.eup %5307  ;;  %v1166_v57 = vadd.f32 1.0, %v5306_v13 }
 0x2e8   :  { %5327 = vpow2.f32 %v3938_v15  ;;  %v1167_v4 = vadd.f32 1.0, %v5308_v6  ;;  %v7532_v15 = vld [vmem:[#allocation48_spill] sm:$0xff] }
 0x2e9   :  { %v5310_v24 = vpop.eup %5309  ;;  %5329 = vpow2.f32 %v3939_v38  ;;  %v1194_v38 = vrot.slane %v1188_v44, 4 }
 0x2ea   :  { %v5312_v37 = vpop.eup %5311  ;;  %v1206_v32 = vmul.f32 %v5310_v24, %v1188_v44  ;;  %5331 = vpow2.f32 %v3940_v42  ;;  %v1195_v42 = vrot.slane %v1188_v44, 5  ;;  %v7533_v24 = vld [vmem:[#allocation50_spill] sm:$0xff] }
 0x2eb   :  { %v5314_v9 = vpop.eup %5313  ;;  %v1205_v23 = vmul.f32 %v5312_v37, %v1190_v50  ;;  %5333 = vrcp.f32 %v1164_v29  ;;  %v1196_v29 = vrot.slane %v1188_v44, 6 }
 0x2ec   :  { %v5316_v59 = vpop.eup %5315  ;;  %v1207_v19 = vmul.f32 %v5314_v9, %v1191_v3  ;;  %v1214_v0 = vadd.f32 %v1206_v32, %v6537_v54  ;;  %5335 = vrcp.f32 %v1165_v12  ;;  %v7535_v9 = vld [vmem:[#allocation51_spill] sm:$0xff] }
 0x2ed   :  { %v5318_v48 = vpop.eup %5317  ;;  %v1213_v47 = vadd.f32 %v1205_v23, %v7532_v15  ;;  %5337 = vrcp.f32 %v1166_v57  ;;  %v1208_v13 = vmul.f32 %v5316_v59, %v1192_v8 }
 0x2ee   :  { %v5320_v1 = vpop.eup %5319  ;;  %5339 = vrcp.f32 %v1167_v4  ;;  %v1209_v6 = vmul.f32 %v5318_v48, %v1193_v40  ;;  %v1215_v14 = vadd.f32 %v1207_v19, %v7533_v24 }
 0x2ef   :  { %v5322_v50 = vpop.eup %5321  ;;  %v1210_v37 = vmul.f32 %v5320_v1, %v1194_v38  ;;  %v1216_v3 = vadd.f32 %v1208_v13, %v7534_v30  ;;  %5341 = vtanh.f32 %v1213_v47  ;;  %v1245_v1 = vrot.slane %v6583_v52, 7  ;;  %v7536_v47 = vld [vmem:[#allocation52_spill] sm:$0xff] }
 0x2f0   :  { %v5324_v32 = vpop.eup %5323  ;;  %v1211_v12 = vmul.f32 %v5322_v50, %v1195_v42  ;;  %v1217_v54 = vadd.f32 %v1209_v6, %v7535_v9  ;;  %5343 = vtanh.f32 %v1214_v0  ;;  %v7537_v0 = vld [vmem:[#allocation53_spill] sm:$0xff]  ;;  %v7538_v50 = vld [vmem:[#allocation54_spill] sm:$0xff] }
 0x2f1   :  { %v5326_v57 = vpop.eup %5325  ;;  %v1212_v23 = vmul.f32 %v5324_v32, %v1196_v29  ;;  %5345 = vtanh.f32 %v1215_v14  ;;  %v1218_v48 = vadd.f32 %v1210_v37, %v7536_v47  ;;  %v1246_v14 = vrot.slane %v6588_v60, 7 }
 0x2f2   :  { %v5328_v8 = vpop.eup %5327  ;;  %v1168_v4 = vadd.f32 1.0, %v5326_v57  ;;  %5347 = vtanh.f32 %v1216_v3  ;;  %v1219_v42 = vadd.f32 %v1211_v12, %v7537_v0  ;;  %v1247_v32 = vrot.slane %v6590_v39, 7 }
 0x2f3   :  { %v5330_v59 = vpop.eup %5329  ;;  %v1169_v40 = vadd.f32 1.0, %v5328_v8  ;;  %5349 = vtanh.f32 %v1217_v54  ;;  %v1220_v29 = vadd.f32 %v1212_v23, %v7538_v50 }
 0x2f4   :  { %v5332_v19 = vpop.eup %5331  ;;  %v1170_v44 = vadd.f32 1.0, %v5330_v59  ;;  %5351 = vrcp.f32 %v1168_v4 }
 0x2f5   :  { %v5334_v38 = vpop.eup %5333  ;;  %5353 = vrcp.f32 %v1169_v40  ;;  %v1171_v13 = vadd.f32 1.0, %v5332_v19 }
 0x2f6   :  { %v5336_v6 = vpop.eup %5335  ;;  %5355 = vrcp.f32 %v1170_v44  ;;  %v1260_v3 = vmul.f32 %v5334_v38, %v1245_v1  ;;  %v1229_v57 = vsub.f32 1.0, %v5334_v38  ;;  %v7539_v1 = vrot.slane %v6586_v58, 7 }
 0x2f7   :  { %v5338_v54 = vpop.eup %5337  ;;  %5357 = vrcp.f32 %v1171_v13  ;;  %v1230_v4 = vsub.f32 1.0, %v5336_v6  ;;  %v1248_v38 = vrot.slane %v6593_v43, 7  ;;  %v1250_v58 = vrot.slane %v6607_v11, 7 }
 0x2f8   :  { %v5340_v52 = vpop.eup %5339  ;;  %5359 = vtanh.f32 %v1218_v48  ;;  %v1262_v37 = vmul.f32 %v5338_v54, %v1246_v14  ;;  %v1231_v40 = vsub.f32 1.0, %v5338_v54  ;;  %v1261_v50 = vmul.f32 %v5336_v6, %v7539_v1 }
 0x2f9   :  { %v5342_v8 = vpop.eup %5341  ;;  %5361 = vtanh.f32 %v1219_v42  ;;  %v1263_v59 = vmul.f32 %v5340_v52, %v1247_v32  ;;  %v1232_v44 = vsub.f32 1.0, %v5340_v52  ;;  %v1251_v43 = vrot.slane %v6609_v21, 7 }
 0x2fa   :  { %v5344_v12 = vpop.eup %5343  ;;  %5363 = vtanh.f32 %v1220_v29  ;;  %v1237_v60 = vmul.f32 %v5342_v8, %v1229_v57  ;;  %v1249_v29 = vrot.slane %v6604_v7, 7 }
 0x2fb   :  { %v5346_v19 = vpop.eup %5345  ;;  %v1238_v23 = vmul.f32 %v5344_v12, %v1230_v4 }
 0x2fc   :  { %v5348_v39 = vpop.eup %5347  ;;  %v1239_v13 = vmul.f32 %v5346_v19, %v1231_v40  ;;  %v6695_v0 = vadd.f32 %v1260_v3, %v1237_v60 }
 0x2fd   :  { %v5350_v48 = vpop.eup %5349  ;;  %v1240_v42 = vmul.f32 %v5348_v39, %v1232_v44  ;;  %v6698_v14 = vadd.f32 %v1261_v50, %v1238_v23 }
 0x2fe   :  { %v5352_v32 = vpop.eup %5351  ;;  %v6701_v54 = vadd.f32 %v1262_v37, %v1239_v13  ;;  %v1284_v52 = vrot.slane %v6695_v0, 1 }
 0x2ff   :  { %v5354_v57 = vpop.eup %5353  ;;  %v1233_v6 = vsub.f32 1.0, %v5352_v32  ;;  %v1264_v8 = vmul.f32 %v5352_v32, %v1248_v38  ;;  %v6705_v3 = vadd.f32 %v1263_v59, %v1240_v42 }
 0x300   :  { %v5356_v4 = vpop.eup %5355  ;;  %v1265_v12 = vmul.f32 %v5354_v57, %v1249_v29  ;;  %v1285_v50 = vsel %vm882_vm1, %v6698_v14, %v1284_v52  ;;  %v7469_v7 = vrot.slane %v6701_v54, 7  ;;  %v1234_v40 = vsub.f32 1.0, %v5354_v57 }
 0x301   :  { %v5358_v37 = vpop.eup %5357  ;;  %v1241_v60 = vmul.f32 %v5350_v48, %v1233_v6  ;;  %v1266_v19 = vmul.f32 %v5356_v4, %v1250_v58  ;;  %v1288_v44 = vrot.slane %v6705_v3, 6  ;;  %v1235_v23 = vsub.f32 1.0, %v5356_v4 }
 0x302   :  { %v5360_v11 = vpop.eup %5359  ;;  %v1267_v1 = vmul.f32 %v5358_v37, %v1251_v43  ;;  %v1287_v59 = vsel %vm885_vm2, %v7469_v7, %v1285_v50  ;;  %v1236_v39 = vsub.f32 1.0, %v5358_v37 }
 0x303   :  { %v5362_v21 = vpop.eup %5361  ;;  %v1242_v13 = vmul.f32 %v5360_v11, %v1234_v40  ;;  %v6715_v38 = vadd.f32 %v1264_v8, %v1241_v60  ;;  %v1289_v42 = vsel %vm888_vm3, %v1288_v44, %v1287_v59  ;;  %v7541_v60 = vld [vmem:[#allocation27_spill] sm:$0xff]  ;;  %v7543_v44 = vld [vmem:[#allocation32_spill] sm:$0xff]  ;;  %v7544_v11 = vld [vmem:[#allocation29_spill] sm:$0xff] }
 0x304   :  { %v5364_v32 = vpop.eup %5363  ;;  %v1243_v29 = vmul.f32 %v5362_v21, %v1235_v23  ;;  %v7545_v23 = vld [vmem:[#allocation30_spill] sm:$0xff]  ;;  %v7547_v59 = vld [vmem:[#allocation25_spill] sm:$0xff] }
 0x305   :  { %v1244_v48 = vmul.f32 %v5364_v32, %v1236_v39  ;;  %v6718_v52 = vadd.f32 %v1265_v12, %v1242_v13  ;;  %v1290_v57 = vrot.slane %v6715_v38, 5 }
 0x306   :  { %v6721_v58 = vadd.f32 %v1266_v19, %v1243_v29  ;;  %v7542_v19 = vld [vmem:[#allocation28_spill] sm:$0xff] }
 0x307   :  { %v6723_v6 = vadd.f32 %v1267_v1, %v1244_v48  ;;  %v1291_v4 = vsel %vm891_vm4, %v1290_v57, %v1289_v42  ;;  %v1292_v43 = vrot.slane %v6718_v52, 4  ;;  %v7546_v1 = vld [vmem:[#allocation33_spill] sm:$0xff] }
 0x308   :  { %v1294_v8 = vrot.slane %v6721_v58, 3 }
 0x309   :  { %v1293_v50 = vsel %vm894_vm5, %v1292_v43, %v1291_v4  ;;  %v1296_v37 = vrot.slane %v6723_v6, 2 }
 0x30a   :  { %v1295_v40 = vsel %vm897_vm6, %v1294_v8, %v1293_v50 }
 0x30b   :  { %v1297_v12 = vsel %vm900_vm7, %v1296_v37, %v1295_v40 }
 0x30c   :  { %1364 = vmatmul.mubr.f32.vlgmr.msra.gmra.mrb[20].mxu0 %v1297_v12  ;;  %4381 = vmatmul.mubr.f32.vlgmr.msra.gmra.mrb[12].mxu1 %v1297_v12 }
 0x30d   :  { %4863 = vmatpush1.bf16.msra.mxu0 %v6299_v17  ;;  %4894 = vmatpush3.bf16.msra.mxu1 %v6320_v41 }
 0x30e   :  { %4865 = vmatprep.subr.bf16.mxu0 %v6302_v18  ;;  %4895 = vmatprep.subr.bf16.mxu1 %v7521_v16 }
 0x30f   :  { %1759 = vmatprep.mubr.f32.mxu0 %v6580_v53  ;;  %4415 = vmatprep.mubr.msk.f32.mxu1 %vm6103_vm0, %v6580_v53  ;;  %v7540_v53 = vld [vmem:[#allocation31_spill] sm:$0xff] }
 0x311   :  { %4867 = vmatpush1.bf16.msra.mxu0 %v6307_v25  ;;  %4897 = vmatpush3.bf16.msra.mxu1 %v6330_v51 }
 0x312   :  { %4869 = vmatprep.subr.bf16.mxu0 %v6310_v26  ;;  %4898 = vmatprep.subr.bf16.mxu1 %v7521_v16 }
 0x315   :  { %4871 = vmatpush1.bf16.msra.mxu0 %v6314_v34  ;;  %4900 = vmatpush3.bf16.msra.mxu1 %v6341_v61 }
 0x316   :  { %4873 = vmatprep.subr.bf16.mxu0 %v6317_v35  ;;  %4901 = vmatprep.subr.bf16.mxu1 %v7521_v16 }
 0x319   :  { %4875 = vmatpush1.bf16.msra.mxu0 %v6324_v45  ;;  %4903 = vmatpush3.bf16.msra.mxu1 %v6352_v10 }
 0x31a   :  { %4877 = vmatprep.subr.bf16.mxu0 %v6327_v46  ;;  %4904 = vmatprep.subr.bf16.mxu1 %v7521_v16 }
 0x31d   :  { %4879 = vmatpush1.bf16.msra.mxu0 %v6335_v55  ;;  %4906 = vmatpush3.bf16.msra.mxu1 %v6363_v20 }
 0x31e   :  { %4881 = vmatprep.subr.bf16.mxu0 %v6338_v56  ;;  %4907 = vmatprep.subr.bf16.mxu1 %v7521_v16 }
 0x321   :  { %4883 = vmatpush1.bf16.msra.mxu0 %v6346_v2  ;;  %4909 = vmatpush3.bf16.msra.mxu1 %v7540_v53 }
 0x322   :  { %4885 = vmatprep.subr.bf16.mxu0 %v7541_v60  ;;  %4910 = vmatprep.subr.bf16.mxu1 %v7521_v16 }
 0x325   :  { %4887 = vmatpush1.bf16.msra.mxu0 %v7542_v19  ;;  %4912 = vmatpush3.bf16.msra.mxu1 %v7543_v44 }
 0x326   :  { %4889 = vmatprep.subr.bf16.mxu0 %v7544_v11  ;;  %4913 = vmatprep.subr.bf16.mxu1 %v7521_v16 }
 0x329   :  { %4891 = vmatpush1.bf16.msra.mxu0 %v7545_v23  ;;  %4915 = vmatpush3.bf16.msra.mxu1 %v7546_v1 }
 0x32a   :  { %4917 = vmatprep.subr.bf16.mxu0 %v7547_v59  ;;  %4948 = vmatprep.subr.bf16.mxu1 %v7521_v16 }
 0x3df   :  { %v1365_v21 = vpop.f32.mrb[20].mxu0  ;;  %v6767_v39 = vpop.f32.mrb[12].mxu1 }
 0x3e0   :  { %v1441_v13 = vrot.slane %v1365_v21, 6  ;;  %v1442_v42 = vrot.slane %v1365_v21, 7  ;;  %v1443_v32 = vrot.slane %v1365_v21, 1  ;;  %v1444_v29 = vrot.slane %v1365_v21, 2  ;;  %v6769_v48 = vpop.f32.mrb[21].mxu0  ;;  %v4382_v57 = vpop.f32.mrb[13].mxu1 }
 0x3e1   :  { %v1445_v4 = vrot.slane %v1365_v21, 3  ;;  %v1446_v43 = vrot.slane %v1365_v21, 4  ;;  %v1447_v8 = vrot.slane %v1365_v21, 5  ;;  %v1458_v50 = vadd.f32 %v1365_v21, %v6469_v28 }
 0x3e2   :  { %v1456_v37 = vadd.f32 %v1441_v13, %v7529_v5  ;;  %v1457_v40 = vadd.f32 %v1442_v42, %v6464_v22  ;;  %v1459_v12 = vadd.f32 %v1443_v32, %v6474_v31  ;;  %v1460_v7 = vadd.f32 %v1444_v29, %v6476_v49 }
 0x3e3   :  { %v1461_v59 = vadd.f32 %v1445_v4, %v6478_v63  ;;  %v1462_v1 = vadd.f32 %v1446_v43, %v6480_v33  ;;  %v3943_v23 = vmul.f32 -1.442695, %v1458_v50  ;;  %v1463_v57 = vadd.f32 %v1447_v8, %v6482_v36 }
 0x3e4   :  { %v3941_v11 = vmul.f32 -1.442695, %v1456_v37  ;;  %v3942_v44 = vmul.f32 -1.442695, %v1457_v40  ;;  %v3944_v19 = vmul.f32 -1.442695, %v1459_v12 }
 0x3e5   :  { %5365 = vpow2.f32 %v3943_v23  ;;  %v3945_v21 = vmul.f32 -1.442695, %v1460_v7  ;;  %v3946_v13 = vmul.f32 -1.442695, %v1461_v59  ;;  %v3947_v42 = vmul.f32 -1.442695, %v1462_v1 }
 0x3e6   :  { %5367 = vpow2.f32 %v3941_v11  ;;  %v1513_v32 = vrot.slane %v6769_v48, 6  ;;  %v3948_v29 = vmul.f32 -1.442695, %v1463_v57  ;;  %v1514_v4 = vrot.slane %v6769_v48, 7  ;;  %v7548_v23 = vld [vmem:[#allocation37_spill] sm:$0xff] }
 0x3e7   :  { %5369 = vpow2.f32 %v3942_v44  ;;  %v1515_v43 = vrot.slane %v6769_v48, 1  ;;  %v1530_v7 = vadd.f32 %v6769_v48, %v7548_v23  ;;  %v7549_v44 = vld [vmem:[#allocation41_spill] sm:$0xff]  ;;  %v1516_v40 = vrot.slane %v6769_v48, 2 }
 0x3e8   :  { %5371 = vpow2.f32 %v3944_v19  ;;  %v1528_v8 = vadd.f32 %v1513_v32, %v7530_v62  ;;  %v1529_v50 = vadd.f32 %v1514_v4, %v6467_v27  ;;  %v1517_v57 = vrot.slane %v6769_v48, 3  ;;  %v7552_v27 = vld [vmem:[#allocation44_spill] sm:$0xff] }
 0x3e9   :  { %5373 = vpow2.f32 %v3945_v21  ;;  %v1531_v11 = vadd.f32 %v1515_v43, %v7549_v44  ;;  %v3951_v59 = vmul.f32 -1.442695, %v1530_v7  ;;  %v1518_v32 = vrot.slane %v6769_v48, 4  ;;  %v7551_v44 = vld [vmem:[#allocation43_spill] sm:$0xff] }
 0x3ea   :  { %5375 = vpow2.f32 %v3946_v13  ;;  %v3949_v1 = vmul.f32 -1.442695, %v1528_v8  ;;  %v3950_v19 = vmul.f32 -1.442695, %v1529_v50  ;;  %v7550_v50 = vld [vmem:[#allocation42_spill] sm:$0xff] }
 0x3eb   :  { %5377 = vpow2.f32 %v3947_v42  ;;  %v3952_v37 = vmul.f32 -1.442695, %v1531_v11  ;;  %v1532_v7 = vadd.f32 %v1516_v40, %v7550_v50 }
 0x3ec   :  { %5379 = vpow2.f32 %v3948_v29  ;;  %v1519_v29 = vrot.slane %v6769_v48, 5  ;;  %v7553_v48 = vld [vmem:[#allocation45_spill] sm:$0xff] }
 0x3ed   :  { %5381 = vpow2.f32 %v3949_v1 }
 0x3ee   :  { %5383 = vpow2.f32 %v3950_v19  ;;  %v1533_v19 = vadd.f32 %v1517_v57, %v7551_v44  ;;  %v6795_v57 = vld [vmem:[#allocation11] ss:$0 sm:$0xff] }
 0x3ef   :  { %v5366_v12 = vpop.eup %5365  ;;  %5385 = vpow2.f32 %v3951_v59  ;;  %v1534_v59 = vadd.f32 %v1518_v32, %v7552_v27  ;;  %7554 = vst [vmem:[#allocation34_spill] sm:$0xff] %v6795_v57 }
 0x3f0   :  { %v5368_v21 = vpop.eup %5367  ;;  %v1490_v13 = vadd.f32 1.0, %v5366_v12  ;;  %5387 = vpow2.f32 %v3952_v37  ;;  %v1535_v37 = vadd.f32 %v1519_v29, %v7553_v48 }
 0x3f1   :  { %v5370_v42 = vpop.eup %5369  ;;  %v1488_v4 = vadd.f32 1.0, %v5368_v21  ;;  %v3955_v32 = vmul.f32 -1.442695, %v1534_v59 }
 0x3f2   :  { %v5372_v43 = vpop.eup %5371  ;;  %v1489_v8 = vadd.f32 1.0, %v5370_v42  ;;  %5389 = vrcp.f32 %v1490_v13  ;;  %v3953_v13 = vmul.f32 -1.442695, %v1532_v7 }
 0x3f3   :  { %v5374_v11 = vpop.eup %5373  ;;  %v1491_v1 = vadd.f32 1.0, %v5372_v43  ;;  %5391 = vrcp.f32 %v1488_v4  ;;  %v3954_v43 = vmul.f32 -1.442695, %v1533_v19 }
 0x3f4   :  { %v5376_v23 = vpop.eup %5375  ;;  %v1492_v12 = vadd.f32 1.0, %v5374_v11  ;;  %5393 = vrcp.f32 %v1489_v8  ;;  %v1584_v8 = vadd.f32 %v6795_v57, %v6767_v39 }
 0x3f5   :  { %v5378_v62 = vpop.eup %5377  ;;  %v1493_v21 = vadd.f32 1.0, %v5376_v23  ;;  %5395 = vrcp.f32 %v1491_v1  ;;  %v3956_v23 = vmul.f32 -1.442695, %v1535_v37 }
 0x3f6   :  { %v5380_v36 = vpop.eup %5379  ;;  %v1494_v42 = vadd.f32 1.0, %v5378_v62  ;;  %5397 = vrcp.f32 %v1492_v12  ;;  %v1586_v12 = vrot.slane %v1584_v8, 6  ;;  %v1588_v59 = vrot.slane %v1584_v8, 1 }
 0x3f7   :  { %v1495_v40 = vadd.f32 1.0, %v5380_v36  ;;  %5399 = vrcp.f32 %v1493_v21  ;;  %v5382_v4 = vpop.eup %5381 }
 0x3f8   :  { %5401 = vrcp.f32 %v1494_v42  ;;  %v5384_v11 = vpop.eup %5383  ;;  %v1560_v29 = vadd.f32 1.0, %v5382_v4  ;;  %v1587_v42 = vrot.slane %v1584_v8, 7  ;;  %v1590_v4 = vrot.slane %v1584_v8, 3 }
 0x3f9   :  { %5403 = vrcp.f32 %v1495_v40  ;;  %v5386_v1 = vpop.eup %5385  ;;  %v1561_v7 = vadd.f32 1.0, %v5384_v11  ;;  %v1589_v40 = vrot.slane %v1584_v8, 2 }
 0x3fa   :  { %5405 = vpow2.f32 %v3953_v13  ;;  %v5388_v62 = vpop.eup %5387  ;;  %v1562_v19 = vadd.f32 1.0, %v5386_v1 }
 0x3fb   :  { %5407 = vpow2.f32 %v3954_v43  ;;  %v1563_v27 = vadd.f32 1.0, %v5388_v62  ;;  %v1591_v62 = vrot.slane %v1584_v8, 4 }
 0x3fc   :  { %v5390_v36 = vpop.eup %5389  ;;  %5409 = vpow2.f32 %v3955_v32 }
 0x3fd   :  { %v5392_v21 = vpop.eup %5391  ;;  %v1603_v48 = vmul.f32 %v5390_v36, %v1584_v8  ;;  %5411 = vpow2.f32 %v3956_v23  ;;  %v7555_v36 = vld [vmem:[#allocation47_spill] sm:$0xff] }
 0x3fe   :  { %v5394_v39 = vpop.eup %5393  ;;  %v1601_v57 = vmul.f32 %v5392_v21, %v1586_v12  ;;  %5413 = vrcp.f32 %v1560_v29  ;;  %v1592_v29 = vrot.slane %v1584_v8, 5 }
 0x3ff   :  { %v5396_v37 = vpop.eup %5395  ;;  %v1602_v13 = vmul.f32 %v5394_v39, %v1587_v42  ;;  %5415 = vrcp.f32 %v1561_v7  ;;  %v1611_v1 = vadd.f32 %v1603_v48, %v7533_v24 }
 0x400   :  { %v5398_v43 = vpop.eup %5397  ;;  %v1609_v11 = vadd.f32 %v1601_v57, %v7532_v15  ;;  %5417 = vrcp.f32 %v1562_v19  ;;  %v1604_v32 = vmul.f32 %v5396_v37, %v1588_v59 }
 0x401   :  { %v5400_v44 = vpop.eup %5399  ;;  %v1610_v23 = vadd.f32 %v1602_v13, %v7555_v36  ;;  %5419 = vrcp.f32 %v1563_v27  ;;  %v1605_v50 = vmul.f32 %v5398_v43, %v1589_v40 }
 0x402   :  { %v5402_v12 = vpop.eup %5401  ;;  %v1606_v21 = vmul.f32 %v5400_v44, %v1590_v4  ;;  %v1612_v42 = vadd.f32 %v1604_v32, %v7534_v30  ;;  %5421 = vtanh.f32 %v1609_v11  ;;  %v1641_v44 = vrot.slane %v6695_v0, 7  ;;  %v7556_v32 = vld [vmem:[#allocation53_spill] sm:$0xff] }
 0x403   :  { %v5404_v7 = vpop.eup %5403  ;;  %v1607_v39 = vmul.f32 %v5402_v12, %v1591_v62  ;;  %v1613_v57 = vadd.f32 %v1605_v50, %v7535_v9  ;;  %5423 = vtanh.f32 %v1610_v23  ;;  %v1642_v50 = vrot.slane %v6698_v14, 7  ;;  %v7557_v62 = vld [vmem:[#allocation54_spill] sm:$0xff] }
 0x404   :  { %v5406_v19 = vpop.eup %5405  ;;  %v1608_v59 = vmul.f32 %v5404_v7, %v1592_v29  ;;  %5425 = vtanh.f32 %v1611_v1  ;;  %v1614_v4 = vadd.f32 %v1606_v21, %v7536_v47  ;;  %v1643_v7 = vrot.slane %v6705_v3, 7 }
 0x405   :  { %v5408_v48 = vpop.eup %5407  ;;  %v1564_v37 = vadd.f32 1.0, %v5406_v19  ;;  %5427 = vtanh.f32 %v1612_v42  ;;  %v1615_v1 = vadd.f32 %v1607_v39, %v7556_v32  ;;  %v7558_v3 = vrot.slane %v6701_v54, 7 }
 0x406   :  { %v5410_v27 = vpop.eup %5409  ;;  %v1565_v13 = vadd.f32 1.0, %v5408_v48  ;;  %5429 = vtanh.f32 %v1613_v57  ;;  %v1616_v12 = vadd.f32 %v1608_v59, %v7557_v62 }
 0x407   :  { %v5412_v40 = vpop.eup %5411  ;;  %v1566_v8 = vadd.f32 1.0, %v5410_v27  ;;  %5431 = vrcp.f32 %v1564_v37 }
 0x408   :  { %v5414_v43 = vpop.eup %5413  ;;  %5433 = vrcp.f32 %v1565_v13  ;;  %v1567_v11 = vadd.f32 1.0, %v5412_v40 }
 0x409   :  { %v5416_v23 = vpop.eup %5415  ;;  %5435 = vrcp.f32 %v1566_v8  ;;  %v1656_v29 = vmul.f32 %v5414_v43, %v1641_v44  ;;  %v1625_v21 = vsub.f32 1.0, %v5414_v43  ;;  %v1644_v43 = vrot.slane %v6715_v38, 7 }
 0x40a   :  { %v5418_v42 = vpop.eup %5417  ;;  %5437 = vrcp.f32 %v1567_v11  ;;  %v1657_v0 = vmul.f32 %v5416_v23, %v1642_v50  ;;  %v1626_v14 = vsub.f32 1.0, %v5416_v23 }
 0x40b   :  { %v5420_v57 = vpop.eup %5419  ;;  %5439 = vtanh.f32 %v1614_v4  ;;  %v1627_v39 = vsub.f32 1.0, %v5418_v42  ;;  %v1658_v11 = vmul.f32 %v5418_v42, %v7558_v3 }
 0x40c   :  { %v5422_v19 = vpop.eup %5421  ;;  %5441 = vtanh.f32 %v1615_v1  ;;  %v1659_v48 = vmul.f32 %v5420_v57, %v1643_v7  ;;  %v1628_v40 = vsub.f32 1.0, %v5420_v57 }
 0x40d   :  { %v5424_v37 = vpop.eup %5423  ;;  %5443 = vtanh.f32 %v1616_v12  ;;  %v1633_v27 = vmul.f32 %v5422_v19, %v1625_v21  ;;  %v1645_v12 = vrot.slane %v6718_v52, 7  ;;  %v1646_v21 = vrot.slane %v6721_v58, 7 }
 0x40e   :  { %v5426_v13 = vpop.eup %5425  ;;  %v1634_v59 = vmul.f32 %v5424_v37, %v1626_v14 }
 0x40f   :  { %v5428_v44 = vpop.eup %5427  ;;  %v1635_v8 = vmul.f32 %v5426_v13, %v1627_v39  ;;  %v6812_v50 = vadd.f32 %v1656_v29, %v1633_v27 }
 0x410   :  { %v5430_v4 = vpop.eup %5429  ;;  %v1636_v1 = vmul.f32 %v5428_v44, %v1628_v40  ;;  %v6815_v23 = vadd.f32 %v1657_v0, %v1634_v59  ;;  %v1647_v0 = vrot.slane %v6723_v6, 7 }
 0x411   :  { %v5432_v7 = vpop.eup %5431  ;;  %v6819_v57 = vadd.f32 %v1658_v11, %v1635_v8  ;;  %v1680_v19 = vrot.slane %v6812_v50, 2 }
 0x412   :  { %v5434_v14 = vpop.eup %5433  ;;  %v1629_v54 = vsub.f32 1.0, %v5432_v7  ;;  %v1660_v42 = vmul.f32 %v5432_v7, %v1644_v43  ;;  %v6822_v29 = vadd.f32 %v1659_v48, %v1636_v1  ;;  %v1681_v37 = vrot.slane %v6815_v23, 1 }
 0x413   :  { %v5436_v38 = vpop.eup %5435  ;;  %v1661_v39 = vmul.f32 %v5434_v14, %v1645_v12  ;;  %v1630_v13 = vsub.f32 1.0, %v5434_v14 }
 0x414   :  { %v5438_v27 = vpop.eup %5437  ;;  %v1637_v52 = vmul.f32 %v5430_v4, %v1629_v54  ;;  %v1662_v40 = vmul.f32 %v5436_v38, %v1646_v21  ;;  %v1682_v58 = vsel %vm882_vm1, %v1681_v37, %v1680_v19  ;;  %v1631_v44 = vsub.f32 1.0, %v5436_v38 }
 0x415   :  { %v5440_v59 = vpop.eup %5439  ;;  %v1663_v8 = vmul.f32 %v5438_v27, %v1647_v0  ;;  %v1683_v3 = vsel %vm885_vm2, %v6819_v57, %v1682_v58  ;;  %v7476_v48 = vrot.slane %v6822_v29, 7  ;;  %v1632_v43 = vsub.f32 1.0, %v5438_v27  ;;  %v7559_v58 = vld [vmem:[#allocation28_spill] sm:$0xff] }
 0x416   :  { %v5442_v11 = vpop.eup %5441  ;;  %v1638_v1 = vmul.f32 %v5440_v59, %v1630_v13  ;;  %v6830_v7 = vadd.f32 %v1660_v42, %v1637_v52  ;;  %v7560_v59 = vld [vmem:[#allocation32_spill] sm:$0xff] }
 0x417   :  { %v5444_v6 = vpop.eup %5443  ;;  %v1639_v12 = vmul.f32 %v5442_v11, %v1631_v44  ;;  %v1685_v4 = vsel %vm888_vm3, %v7476_v48, %v1683_v3  ;;  %v7561_v44 = vld [vmem:[#allocation29_spill] sm:$0xff] }
 0x418   :  { %v1640_v21 = vmul.f32 %v5444_v6, %v1632_v43  ;;  %v6835_v19 = vadd.f32 %v1661_v39, %v1638_v1  ;;  %v1686_v14 = vrot.slane %v6830_v7, 6  ;;  %v7563_v3 = vld [vmem:[#allocation33_spill] sm:$0xff] }
 0x419   :  { %v6838_v54 = vadd.f32 %v1662_v40, %v1639_v12  ;;  %v6853_v40 = vld [vmem:[#allocation2] sm:$0xff] }
 0x41a   :  { %v6840_v37 = vadd.f32 %v1663_v8, %v1640_v21  ;;  %v1687_v38 = vsel %vm891_vm4, %v1686_v14, %v1685_v4  ;;  %v1688_v42 = vrot.slane %v6835_v19, 5  ;;  %v7562_v8 = vld [vmem:[#allocation30_spill] sm:$0xff]  ;;  %v7564_v11 = vld [vmem:[#allocation25_spill] sm:$0xff] }
 0x41b   :  { %v1690_v0 = vrot.slane %v6838_v54, 4 }
 0x41c   :  { %v1689_v27 = vsel %vm894_vm5, %v1688_v42, %v1687_v38  ;;  %v1692_v13 = vrot.slane %v6840_v37, 3 }
 0x41d   :  { %v1691_v52 = vsel %vm897_vm6, %v1690_v0, %v1689_v27 }
 0x41e   :  { %v1693_v39 = vsel %vm900_vm7, %v1692_v13, %v1691_v52 }
 0x41f   :  { %1760 = vmatmul.mubr.f32.vlgmr.msra.gmra.mrb[22].mxu0 %v1693_v39  ;;  %4416 = vmatmul.mubr.f32.vlgmr.msra.gmra.mrb[14].mxu1 %v1693_v39 }
 0x420   :  { %4919 = vmatpush1.bf16.msra.mxu0 %v6299_v17  ;;  %4950 = vmatpush3.bf16.msra.mxu1 %v6320_v41 }
 0x421   :  { %4921 = vmatprep.subr.bf16.mxu0 %v6302_v18  ;;  %4951 = vmatprep.subr.bf16.mxu1 %v7521_v16 }
 0x422   :  { %2155 = vmatprep.mubr.f32.mxu0 %v6853_v40  ;;  %4450 = vmatprep.mubr.msk.f32.mxu1 %vm6103_vm0, %v6853_v40 }
 0x424   :  { %4923 = vmatpush1.bf16.msra.mxu0 %v6307_v25  ;;  %4953 = vmatpush3.bf16.msra.mxu1 %v6330_v51 }
 0x425   :  { %4925 = vmatprep.subr.bf16.mxu0 %v6310_v26  ;;  %4954 = vmatprep.subr.bf16.mxu1 %v7521_v16 }
 0x428   :  { %4927 = vmatpush1.bf16.msra.mxu0 %v6314_v34  ;;  %4956 = vmatpush3.bf16.msra.mxu1 %v6341_v61 }
 0x429   :  { %4929 = vmatprep.subr.bf16.mxu0 %v6317_v35  ;;  %4957 = vmatprep.subr.bf16.mxu1 %v7521_v16 }
 0x42c   :  { %4931 = vmatpush1.bf16.msra.mxu0 %v6324_v45  ;;  %4959 = vmatpush3.bf16.msra.mxu1 %v6352_v10 }
 0x42d   :  { %4933 = vmatprep.subr.bf16.mxu0 %v6327_v46  ;;  %4960 = vmatprep.subr.bf16.mxu1 %v7521_v16 }
 0x430   :  { %4935 = vmatpush1.bf16.msra.mxu0 %v6335_v55  ;;  %4962 = vmatpush3.bf16.msra.mxu1 %v6363_v20 }
 0x431   :  { %4937 = vmatprep.subr.bf16.mxu0 %v6338_v56  ;;  %4963 = vmatprep.subr.bf16.mxu1 %v7521_v16 }
 0x434   :  { %4939 = vmatpush1.bf16.msra.mxu0 %v6346_v2  ;;  %4965 = vmatpush3.bf16.msra.mxu1 %v7540_v53 }
 0x435   :  { %4941 = vmatprep.subr.bf16.mxu0 %v7541_v60  ;;  %4966 = vmatprep.subr.bf16.mxu1 %v7521_v16 }
 0x438   :  { %4943 = vmatpush1.bf16.msra.mxu0 %v7559_v58  ;;  %4968 = vmatpush3.bf16.msra.mxu1 %v7560_v59  ;;  %v7565_v59 = vld [vmem:[#allocation40_spill] sm:$0xff] }
 0x439   :  { %4945 = vmatprep.subr.bf16.mxu0 %v7561_v44  ;;  %4969 = vmatprep.subr.bf16.mxu1 %v7521_v16 }
 0x43c   :  { %4947 = vmatpush1.bf16.msra.mxu0 %v7562_v8  ;;  %4971 = vmatpush3.bf16.msra.mxu1 %v7563_v3 }
 0x43d   :  { %4973 = vmatprep.subr.bf16.mxu0 %v7564_v11  ;;  %5004 = vmatprep.subr.bf16.mxu1 %v7521_v16 }
 0x4f2   :  { %v1761_v43 = vpop.f32.mrb[22].mxu0  ;;  %v6886_v1 = vpop.f32.mrb[14].mxu1 }
 0x4f3   :  { %v1837_v6 = vrot.slane %v1761_v43, 5  ;;  %v1838_v12 = vrot.slane %v1761_v43, 6  ;;  %v1839_v4 = vrot.slane %v1761_v43, 7  ;;  %v1840_v21 = vrot.slane %v1761_v43, 1  ;;  %v6888_v14 = vpop.f32.mrb[23].mxu0  ;;  %v4417_v38 = vpop.f32.mrb[15].mxu1 }
 0x4f4   :  { %v1841_v42 = vrot.slane %v1761_v43, 2  ;;  %v1842_v0 = vrot.slane %v1761_v43, 3  ;;  %v1843_v27 = vrot.slane %v1761_v43, 4  ;;  %v1855_v13 = vadd.f32 %v1761_v43, %v6474_v31 }
 0x4f5   :  { %v1852_v52 = vadd.f32 %v1837_v6, %v7529_v5  ;;  %v1853_v39 = vadd.f32 %v1838_v12, %v6464_v22  ;;  %v1854_v48 = vadd.f32 %v1839_v4, %v6469_v28  ;;  %v1856_v11 = vadd.f32 %v1840_v21, %v6476_v49 }
 0x4f6   :  { %v1857_v3 = vadd.f32 %v1841_v42, %v6478_v63  ;;  %v1858_v8 = vadd.f32 %v1842_v0, %v6480_v33  ;;  %v3960_v44 = vmul.f32 -1.442695, %v1855_v13  ;;  %v1859_v38 = vadd.f32 %v1843_v27, %v7565_v59  ;;  %v7566_v27 = vld [vmem:[#allocation35_spill] sm:$0xff]  ;;  %v7572_v59 = vld [vmem:[#allocation44_spill] sm:$0xff] }
 0x4f7   :  { %v3957_v58 = vmul.f32 -1.442695, %v1852_v52  ;;  %v3958_v60 = vmul.f32 -1.442695, %v1853_v39  ;;  %v3959_v53 = vmul.f32 -1.442695, %v1854_v48 }
 0x4f8   :  { %5445 = vpow2.f32 %v3960_v44  ;;  %v3961_v43 = vmul.f32 -1.442695, %v1856_v11  ;;  %v3962_v6 = vmul.f32 -1.442695, %v1857_v3  ;;  %v3963_v12 = vmul.f32 -1.442695, %v1858_v8 }
 0x4f9   :  { %5447 = vpow2.f32 %v3957_v58  ;;  %v1909_v4 = vrot.slane %v6888_v14, 5  ;;  %v3964_v21 = vmul.f32 -1.442695, %v1859_v38  ;;  %v1910_v42 = vrot.slane %v6888_v14, 6  ;;  %v7567_v52 = vld [vmem:[#allocation36_spill] sm:$0xff]  ;;  %v7568_v44 = vld [vmem:[#allocation37_spill] sm:$0xff] }
 0x4fa   :  { %5449 = vpow2.f32 %v3958_v60  ;;  %v1911_v0 = vrot.slane %v6888_v14, 7  ;;  %v7569_v58 = vld [vmem:[#allocation41_spill] sm:$0xff]  ;;  %v1912_v38 = vrot.slane %v6888_v14, 1 }
 0x4fb   :  { %5451 = vpow2.f32 %v3959_v53  ;;  %v1924_v13 = vadd.f32 %v1909_v4, %v7566_v27  ;;  %v1925_v48 = vadd.f32 %v1910_v42, %v7567_v52  ;;  %v1927_v60 = vadd.f32 %v6888_v14, %v7569_v58  ;;  %v7571_v52 = vld [vmem:[#allocation43_spill] sm:$0xff] }
 0x4fc   :  { %5453 = vpow2.f32 %v3961_v43  ;;  %v1926_v11 = vadd.f32 %v1911_v0, %v7568_v44  ;;  %v1914_v0 = vrot.slane %v6888_v14, 3 }
 0x4fd   :  { %5455 = vpow2.f32 %v3962_v6  ;;  %v3965_v8 = vmul.f32 -1.442695, %v1924_v13  ;;  %v3966_v53 = vmul.f32 -1.442695, %v1925_v48  ;;  %v3968_v39 = vmul.f32 -1.442695, %v1927_v60 }
 0x4fe   :  { %5457 = vpow2.f32 %v3963_v12  ;;  %v3967_v3 = vmul.f32 -1.442695, %v1926_v11  ;;  %v1913_v6 = vrot.slane %v6888_v14, 2  ;;  %v7570_v11 = vld [vmem:[#allocation42_spill] sm:$0xff] }
 0x4ff   :  { %5459 = vpow2.f32 %v3964_v21  ;;  %v1915_v21 = vrot.slane %v6888_v14, 4  ;;  %v1928_v60 = vadd.f32 %v1912_v38, %v7570_v11  ;;  %v7573_v14 = vld [vmem:[#allocation45_spill] sm:$0xff] }
 0x500   :  { %5461 = vpow2.f32 %v3965_v8 }
 0x501   :  { %5463 = vpow2.f32 %v3966_v53  ;;  %v1929_v53 = vadd.f32 %v1913_v6, %v7571_v52  ;;  %v7574_v6 = vld [vmem:[#allocation34_spill] sm:$0xff] }
 0x502   :  { %v5446_v43 = vpop.eup %5445  ;;  %5465 = vpow2.f32 %v3967_v3  ;;  %v1930_v3 = vadd.f32 %v1914_v0, %v7572_v59 }
 0x503   :  { %v5448_v4 = vpop.eup %5447  ;;  %v1887_v42 = vadd.f32 1.0, %v5446_v43  ;;  %5467 = vpow2.f32 %v3968_v39  ;;  %v1931_v39 = vadd.f32 %v1915_v21, %v7573_v14 }
 0x504   :  { %v5450_v12 = vpop.eup %5449  ;;  %v1884_v44 = vadd.f32 1.0, %v5448_v4 }
 0x505   :  { %v5452_v13 = vpop.eup %5451  ;;  %v1885_v48 = vadd.f32 1.0, %v5450_v12  ;;  %5469 = vrcp.f32 %v1887_v42  ;;  %v3969_v42 = vmul.f32 -1.442695, %v1928_v60  ;;  %v3972_v0 = vmul.f32 -1.442695, %v1931_v39 }
 0x506   :  { %v5454_v8 = vpop.eup %5453  ;;  %v1886_v58 = vadd.f32 1.0, %v5452_v13  ;;  %5471 = vrcp.f32 %v1884_v44  ;;  %v3970_v13 = vmul.f32 -1.442695, %v1929_v53 }
 0x507   :  { %v5456_v27 = vpop.eup %5455  ;;  %v1888_v43 = vadd.f32 1.0, %v5454_v8  ;;  %5473 = vrcp.f32 %v1885_v48  ;;  %v1980_v8 = vadd.f32 %v7574_v6, %v6886_v1  ;;  %v3971_v48 = vmul.f32 -1.442695, %v1930_v3 }
 0x508   :  { %v5458_v33 = vpop.eup %5457  ;;  %v1889_v4 = vadd.f32 1.0, %v5456_v27  ;;  %5475 = vrcp.f32 %v1886_v58 }
 0x509   :  { %v5460_v63 = vpop.eup %5459  ;;  %v1890_v12 = vadd.f32 1.0, %v5458_v33  ;;  %5477 = vrcp.f32 %v1888_v43  ;;  %v1982_v60 = vrot.slane %v1980_v8, 5  ;;  %v1984_v3 = vrot.slane %v1980_v8, 7 }
 0x50a   :  { %v1891_v38 = vadd.f32 1.0, %v5460_v63  ;;  %5479 = vrcp.f32 %v1889_v4  ;;  %v5462_v44 = vpop.eup %5461  ;;  %v1983_v4 = vrot.slane %v1980_v8, 6 }
 0x50b   :  { %5481 = vrcp.f32 %v1890_v12  ;;  %v5464_v52 = vpop.eup %5463  ;;  %v1956_v58 = vadd.f32 1.0, %v5462_v44  ;;  %v1986_v44 = vrot.slane %v1980_v8, 2 }
 0x50c   :  { %5483 = vrcp.f32 %v1891_v38  ;;  %v5466_v27 = vpop.eup %5465  ;;  %v1957_v33 = vadd.f32 1.0, %v5464_v52  ;;  %v1985_v38 = vrot.slane %v1980_v8, 1 }
 0x50d   :  { %5485 = vpow2.f32 %v3969_v42  ;;  %v5468_v21 = vpop.eup %5467  ;;  %v1958_v63 = vadd.f32 1.0, %v5466_v27 }
 0x50e   :  { %5487 = vpow2.f32 %v3970_v13  ;;  %v1959_v12 = vadd.f32 1.0, %v5468_v21 }
 0x50f   :  { %v5470_v43 = vpop.eup %5469  ;;  %5489 = vpow2.f32 %v3971_v48  ;;  %v1987_v48 = vrot.slane %v1980_v8, 3 }
 0x510   :  { %v5472_v53 = vpop.eup %5471  ;;  %5491 = vpow2.f32 %v3972_v0  ;;  %v2000_v14 = vmul.f32 %v5470_v43, %v1980_v8 }
 0x511   :  { %v5474_v1 = vpop.eup %5473  ;;  %v1997_v6 = vmul.f32 %v5472_v53, %v1982_v60  ;;  %5493 = vrcp.f32 %v1956_v58  ;;  %v1988_v58 = vrot.slane %v1980_v8, 4  ;;  %v2037_v8 = vrot.slane %v6812_v50, 7 }
 0x512   :  { %v5476_v39 = vpop.eup %5475  ;;  %v1998_v42 = vmul.f32 %v5474_v1, %v1983_v4  ;;  %5495 = vrcp.f32 %v1957_v33  ;;  %v2008_v43 = vadd.f32 %v2000_v14, %v7534_v30 }
 0x513   :  { %v5478_v13 = vpop.eup %5477  ;;  %v1999_v52 = vmul.f32 %v5476_v39, %v1984_v3  ;;  %v2005_v59 = vadd.f32 %v1997_v6, %v7532_v15  ;;  %5497 = vrcp.f32 %v1958_v63 }
 0x514   :  { %v5480_v27 = vpop.eup %5479  ;;  %v2006_v0 = vadd.f32 %v1998_v42, %v7555_v36  ;;  %5499 = vrcp.f32 %v1959_v12  ;;  %v2001_v21 = vmul.f32 %v5478_v13, %v1985_v38 }
 0x515   :  { %v5482_v60 = vpop.eup %5481  ;;  %v2002_v53 = vmul.f32 %v5480_v27, %v1986_v44  ;;  %v2007_v4 = vadd.f32 %v1999_v52, %v7533_v24  ;;  %5501 = vtanh.f32 %v2005_v59  ;;  %v2038_v52 = vrot.slane %v6815_v23, 7 }
 0x516   :  { %v5484_v33 = vpop.eup %5483  ;;  %v2003_v1 = vmul.f32 %v5482_v60, %v1987_v48  ;;  %v2009_v3 = vadd.f32 %v2001_v21, %v7535_v9  ;;  %5503 = vtanh.f32 %v2006_v0  ;;  %v2039_v21 = vrot.slane %v6819_v57, 7 }
 0x517   :  { %v5486_v63 = vpop.eup %5485  ;;  %v2004_v6 = vmul.f32 %v5484_v33, %v1988_v58  ;;  %5505 = vtanh.f32 %v2007_v4  ;;  %v2010_v59 = vadd.f32 %v2002_v53, %v7536_v47 }
 0x518   :  { %v5488_v39 = vpop.eup %5487  ;;  %v1960_v42 = vadd.f32 1.0, %v5486_v63  ;;  %5507 = vtanh.f32 %v2008_v43  ;;  %v2011_v27 = vadd.f32 %v2003_v1, %v7556_v32 }
 0x519   :  { %v5490_v12 = vpop.eup %5489  ;;  %v1961_v38 = vadd.f32 1.0, %v5488_v39  ;;  %5509 = vtanh.f32 %v2009_v3  ;;  %v2012_v43 = vadd.f32 %v2004_v6, %v7557_v62 }
 0x51a   :  { %v5492_v14 = vpop.eup %5491  ;;  %v1962_v44 = vadd.f32 1.0, %v5490_v12  ;;  %5511 = vrcp.f32 %v1960_v42 }
 0x51b   :  { %v5494_v13 = vpop.eup %5493  ;;  %5513 = vrcp.f32 %v1961_v38  ;;  %v1963_v48 = vadd.f32 1.0, %v5492_v14 }
 0x51c   :  { %v5496_v0 = vpop.eup %5495  ;;  %5515 = vrcp.f32 %v1962_v44  ;;  %v2052_v60 = vmul.f32 %v5494_v13, %v2037_v8  ;;  %v2021_v53 = vsub.f32 1.0, %v5494_v13  ;;  %v2040_v44 = vrot.slane %v6830_v7, 7 }
 0x51d   :  { %v5498_v58 = vpop.eup %5497  ;;  %5517 = vrcp.f32 %v1963_v48  ;;  %v2053_v50 = vmul.f32 %v5496_v0, %v2038_v52  ;;  %v2022_v23 = vsub.f32 1.0, %v5496_v0  ;;  %v7575_v13 = vrot.slane %v6822_v29, 7 }
 0x51e   :  { %v5500_v4 = vpop.eup %5499  ;;  %5519 = vtanh.f32 %v2010_v59  ;;  %v2054_v33 = vmul.f32 %v5498_v58, %v2039_v21  ;;  %v2023_v1 = vsub.f32 1.0, %v5498_v58  ;;  %v2041_v0 = vrot.slane %v6835_v19, 7 }
 0x51f   :  { %v5502_v3 = vpop.eup %5501  ;;  %5521 = vtanh.f32 %v2011_v27  ;;  %v2024_v57 = vsub.f32 1.0, %v5500_v4  ;;  %v2055_v52 = vmul.f32 %v5500_v4, %v7575_v13  ;;  %v2042_v21 = vrot.slane %v6838_v54, 7 }
 0x520   :  { %v5504_v63 = vpop.eup %5503  ;;  %5523 = vtanh.f32 %v2012_v43  ;;  %v2029_v39 = vmul.f32 %v5502_v3, %v2021_v53 }
 0x521   :  { %v5506_v42 = vpop.eup %5505  ;;  %v2030_v12 = vmul.f32 %v5504_v63, %v2022_v23 }
 0x522   :  { %v5508_v38 = vpop.eup %5507  ;;  %v2031_v6 = vmul.f32 %v5506_v42, %v2023_v1  ;;  %v6927_v14 = vadd.f32 %v2052_v60, %v2029_v39 }
 0x523   :  { %v5510_v8 = vpop.eup %5509  ;;  %v2032_v59 = vmul.f32 %v5508_v38, %v2024_v57  ;;  %v6932_v48 = vadd.f32 %v2053_v50, %v2030_v12  ;;  %v2043_v50 = vrot.slane %v6840_v37, 7 }
 0x524   :  { %v5512_v27 = vpop.eup %5511  ;;  %v6936_v43 = vadd.f32 %v2054_v33, %v2031_v6  ;;  %v2076_v58 = vrot.slane %v6927_v14, 3 }
 0x525   :  { %v5514_v60 = vpop.eup %5513  ;;  %v2025_v53 = vsub.f32 1.0, %v5512_v27  ;;  %v2056_v3 = vmul.f32 %v5512_v27, %v2040_v44  ;;  %v6939_v23 = vadd.f32 %v2055_v52, %v2032_v59  ;;  %v2077_v7 = vrot.slane %v6932_v48, 2 }
 0x526   :  { %v5516_v29 = vpop.eup %5515  ;;  %v2057_v4 = vmul.f32 %v5514_v60, %v2041_v0  ;;  %v2079_v63 = vrot.slane %v6936_v43, 1  ;;  %v2026_v1 = vsub.f32 1.0, %v5514_v60 }
 0x527   :  { %v5518_v19 = vpop.eup %5517  ;;  %v2033_v54 = vmul.f32 %v5510_v8, %v2025_v53  ;;  %v2058_v33 = vmul.f32 %v5516_v29, %v2042_v21  ;;  %v2078_v39 = vsel %vm882_vm1, %v2077_v7, %v2076_v58  ;;  %v2027_v57 = vsub.f32 1.0, %v5516_v29 }
 0x528   :  { %v5520_v42 = vpop.eup %5519  ;;  %v2059_v12 = vmul.f32 %v5518_v19, %v2043_v50  ;;  %v2080_v38 = vsel %vm885_vm2, %v2079_v63, %v2078_v39  ;;  %v2028_v44 = vsub.f32 1.0, %v5518_v19  ;;  %v7577_v19 = vld [vmem:[#allocation27_spill] sm:$0xff]  ;;  %v7581_v39 = vld [vmem:[#allocation30_spill] sm:$0xff] }
 0x529   :  { %v5522_v6 = vpop.eup %5521  ;;  %v2034_v59 = vmul.f32 %v5520_v42, %v2026_v1  ;;  %v6946_v13 = vadd.f32 %v2056_v3, %v2033_v54  ;;  %v2081_v37 = vsel %vm888_vm3, %v6939_v23, %v2080_v38  ;;  %v7578_v1 = vld [vmem:[#allocation28_spill] sm:$0xff]  ;;  %v7582_v42 = vld [vmem:[#allocation33_spill] sm:$0xff] }
 0x52a   :  { %v5524_v52 = vpop.eup %5523  ;;  %v2035_v27 = vmul.f32 %v5522_v6, %v2027_v57  ;;  %v7579_v54 = vld [vmem:[#allocation32_spill] sm:$0xff]  ;;  %v7583_v57 = vld [vmem:[#allocation25_spill] sm:$0xff] }
 0x52b   :  { %v2036_v0 = vmul.f32 %v5524_v52, %v2028_v44  ;;  %v6950_v8 = vadd.f32 %v2057_v4, %v2034_v59  ;;  %v7483_v21 = vrot.slane %v6946_v13, 7 }
 0x52c   :  { %v6953_v58 = vadd.f32 %v2058_v33, %v2035_v27  ;;  %v7580_v33 = vld [vmem:[#allocation29_spill] sm:$0xff] }
 0x52d   :  { %v6955_v60 = vadd.f32 %v2059_v12, %v2036_v0  ;;  %v2083_v53 = vsel %vm891_vm4, %v7483_v21, %v2081_v37  ;;  %v2084_v3 = vrot.slane %v6950_v8, 6  ;;  %v7584_v21 = vld [vmem:[#allocation38_spill] sm:$0xff] }
 0x52e   :  { %v2086_v7 = vrot.slane %v6953_v58, 5 }
 0x52f   :  { %v2085_v29 = vsel %vm894_vm5, %v2084_v3, %v2083_v53  ;;  %v2088_v50 = vrot.slane %v6955_v60, 4 }
 0x530   :  { %v2087_v4 = vsel %vm897_vm6, %v2086_v7, %v2085_v29 }
 0x531   :  { %v2089_v63 = vsel %vm900_vm7, %v2088_v50, %v2087_v4 }
 0x532   :  { %2156 = vmatmul.mubr.f32.vlgmr.msra.gmra.mrb[24].mxu0 %v2089_v63  ;;  %4451 = vmatmul.mubr.f32.vlgmr.msra.gmra.mrb[16].mxu1 %v2089_v63 }
 0x533   :  { %4975 = vmatpush1.bf16.msra.mxu0 %v6299_v17  ;;  %5006 = vmatpush3.bf16.msra.mxu1 %v6320_v41 }
 0x534   :  { %4977 = vmatprep.subr.bf16.mxu0 %v6302_v18  ;;  %5007 = vmatprep.subr.bf16.mxu1 %v7521_v16 }
 0x535   :  { %2551 = vmatprep.mubr.f32.mxu0 %v6853_v40  ;;  %4485 = vmatprep.mubr.msk.f32.mxu1 %vm6103_vm0, %v6853_v40  ;;  %v7576_v40 = vld [vmem:[#allocation31_spill] sm:$0xff] }
 0x537   :  { %4979 = vmatpush1.bf16.msra.mxu0 %v6307_v25  ;;  %5009 = vmatpush3.bf16.msra.mxu1 %v6330_v51 }
 0x538   :  { %4981 = vmatprep.subr.bf16.mxu0 %v6310_v26  ;;  %5010 = vmatprep.subr.bf16.mxu1 %v7521_v16 }
 0x53b   :  { %4983 = vmatpush1.bf16.msra.mxu0 %v6314_v34  ;;  %5012 = vmatpush3.bf16.msra.mxu1 %v6341_v61 }
 0x53c   :  { %4985 = vmatprep.subr.bf16.mxu0 %v6317_v35  ;;  %5013 = vmatprep.subr.bf16.mxu1 %v7521_v16 }
 0x53f   :  { %4987 = vmatpush1.bf16.msra.mxu0 %v6324_v45  ;;  %5015 = vmatpush3.bf16.msra.mxu1 %v6352_v10 }
 0x540   :  { %4989 = vmatprep.subr.bf16.mxu0 %v6327_v46  ;;  %5016 = vmatprep.subr.bf16.mxu1 %v7521_v16 }
 0x543   :  { %4991 = vmatpush1.bf16.msra.mxu0 %v6335_v55  ;;  %5018 = vmatpush3.bf16.msra.mxu1 %v6363_v20 }
 0x544   :  { %4993 = vmatprep.subr.bf16.mxu0 %v6338_v56  ;;  %5019 = vmatprep.subr.bf16.mxu1 %v7521_v16 }
 0x547   :  { %4995 = vmatpush1.bf16.msra.mxu0 %v6346_v2  ;;  %5021 = vmatpush3.bf16.msra.mxu1 %v7576_v40 }
 0x548   :  { %4997 = vmatprep.subr.bf16.mxu0 %v7577_v19  ;;  %5022 = vmatprep.subr.bf16.mxu1 %v7521_v16 }
 0x54b   :  { %4999 = vmatpush1.bf16.msra.mxu0 %v7578_v1  ;;  %5024 = vmatpush3.bf16.msra.mxu1 %v7579_v54 }
 0x54c   :  { %5001 = vmatprep.subr.bf16.mxu0 %v7580_v33  ;;  %5025 = vmatprep.subr.bf16.mxu1 %v7521_v16  ;;  %v7586_v33 = vld [vmem:[#allocation40_spill] sm:$0xff] }
 0x54f   :  { %5003 = vmatpush1.bf16.msra.mxu0 %v7581_v39  ;;  %5027 = vmatpush3.bf16.msra.mxu1 %v7582_v42  ;;  %v7585_v42 = vld [vmem:[#allocation39_spill] sm:$0xff] }
 0x550   :  { %5029 = vmatprep.subr.bf16.mxu0 %v7583_v57  ;;  %5060 = vmatprep.subr.bf16.mxu1 %v7521_v16 }
 0x605   :  { %v2157_v12 = vpop.f32.mrb[24].mxu0  ;;  %v7001_v38 = vpop.f32.mrb[16].mxu1 }
 0x606   :  { %v2233_v6 = vrot.slane %v2157_v12, 4  ;;  %v2234_v44 = vrot.slane %v2157_v12, 5  ;;  %v2235_v59 = vrot.slane %v2157_v12, 6  ;;  %v2236_v37 = vrot.slane %v2157_v12, 7  ;;  %v7003_v52 = vpop.f32.mrb[25].mxu0  ;;  %v4452_v27 = vpop.f32.mrb[17].mxu1 }
 0x607   :  { %v2237_v0 = vrot.slane %v2157_v12, 1  ;;  %v2238_v53 = vrot.slane %v2157_v12, 2  ;;  %v2239_v3 = vrot.slane %v2157_v12, 3  ;;  %v2252_v7 = vadd.f32 %v2157_v12, %v6476_v49 }
 0x608   :  { %v2248_v29 = vadd.f32 %v2233_v6, %v7529_v5  ;;  %v2249_v50 = vadd.f32 %v2234_v44, %v6464_v22  ;;  %v2250_v4 = vadd.f32 %v2235_v59, %v6469_v28  ;;  %v2251_v63 = vadd.f32 %v2236_v37, %v6474_v31 }
 0x609   :  { %v2253_v57 = vadd.f32 %v2237_v0, %v7584_v21  ;;  %v2254_v39 = vadd.f32 %v2238_v53, %v7585_v42  ;;  %v2255_v54 = vadd.f32 %v2239_v3, %v7586_v33  ;;  %v3977_v27 = vmul.f32 -1.442695, %v2252_v7  ;;  %v7587_v3 = vld [vmem:[#allocation35_spill] sm:$0xff] }
 0x60a   :  { %v3973_v1 = vmul.f32 -1.442695, %v2248_v29  ;;  %v3974_v19 = vmul.f32 -1.442695, %v2249_v50  ;;  %v3975_v40 = vmul.f32 -1.442695, %v2250_v4 }
 0x60b   :  { %v3976_v2 = vmul.f32 -1.442695, %v2251_v63  ;;  %5525 = vpow2.f32 %v3977_v27  ;;  %v3978_v12 = vmul.f32 -1.442695, %v2253_v57  ;;  %v3979_v6 = vmul.f32 -1.442695, %v2254_v39 }
 0x60c   :  { %5527 = vpow2.f32 %v3973_v1  ;;  %v3980_v44 = vmul.f32 -1.442695, %v2255_v54  ;;  %v2305_v59 = vrot.slane %v7003_v52, 4  ;;  %v2306_v37 = vrot.slane %v7003_v52, 5  ;;  %v7588_v29 = vld [vmem:[#allocation36_spill] sm:$0xff]  ;;  %v7589_v1 = vld [vmem:[#allocation37_spill] sm:$0xff] }
 0x60d   :  { %5529 = vpow2.f32 %v3974_v19  ;;  %v2307_v0 = vrot.slane %v7003_v52, 6  ;;  %v2308_v53 = vrot.slane %v7003_v52, 7  ;;  %v7590_v19 = vld [vmem:[#allocation41_spill] sm:$0xff]  ;;  %v2309_v33 = vrot.slane %v7003_v52, 1 }
 0x60e   :  { %5531 = vpow2.f32 %v3975_v40  ;;  %v2320_v7 = vadd.f32 %v2305_v59, %v7587_v3  ;;  %v2321_v50 = vadd.f32 %v2306_v37, %v7588_v29  ;;  %v2310_v59 = vrot.slane %v7003_v52, 2 }
 0x60f   :  { %5533 = vpow2.f32 %v3976_v2  ;;  %v2322_v57 = vadd.f32 %v2307_v0, %v7589_v1  ;;  %v2323_v54 = vadd.f32 %v2308_v53, %v7590_v19 }
 0x610   :  { %5535 = vpow2.f32 %v3978_v12  ;;  %v3981_v39 = vmul.f32 -1.442695, %v2320_v7  ;;  %v3982_v40 = vmul.f32 -1.442695, %v2321_v50  ;;  %v2324_v7 = vadd.f32 %v7003_v52, %v7570_v11 }
 0x611   :  { %5537 = vpow2.f32 %v3979_v6  ;;  %v3983_v4 = vmul.f32 -1.442695, %v2322_v57  ;;  %v3984_v63 = vmul.f32 -1.442695, %v2323_v54  ;;  %v2311_v6 = vrot.slane %v7003_v52, 3  ;;  %v7591_v54 = vld [vmem:[#allocation43_spill] sm:$0xff] }
 0x612   :  { %5539 = vpow2.f32 %v3980_v44  ;;  %v3985_v3 = vmul.f32 -1.442695, %v2324_v7 }
 0x613   :  { %5541 = vpow2.f32 %v3981_v39  ;;  %v2325_v39 = vadd.f32 %v2309_v33, %v7591_v54  ;;  %v7029_v33 = vld [vmem:[#allocation11] ss:$0 sm:$0xff] }
 0x614   :  { %5543 = vpow2.f32 %v3982_v40  ;;  %7594 = vst [vmem:[#allocation46_spill] sm:$0xff] %v7029_v33 }
 0x615   :  { %v5526_v27 = vpop.eup %5525  ;;  %5545 = vpow2.f32 %v3983_v4  ;;  %v7592_v4 = vld [vmem:[#allocation44_spill] sm:$0xff] }
 0x616   :  { %v5528_v2 = vpop.eup %5527  ;;  %v2284_v12 = vadd.f32 1.0, %v5526_v27  ;;  %5547 = vpow2.f32 %v3984_v63  ;;  %v2326_v19 = vadd.f32 %v2310_v59, %v7592_v4  ;;  %v7593_v63 = vld [vmem:[#allocation45_spill] sm:$0xff] }
 0x617   :  { %v5530_v37 = vpop.eup %5529  ;;  %v2280_v0 = vadd.f32 1.0, %v5528_v2  ;;  %v2327_v29 = vadd.f32 %v2311_v6, %v7593_v63 }
 0x618   :  { %v5532_v44 = vpop.eup %5531  ;;  %v2281_v53 = vadd.f32 1.0, %v5530_v37  ;;  %5549 = vrcp.f32 %v2284_v12  ;;  %v3987_v59 = vmul.f32 -1.442695, %v2326_v19 }
 0x619   :  { %v5534_v50 = vpop.eup %5533  ;;  %v2282_v57 = vadd.f32 1.0, %v5532_v44  ;;  %5551 = vrcp.f32 %v2280_v0  ;;  %v3986_v44 = vmul.f32 -1.442695, %v2325_v39 }
 0x61a   :  { %v5536_v40 = vpop.eup %5535  ;;  %v2283_v27 = vadd.f32 1.0, %v5534_v50  ;;  %5553 = vrcp.f32 %v2281_v53  ;;  %v2376_v53 = vadd.f32 %v7029_v33, %v7001_v38 }
 0x61b   :  { %v5538_v2 = vpop.eup %5537  ;;  %v2285_v1 = vadd.f32 1.0, %v5536_v40  ;;  %5555 = vrcp.f32 %v2282_v57  ;;  %v3988_v57 = vmul.f32 -1.442695, %v2327_v29 }
 0x61c   :  { %v5540_v37 = vpop.eup %5539  ;;  %v2286_v12 = vadd.f32 1.0, %v5538_v2  ;;  %5557 = vrcp.f32 %v2283_v27  ;;  %v2380_v19 = vrot.slane %v2376_v53, 6 }
 0x61d   :  { %v2287_v52 = vadd.f32 1.0, %v5540_v37  ;;  %5559 = vrcp.f32 %v2285_v1  ;;  %v5542_v0 = vpop.eup %5541  ;;  %v2378_v1 = vrot.slane %v2376_v53, 4 }
 0x61e   :  { %5561 = vrcp.f32 %v2286_v12  ;;  %v5544_v50 = vpop.eup %5543  ;;  %v2352_v6 = vadd.f32 1.0, %v5542_v0  ;;  %v2379_v12 = vrot.slane %v2376_v53, 5  ;;  %v2382_v0 = vrot.slane %v2376_v53, 1 }
 0x61f   :  { %5563 = vrcp.f32 %v2287_v52  ;;  %v5546_v40 = vpop.eup %5545  ;;  %v2353_v7 = vadd.f32 1.0, %v5544_v50  ;;  %v2381_v52 = vrot.slane %v2376_v53, 7 }
 0x620   :  { %5565 = vpow2.f32 %v3985_v3  ;;  %v5548_v2 = vpop.eup %5547  ;;  %v2354_v39 = vadd.f32 1.0, %v5546_v40 }
 0x621   :  { %5567 = vpow2.f32 %v3986_v44  ;;  %v2355_v63 = vadd.f32 1.0, %v5548_v2  ;;  %v2384_v2 = vrot.slane %v2376_v53, 3 }
 0x622   :  { %v5550_v27 = vpop.eup %5549  ;;  %5569 = vpow2.f32 %v3987_v59  ;;  %v2383_v59 = vrot.slane %v2376_v53, 2 }
 0x623   :  { %v5552_v37 = vpop.eup %5551  ;;  %5571 = vpow2.f32 %v3988_v57  ;;  %v2397_v4 = vmul.f32 %v5550_v27, %v2376_v53 }
 0x624   :  { %v5554_v38 = vpop.eup %5553  ;;  %v2393_v33 = vmul.f32 %v5552_v37, %v2378_v1  ;;  %5573 = vrcp.f32 %v2352_v6 }
 0x625   :  { %v5556_v29 = vpop.eup %5555  ;;  %v2394_v3 = vmul.f32 %v5554_v38, %v2379_v12  ;;  %5575 = vrcp.f32 %v2353_v7  ;;  %v2405_v37 = vadd.f32 %v2397_v4, %v7535_v9  ;;  %v2434_v4 = vrot.slane %v6932_v48, 7 }
 0x626   :  { %v5558_v44 = vpop.eup %5557  ;;  %v2395_v50 = vmul.f32 %v5556_v29, %v2380_v19  ;;  %v2401_v54 = vadd.f32 %v2393_v33, %v7532_v15  ;;  %5577 = vrcp.f32 %v2354_v39 }
 0x627   :  { %v5560_v40 = vpop.eup %5559  ;;  %v2402_v57 = vadd.f32 %v2394_v3, %v7555_v36  ;;  %5579 = vrcp.f32 %v2355_v63  ;;  %v2396_v27 = vmul.f32 %v5558_v44, %v2381_v52  ;;  %v2433_v3 = vrot.slane %v6927_v14, 7 }
 0x628   :  { %v5562_v11 = vpop.eup %5561  ;;  %v2398_v1 = vmul.f32 %v5560_v40, %v2382_v0  ;;  %v2403_v6 = vadd.f32 %v2395_v50, %v7533_v24  ;;  %5581 = vtanh.f32 %v2401_v54  ;;  %v2435_v40 = vrot.slane %v6936_v43, 7 }
 0x629   :  { %v5564_v7 = vpop.eup %5563  ;;  %v2399_v12 = vmul.f32 %v5562_v11, %v2383_v59  ;;  %v2404_v38 = vadd.f32 %v2396_v27, %v7534_v30  ;;  %5583 = vtanh.f32 %v2402_v57  ;;  %v2436_v14 = vrot.slane %v6939_v23, 7 }
 0x62a   :  { %v5566_v33 = vpop.eup %5565  ;;  %v2400_v39 = vmul.f32 %v5564_v7, %v2384_v2  ;;  %5585 = vtanh.f32 %v2403_v6  ;;  %v2406_v54 = vadd.f32 %v2398_v1, %v7536_v47 }
 0x62b   :  { %v5568_v19 = vpop.eup %5567  ;;  %v2356_v29 = vadd.f32 1.0, %v5566_v33  ;;  %5587 = vtanh.f32 %v2404_v38  ;;  %v2407_v50 = vadd.f32 %v2399_v12, %v7556_v32 }
 0x62c   :  { %v5570_v63 = vpop.eup %5569  ;;  %v2357_v53 = vadd.f32 1.0, %v5568_v19  ;;  %5589 = vtanh.f32 %v2405_v37  ;;  %v2408_v57 = vadd.f32 %v2400_v39, %v7557_v62 }
 0x62d   :  { %v5572_v52 = vpop.eup %5571  ;;  %v2358_v0 = vadd.f32 1.0, %v5570_v63  ;;  %5591 = vrcp.f32 %v2356_v29 }
 0x62e   :  { %v5574_v11 = vpop.eup %5573  ;;  %v2359_v44 = vadd.f32 1.0, %v5572_v52  ;;  %5593 = vrcp.f32 %v2357_v53 }
 0x62f   :  { %v5576_v59 = vpop.eup %5575  ;;  %5595 = vrcp.f32 %v2358_v0  ;;  %v2448_v2 = vmul.f32 %v5574_v11, %v2433_v3  ;;  %v2417_v37 = vsub.f32 1.0, %v5574_v11 }
 0x630   :  { %v5578_v27 = vpop.eup %5577  ;;  %5597 = vrcp.f32 %v2359_v44  ;;  %v2449_v6 = vmul.f32 %v5576_v59, %v2434_v4  ;;  %v2418_v38 = vsub.f32 1.0, %v5576_v59  ;;  %v2437_v4 = vrot.slane %v6950_v8, 7 }
 0x631   :  { %v5580_v1 = vpop.eup %5579  ;;  %5599 = vtanh.f32 %v2406_v54  ;;  %v2450_v48 = vmul.f32 %v5578_v27, %v2435_v40  ;;  %v2419_v43 = vsub.f32 1.0, %v5578_v27  ;;  %v2438_v40 = vrot.slane %v6953_v58, 7 }
 0x632   :  { %v5582_v7 = vpop.eup %5581  ;;  %5601 = vtanh.f32 %v2407_v50  ;;  %v2451_v12 = vmul.f32 %v5580_v1, %v2436_v14  ;;  %v2420_v39 = vsub.f32 1.0, %v5580_v1  ;;  %v2439_v1 = vrot.slane %v6955_v60, 7 }
 0x633   :  { %v5584_v33 = vpop.eup %5583  ;;  %5603 = vtanh.f32 %v2408_v57  ;;  %v2425_v19 = vmul.f32 %v5582_v7, %v2417_v37 }
 0x634   :  { %v5586_v29 = vpop.eup %5585  ;;  %v2426_v63 = vmul.f32 %v5584_v33, %v2418_v38 }
 0x635   :  { %v5588_v53 = vpop.eup %5587  ;;  %v2427_v52 = vmul.f32 %v5586_v29, %v2419_v43  ;;  %v7045_v23 = vadd.f32 %v2448_v2, %v2425_v19 }
 0x636   :  { %v5590_v3 = vpop.eup %5589  ;;  %v2428_v0 = vmul.f32 %v5588_v53, %v2420_v39  ;;  %v7047_v54 = vadd.f32 %v2449_v6, %v2426_v63  ;;  %v7595_v6 = vrot.slane %v6946_v13, 7 }
 0x637   :  { %v5592_v11 = vpop.eup %5591  ;;  %v7050_v44 = vadd.f32 %v2450_v48, %v2427_v52  ;;  %v2472_v50 = vrot.slane %v7045_v23, 4 }
 0x638   :  { %v5594_v59 = vpop.eup %5593  ;;  %v2421_v57 = vsub.f32 1.0, %v5592_v11  ;;  %v7054_v27 = vadd.f32 %v2451_v12, %v2428_v0  ;;  %v2473_v2 = vrot.slane %v7047_v54, 3  ;;  %v2452_v37 = vmul.f32 %v5592_v11, %v7595_v6 }
 0x639   :  { %v5596_v14 = vpop.eup %5595  ;;  %v2453_v7 = vmul.f32 %v5594_v59, %v2437_v4  ;;  %v2475_v8 = vrot.slane %v7050_v44, 2  ;;  %v2422_v38 = vsub.f32 1.0, %v5594_v59 }
 0x63a   :  { %v5598_v48 = vpop.eup %5597  ;;  %v2429_v33 = vmul.f32 %v5590_v3, %v2421_v57  ;;  %v2454_v43 = vmul.f32 %v5596_v14, %v2438_v40  ;;  %v2474_v58 = vsel %vm882_vm1, %v2473_v2, %v2472_v50  ;;  %v2423_v12 = vsub.f32 1.0, %v5596_v14 }
 0x63b   :  { %v5600_v19 = vpop.eup %5599  ;;  %v2455_v29 = vmul.f32 %v5598_v48, %v2439_v1  ;;  %v2476_v39 = vsel %vm885_vm2, %v2475_v8, %v2474_v58  ;;  %v2477_v63 = vrot.slane %v7054_v27, 1  ;;  %v2424_v53 = vsub.f32 1.0, %v5598_v48  ;;  %v7087_v8 = vld [vmem:[#allocation2] sm:$0xff]  ;;  %v7600_v58 = vld [vmem:[#allocation32_spill] sm:$0xff] }
 0x63c   :  { %v5602_v60 = vpop.eup %5601  ;;  %v2430_v13 = vmul.f32 %v5600_v19, %v2422_v38  ;;  %v7064_v52 = vadd.f32 %v2452_v37, %v2429_v33  ;;  %v7596_v48 = vld [vmem:[#allocation26_spill] sm:$0xff]  ;;  %v7597_v38 = vld [vmem:[#allocation31_spill] sm:$0xff]  ;;  %v7601_v19 = vld [vmem:[#allocation29_spill] sm:$0xff] }
 0x63d   :  { %v5604_v0 = vpop.eup %5603  ;;  %v2431_v11 = vmul.f32 %v5602_v60, %v2423_v12  ;;  %v2478_v4 = vsel %vm888_vm3, %v2477_v63, %v2476_v39  ;;  %v7598_v33 = vld [vmem:[#allocation27_spill] sm:$0xff]  ;;  %v7602_v12 = vld [vmem:[#allocation30_spill] sm:$0xff]  ;;  %v7604_v39 = vld [vmem:[#allocation25_spill] sm:$0xff] }
 0x63e   :  { %v2432_v3 = vmul.f32 %v5604_v0, %v2424_v53  ;;  %v7067_v59 = vadd.f32 %v2453_v7, %v2430_v13  ;;  %v2479_v50 = vsel %vm891_vm4, %v7064_v52, %v2478_v4 }
 0x63f   :  { %v7071_v40 = vadd.f32 %v2454_v43, %v2431_v11  ;;  %v7599_v43 = vld [vmem:[#allocation28_spill] sm:$0xff] }
 0x640   :  { %v7073_v57 = vadd.f32 %v2455_v29, %v2432_v3  ;;  %v7488_v2 = vrot.slane %v7067_v59, 7  ;;  %v7603_v29 = vld [vmem:[#allocation33_spill] sm:$0xff] }
 0x641   :  { %v2482_v14 = vrot.slane %v7071_v40, 6 }
 0x642   :  { %v2481_v1 = vsel %vm894_vm5, %v7488_v2, %v2479_v50  ;;  %v2484_v6 = vrot.slane %v7073_v57, 5 }
 0x643   :  { %v2483_v37 = vsel %vm897_vm6, %v2482_v14, %v2481_v1 }
 0x644   :  { %v2485_v7 = vsel %vm900_vm7, %v2484_v6, %v2483_v37 }
 0x645   :  { %2552 = vmatmul.mubr.f32.vlgmr.msra.gmra.mrb[26].mxu0 %v2485_v7  ;;  %4486 = vmatmul.mubr.f32.vlgmr.msra.gmra.mrb[18].mxu1 %v2485_v7 }
 0x646   :  { %5031 = vmatpush1.bf16.msra.mxu0 %v6299_v17  ;;  %5062 = vmatpush3.bf16.msra.mxu1 %v6320_v41 }
 0x647   :  { %5033 = vmatprep.subr.bf16.mxu0 %v6302_v18  ;;  %5063 = vmatprep.subr.bf16.mxu1 %v7521_v16 }
 0x648   :  { %2947 = vmatprep.mubr.f32.mxu0 %v7087_v8  ;;  %4520 = vmatprep.mubr.msk.f32.mxu1 %vm6103_vm0, %v7087_v8 }
 0x64a   :  { %5035 = vmatpush1.bf16.msra.mxu0 %v6307_v25  ;;  %5065 = vmatpush3.bf16.msra.mxu1 %v6330_v51 }
 0x64b   :  { %5037 = vmatprep.subr.bf16.mxu0 %v6310_v26  ;;  %5066 = vmatprep.subr.bf16.mxu1 %v7521_v16 }
 0x64e   :  { %5039 = vmatpush1.bf16.msra.mxu0 %v6314_v34  ;;  %5068 = vmatpush3.bf16.msra.mxu1 %v6341_v61 }
 0x64f   :  { %5041 = vmatprep.subr.bf16.mxu0 %v6317_v35  ;;  %5069 = vmatprep.subr.bf16.mxu1 %v7521_v16 }
 0x652   :  { %5043 = vmatpush1.bf16.msra.mxu0 %v6324_v45  ;;  %5071 = vmatpush3.bf16.msra.mxu1 %v6352_v10 }
 0x653   :  { %5045 = vmatprep.subr.bf16.mxu0 %v6327_v46  ;;  %5072 = vmatprep.subr.bf16.mxu1 %v7521_v16 }
 0x656   :  { %5047 = vmatpush1.bf16.msra.mxu0 %v6335_v55  ;;  %5074 = vmatpush3.bf16.msra.mxu1 %v6363_v20 }
 0x657   :  { %5049 = vmatprep.subr.bf16.mxu0 %v6338_v56  ;;  %5075 = vmatprep.subr.bf16.mxu1 %v7521_v16 }
 0x65a   :  { %5051 = vmatpush1.bf16.msra.mxu0 %v7596_v48  ;;  %5077 = vmatpush3.bf16.msra.mxu1 %v7597_v38 }
 0x65b   :  { %5053 = vmatprep.subr.bf16.mxu0 %v7598_v33  ;;  %5078 = vmatprep.subr.bf16.mxu1 %v7521_v16 }
 0x65e   :  { %5055 = vmatpush1.bf16.msra.mxu0 %v7599_v43  ;;  %5080 = vmatpush3.bf16.msra.mxu1 %v7600_v58 }
 0x65f   :  { %5057 = vmatprep.subr.bf16.mxu0 %v7601_v19  ;;  %5081 = vmatprep.subr.bf16.mxu1 %v7521_v16  ;;  %v7605_v19 = vld [vmem:[#allocation40_spill] sm:$0xff] }
 0x662   :  { %5059 = vmatpush1.bf16.msra.mxu0 %v7602_v12  ;;  %5083 = vmatpush3.bf16.msra.mxu1 %v7603_v29 }
 0x663   :  { %5085 = vmatprep.subr.bf16.mxu0 %v7604_v39  ;;  %5116 = vmatprep.subr.bf16.mxu1 %v7521_v16 }
 0x718   :  { %v2553_v63 = vpop.f32.mrb[26].mxu0  ;;  %v7120_v60 = vpop.f32.mrb[18].mxu1 }
 0x719   :  { %v2629_v53 = vrot.slane %v2553_v63, 3  ;;  %v2630_v13 = vrot.slane %v2553_v63, 4  ;;  %v2631_v0 = vrot.slane %v2553_v63, 5  ;;  %v2632_v11 = vrot.slane %v2553_v63, 6  ;;  %v7122_v4 = vpop.f32.mrb[27].mxu0  ;;  %v4487_v3 = vpop.f32.mrb[19].mxu1 }
 0x71a   :  { %v2633_v50 = vrot.slane %v2553_v63, 7  ;;  %v2634_v14 = vrot.slane %v2553_v63, 1  ;;  %v2635_v1 = vrot.slane %v2553_v63, 2  ;;  %v2649_v6 = vadd.f32 %v2553_v63, %v7584_v21 }
 0x71b   :  { %v2644_v37 = vadd.f32 %v2629_v53, %v7529_v5  ;;  %v2645_v7 = vadd.f32 %v2630_v13, %v6464_v22  ;;  %v2646_v39 = vadd.f32 %v2631_v0, %v6469_v28  ;;  %v2647_v2 = vadd.f32 %v2632_v11, %v6474_v31 }
 0x71c   :  { %v2648_v29 = vadd.f32 %v2633_v50, %v6476_v49  ;;  %v2650_v12 = vadd.f32 %v2634_v14, %v7585_v42  ;;  %v2651_v58 = vadd.f32 %v2635_v1, %v7605_v19  ;;  %v3994_v3 = vmul.f32 -1.442695, %v2649_v6  ;;  %v7606_v14 = vld [vmem:[#allocation35_spill] sm:$0xff]  ;;  %v7607_v6 = vld [vmem:[#allocation36_spill] sm:$0xff] }
 0x71d   :  { %v3989_v43 = vmul.f32 -1.442695, %v2644_v37  ;;  %v3990_v33 = vmul.f32 -1.442695, %v2645_v7  ;;  %v3991_v38 = vmul.f32 -1.442695, %v2646_v39 }
 0x71e   :  { %v3992_v48 = vmul.f32 -1.442695, %v2647_v2  ;;  %5605 = vpow2.f32 %v3994_v3  ;;  %v3993_v63 = vmul.f32 -1.442695, %v2648_v29  ;;  %v3995_v53 = vmul.f32 -1.442695, %v2650_v12 }
 0x71f   :  { %5607 = vpow2.f32 %v3989_v43  ;;  %v3996_v13 = vmul.f32 -1.442695, %v2651_v58  ;;  %v2701_v0 = vrot.slane %v7122_v4, 3  ;;  %v2702_v11 = vrot.slane %v7122_v4, 4  ;;  %v7608_v2 = vld [vmem:[#allocation37_spill] sm:$0xff] }
 0x720   :  { %5609 = vpow2.f32 %v3990_v33  ;;  %v2703_v50 = vrot.slane %v7122_v4, 5  ;;  %v2705_v7 = vrot.slane %v7122_v4, 7 }
 0x721   :  { %5611 = vpow2.f32 %v3991_v38  ;;  %v2716_v1 = vadd.f32 %v2701_v0, %v7606_v14  ;;  %v2717_v37 = vadd.f32 %v2702_v11, %v7607_v6  ;;  %v2704_v38 = vrot.slane %v7122_v4, 6 }
 0x722   :  { %5613 = vpow2.f32 %v3992_v48  ;;  %v2718_v43 = vadd.f32 %v2703_v50, %v7608_v2  ;;  %v2706_v0 = vrot.slane %v7122_v4, 1  ;;  %v7609_v50 = vld [vmem:[#allocation41_spill] sm:$0xff]  ;;  %v7610_v2 = vld [vmem:[#allocation42_spill] sm:$0xff] }
 0x723   :  { %5615 = vpow2.f32 %v3993_v63  ;;  %v3997_v33 = vmul.f32 -1.442695, %v2716_v1  ;;  %v3998_v12 = vmul.f32 -1.442695, %v2717_v37  ;;  %v2719_v1 = vadd.f32 %v2704_v38, %v7609_v50  ;;  %v7613_v38 = vld [vmem:[#allocation45_spill] sm:$0xff] }
 0x724   :  { %5617 = vpow2.f32 %v3995_v53  ;;  %v3999_v58 = vmul.f32 -1.442695, %v2718_v43 }
 0x725   :  { %5619 = vpow2.f32 %v3996_v13  ;;  %v2707_v13 = vrot.slane %v7122_v4, 2 }
 0x726   :  { %5621 = vpow2.f32 %v3997_v33  ;;  %v2720_v33 = vadd.f32 %v2705_v7, %v7610_v2 }
 0x727   :  { %5623 = vpow2.f32 %v3998_v12  ;;  %v7611_v12 = vld [vmem:[#allocation43_spill] sm:$0xff]  ;;  %v2723_v50 = vadd.f32 %v2707_v13, %v7613_v38 }
 0x728   :  { %v5606_v29 = vpop.eup %5605  ;;  %5625 = vpow2.f32 %v3999_v58  ;;  %v4001_v7 = vmul.f32 -1.442695, %v2720_v33 }
 0x729   :  { %v5608_v39 = vpop.eup %5607  ;;  %v2681_v48 = vadd.f32 1.0, %v5606_v29 }
 0x72a   :  { %v5610_v3 = vpop.eup %5609  ;;  %v2676_v63 = vadd.f32 1.0, %v5608_v39  ;;  %v2721_v39 = vadd.f32 %v7122_v4, %v7611_v12 }
 0x72b   :  { %v5612_v53 = vpop.eup %5611  ;;  %v2677_v11 = vadd.f32 1.0, %v5610_v3  ;;  %5627 = vrcp.f32 %v2681_v48  ;;  %v7612_v3 = vld [vmem:[#allocation44_spill] sm:$0xff] }
 0x72c   :  { %v5614_v37 = vpop.eup %5613  ;;  %v2678_v43 = vadd.f32 1.0, %v5612_v53  ;;  %5629 = vrcp.f32 %v2676_v63  ;;  %v2722_v48 = vadd.f32 %v2706_v0, %v7612_v3  ;;  %v4000_v53 = vmul.f32 -1.442695, %v2719_v1 }
 0x72d   :  { %v5616_v6 = vpop.eup %5615  ;;  %v2679_v29 = vadd.f32 1.0, %v5614_v37  ;;  %5631 = vrcp.f32 %v2677_v11  ;;  %v7614_v11 = vld [vmem:[#allocation46_spill] sm:$0xff]  ;;  %v4002_v2 = vmul.f32 -1.442695, %v2721_v39  ;;  %v4004_v0 = vmul.f32 -1.442695, %v2723_v50 }
 0x72e   :  { %v5618_v14 = vpop.eup %5617  ;;  %v2680_v58 = vadd.f32 1.0, %v5616_v6  ;;  %5633 = vrcp.f32 %v2678_v43  ;;  %v2772_v37 = vadd.f32 %v7614_v11, %v7120_v60  ;;  %v4003_v6 = vmul.f32 -1.442695, %v2722_v48 }
 0x72f   :  { %v5620_v19 = vpop.eup %5619  ;;  %v2682_v21 = vadd.f32 1.0, %v5618_v14  ;;  %5635 = vrcp.f32 %v2679_v29 }
 0x730   :  { %v2683_v63 = vadd.f32 1.0, %v5620_v19  ;;  %5637 = vrcp.f32 %v2680_v58  ;;  %v5622_v4 = vpop.eup %5621  ;;  %v2774_v13 = vrot.slane %v2772_v37, 3  ;;  %v2775_v33 = vrot.slane %v2772_v37, 4 }
 0x731   :  { %5639 = vrcp.f32 %v2682_v21  ;;  %v5624_v43 = vpop.eup %5623  ;;  %v2748_v14 = vadd.f32 1.0, %v5622_v4  ;;  %v2776_v39 = vrot.slane %v2772_v37, 5  ;;  %v2780_v12 = vrot.slane %v2772_v37, 2 }
 0x732   :  { %5641 = vrcp.f32 %v2683_v63  ;;  %v5626_v3 = vpop.eup %5625  ;;  %v2749_v19 = vadd.f32 1.0, %v5624_v43  ;;  %v2777_v63 = vrot.slane %v2772_v37, 6 }
 0x733   :  { %5643 = vpow2.f32 %v4000_v53  ;;  %v2750_v21 = vadd.f32 1.0, %v5626_v3  ;;  %v2779_v3 = vrot.slane %v2772_v37, 1 }
 0x734   :  { %5645 = vpow2.f32 %v4001_v7  ;;  %v2778_v7 = vrot.slane %v2772_v37, 7 }
 0x735   :  { %v5628_v29 = vpop.eup %5627  ;;  %5647 = vpow2.f32 %v4002_v2 }
 0x736   :  { %v5630_v1 = vpop.eup %5629  ;;  %5649 = vpow2.f32 %v4003_v6  ;;  %v2794_v58 = vmul.f32 %v5628_v29, %v2772_v37 }
 0x737   :  { %v5632_v60 = vpop.eup %5631  ;;  %v2789_v11 = vmul.f32 %v5630_v1, %v2774_v13  ;;  %5651 = vpow2.f32 %v4004_v0 }
 0x738   :  { %v5634_v48 = vpop.eup %5633  ;;  %v2790_v53 = vmul.f32 %v5632_v60, %v2775_v33  ;;  %5653 = vrcp.f32 %v2748_v14 }
 0x739   :  { %v5636_v50 = vpop.eup %5635  ;;  %v2791_v4 = vmul.f32 %v5634_v48, %v2776_v39  ;;  %v2797_v38 = vadd.f32 %v2789_v11, %v7532_v15  ;;  %5655 = vrcp.f32 %v2749_v19 }
 0x73a   :  { %v5638_v2 = vpop.eup %5637  ;;  %v2798_v43 = vadd.f32 %v2790_v53, %v7555_v36  ;;  %5657 = vrcp.f32 %v2750_v21  ;;  %v2792_v6 = vmul.f32 %v5636_v50, %v2777_v63  ;;  %v2829_v50 = vrot.slane %v7045_v23, 7 }
 0x73b   :  { %v5640_v29 = vpop.eup %5639  ;;  %v2793_v13 = vmul.f32 %v5638_v2, %v2778_v7  ;;  %v2799_v0 = vadd.f32 %v2791_v4, %v7533_v24  ;;  %5659 = vtanh.f32 %v2797_v38  ;;  %v2802_v4 = vadd.f32 %v2794_v58, %v7536_v47 }
 0x73c   :  { %v5642_v1 = vpop.eup %5641  ;;  %v2795_v14 = vmul.f32 %v5640_v29, %v2779_v3  ;;  %v2800_v33 = vadd.f32 %v2792_v6, %v7534_v30  ;;  %5661 = vtanh.f32 %v2798_v43  ;;  %v2830_v2 = vrot.slane %v7047_v54, 7 }
 0x73d   :  { %v5644_v60 = vpop.eup %5643  ;;  %v2796_v39 = vmul.f32 %v5642_v1, %v2780_v12  ;;  %v2801_v19 = vadd.f32 %v2793_v13, %v7535_v9  ;;  %5663 = vtanh.f32 %v2799_v0  ;;  %v2831_v29 = vrot.slane %v7050_v44, 7 }
 0x73e   :  { %v5646_v11 = vpop.eup %5645  ;;  %v2751_v21 = vadd.f32 1.0, %v5644_v60  ;;  %5665 = vtanh.f32 %v2800_v33  ;;  %v2803_v3 = vadd.f32 %v2795_v14, %v7556_v32 }
 0x73f   :  { %v5648_v48 = vpop.eup %5647  ;;  %v2752_v63 = vadd.f32 1.0, %v5646_v11  ;;  %5667 = vtanh.f32 %v2801_v19  ;;  %v2804_v13 = vadd.f32 %v2796_v39, %v7557_v62 }
 0x740   :  { %v5650_v37 = vpop.eup %5649  ;;  %v2753_v53 = vadd.f32 1.0, %v5648_v48  ;;  %5669 = vrcp.f32 %v2751_v21 }
 0x741   :  { %v5652_v38 = vpop.eup %5651  ;;  %5671 = vrcp.f32 %v2752_v63  ;;  %v2754_v7 = vadd.f32 1.0, %v5650_v37 }
 0x742   :  { %v5654_v12 = vpop.eup %5653  ;;  %5673 = vrcp.f32 %v2753_v53  ;;  %v2755_v43 = vadd.f32 1.0, %v5652_v38  ;;  %v2832_v53 = vrot.slane %v7054_v27, 7 }
 0x743   :  { %v5656_v6 = vpop.eup %5655  ;;  %5675 = vrcp.f32 %v2754_v7  ;;  %v2844_v0 = vmul.f32 %v5654_v12, %v2829_v50  ;;  %v2813_v23 = vsub.f32 1.0, %v5654_v12  ;;  %v2833_v7 = vrot.slane %v7064_v52, 7 }
 0x744   :  { %v5658_v1 = vpop.eup %5657  ;;  %5677 = vrcp.f32 %v2755_v43  ;;  %v2845_v33 = vmul.f32 %v5656_v6, %v2830_v2  ;;  %v2814_v58 = vsub.f32 1.0, %v5656_v6 }
 0x745   :  { %v5660_v60 = vpop.eup %5659  ;;  %5679 = vtanh.f32 %v2802_v4  ;;  %v2846_v19 = vmul.f32 %v5658_v1, %v2831_v29  ;;  %v2815_v11 = vsub.f32 1.0, %v5658_v1 }
 0x746   :  { %v5662_v54 = vpop.eup %5661  ;;  %5681 = vtanh.f32 %v2803_v3  ;;  %v2821_v21 = vmul.f32 %v5660_v60, %v2813_v23 }
 0x747   :  { %v5664_v14 = vpop.eup %5663  ;;  %5683 = vtanh.f32 %v2804_v13  ;;  %v2822_v48 = vmul.f32 %v5662_v54, %v2814_v58  ;;  %v2834_v13 = vrot.slane %v7071_v40, 7 }
 0x748   :  { %v5666_v44 = vpop.eup %5665  ;;  %v2823_v63 = vmul.f32 %v5664_v14, %v2815_v11  ;;  %v7161_v37 = vadd.f32 %v2844_v0, %v2821_v21 }
 0x749   :  { %v5668_v39 = vpop.eup %5667  ;;  %v7164_v38 = vadd.f32 %v2845_v33, %v2822_v48  ;;  %v2835_v33 = vrot.slane %v7073_v57, 7 }
 0x74a   :  { %v5670_v50 = vpop.eup %5669  ;;  %v7167_v4 = vadd.f32 %v2846_v19, %v2823_v63  ;;  %v2868_v12 = vrot.slane %v7161_v37, 5 }
 0x74b   :  { %v5672_v2 = vpop.eup %5671  ;;  %v2816_v43 = vsub.f32 1.0, %v5670_v50  ;;  %v2847_v3 = vmul.f32 %v5670_v50, %v2832_v53  ;;  %v2869_v6 = vrot.slane %v7164_v38, 4 }
 0x74c   :  { %v5674_v29 = vpop.eup %5673  ;;  %v2817_v0 = vsub.f32 1.0, %v5672_v2  ;;  %v2848_v1 = vmul.f32 %v5672_v2, %v2833_v7  ;;  %v2871_v27 = vrot.slane %v7167_v4, 3  ;;  %v7615_v2 = vrot.slane %v7067_v59, 7 }
 0x74d   :  { %v5676_v23 = vpop.eup %5675  ;;  %v2824_v52 = vmul.f32 %v5666_v44, %v2816_v43  ;;  %v2870_v60 = vsel %vm882_vm1, %v2869_v6, %v2868_v12  ;;  %v2818_v19 = vsub.f32 1.0, %v5674_v29 }
 0x74e   :  { %v5678_v58 = vpop.eup %5677  ;;  %v2825_v54 = vmul.f32 %v5668_v39, %v2817_v0  ;;  %v2850_v11 = vmul.f32 %v5676_v23, %v2834_v13  ;;  %v2872_v21 = vsel %vm885_vm2, %v2871_v27, %v2870_v60  ;;  %v2819_v48 = vsub.f32 1.0, %v5676_v23 }
 0x74f   :  { %v5680_v14 = vpop.eup %5679  ;;  %v2851_v63 = vmul.f32 %v5678_v58, %v2835_v33  ;;  %v7176_v40 = vadd.f32 %v2847_v3, %v2824_v52  ;;  %v2820_v50 = vsub.f32 1.0, %v5678_v58  ;;  %v2849_v57 = vmul.f32 %v5674_v29, %v7615_v2  ;;  %v7625_v2 = vld [vmem:[#allocation40_spill] sm:$0xff] }
 0x750   :  { %v5682_v53 = vpop.eup %5681  ;;  %v2826_v7 = vmul.f32 %v5680_v14, %v2818_v19  ;;  %v7180_v44 = vadd.f32 %v2848_v1, %v2825_v54 }
 0x751   :  { %v5684_v12 = vpop.eup %5683  ;;  %v2827_v43 = vmul.f32 %v5682_v53, %v2819_v48  ;;  %v2873_v39 = vrot.slane %v7176_v40, 2 }
 0x752   :  { %v2828_v6 = vmul.f32 %v5684_v12, %v2820_v50  ;;  %v7183_v13 = vadd.f32 %v2849_v57, %v2826_v7  ;;  %v2875_v0 = vrot.slane %v7180_v44, 1  ;;  %v7624_v50 = vld [vmem:[#allocation38_spill] sm:$0xff] }
 0x753   :  { %v7186_v27 = vadd.f32 %v2850_v11, %v2827_v43  ;;  %v2874_v3 = vsel %vm888_vm3, %v2873_v39, %v2872_v21 }
 0x754   :  { %v7189_v23 = vadd.f32 %v2851_v63, %v2828_v6  ;;  %v2876_v59 = vsel %vm891_vm4, %v2875_v0, %v2874_v3 }
 0x755   :  { %v2877_v29 = vsel %vm894_vm5, %v7183_v13, %v2876_v59  ;;  %v2878_v1 = vrot.slane %v7186_v27, 7 }
 0x756   :  { %v2880_v33 = vrot.slane %v7189_v23, 6 }
 0x757   :  { %v2879_v52 = vsel %vm897_vm6, %v2878_v1, %v2877_v29 }
 0x758   :  { %v2881_v60 = vsel %vm900_vm7, %v2880_v33, %v2879_v52 }
 0x759   :  { %2948 = vmatmul.mubr.f32.vlgmr.msra.gmra.mrb[28].mxu0 %v2881_v60  ;;  %4521 = vmatmul.mubr.f32.vlgmr.msra.gmra.mrb[20].mxu1 %v2881_v60 }
 0x75a   :  { %5087 = vmatpush1.bf16.msra.mxu0 %v6299_v17  ;;  %5118 = vmatpush3.bf16.msra.mxu1 %v6320_v41  ;;  %v7616_v17 = vld [vmem:[#allocation26_spill] sm:$0xff] }
 0x75b   :  { %5089 = vmatprep.subr.bf16.mxu0 %v6302_v18  ;;  %5119 = vmatprep.subr.bf16.mxu1 %v7521_v16  ;;  %v7617_v18 = vld [vmem:[#allocation31_spill] sm:$0xff]  ;;  %v7622_v41 = vld [vmem:[#allocation30_spill] sm:$0xff] }
 0x75c   :  { %3343 = vmatprep.mubr.f32.mxu0 %v7087_v8  ;;  %4555 = vmatprep.mubr.msk.f32.mxu1 %vm6103_vm0, %v7087_v8 }
 0x75e   :  { %5091 = vmatpush1.bf16.msra.mxu0 %v6307_v25  ;;  %5121 = vmatpush3.bf16.msra.mxu1 %v6330_v51  ;;  %v7618_v25 = vld [vmem:[#allocation27_spill] sm:$0xff] }
 0x75f   :  { %5093 = vmatprep.subr.bf16.mxu0 %v6310_v26  ;;  %5122 = vmatprep.subr.bf16.mxu1 %v7521_v16  ;;  %v7619_v26 = vld [vmem:[#allocation28_spill] sm:$0xff] }
 0x762   :  { %5095 = vmatpush1.bf16.msra.mxu0 %v6314_v34  ;;  %5124 = vmatpush3.bf16.msra.mxu1 %v6341_v61  ;;  %v7620_v34 = vld [vmem:[#allocation32_spill] sm:$0xff] }
 0x763   :  { %5097 = vmatprep.subr.bf16.mxu0 %v6317_v35  ;;  %5125 = vmatprep.subr.bf16.mxu1 %v7521_v16  ;;  %v7621_v35 = vld [vmem:[#allocation29_spill] sm:$0xff] }
 0x766   :  { %5099 = vmatpush1.bf16.msra.mxu0 %v6324_v45  ;;  %5127 = vmatpush3.bf16.msra.mxu1 %v6352_v10  ;;  %v7623_v45 = vld [vmem:[#allocation33_spill] sm:$0xff] }
 0x767   :  { %5101 = vmatprep.subr.bf16.mxu0 %v6327_v46  ;;  %5128 = vmatprep.subr.bf16.mxu1 %v7521_v16 }
 0x76a   :  { %5103 = vmatpush1.bf16.msra.mxu0 %v6335_v55  ;;  %5130 = vmatpush3.bf16.msra.mxu1 %v6363_v20 }
 0x76b   :  { %5105 = vmatprep.subr.bf16.mxu0 %v6338_v56  ;;  %5131 = vmatprep.subr.bf16.mxu1 %v7521_v16 }
 0x76e   :  { %5107 = vmatpush1.bf16.msra.mxu0 %v7616_v17  ;;  %5133 = vmatpush3.bf16.msra.mxu1 %v7617_v18  ;;  %v7626_v17 = vld [vmem:[#allocation35_spill] sm:$0xff] }
 0x76f   :  { %5109 = vmatprep.subr.bf16.mxu0 %v7618_v25  ;;  %5134 = vmatprep.subr.bf16.mxu1 %v7521_v16  ;;  %v7627_v25 = vld [vmem:[#allocation36_spill] sm:$0xff] }
 0x772   :  { %5111 = vmatpush1.bf16.msra.mxu0 %v7619_v26  ;;  %5136 = vmatpush3.bf16.msra.mxu1 %v7620_v34  ;;  %v7628_v34 = vld [vmem:[#allocation37_spill] sm:$0xff] }
 0x773   :  { %5113 = vmatprep.subr.bf16.mxu0 %v7621_v35  ;;  %5137 = vmatprep.subr.bf16.mxu1 %v7521_v16 }
 0x776   :  { %5115 = vmatpush1.bf16.msra.mxu0 %v7622_v41  ;;  %5139 = vmatpush3.bf16.msra.mxu1 %v7623_v45 }
 0x777   :  { %5140 = vmatprep.subr.bf16.mxu0 %v7521_v16  ;;  %5164 = vmatprep.subr.bf16.mxu1 %v7521_v16 }
 0x82c   :  { %v2949_v46 = vpop.f32.mrb[28].mxu0  ;;  %v7235_v51 = vpop.f32.mrb[20].mxu1 }
 0x82d   :  { %v3025_v55 = vrot.slane %v2949_v46, 2  ;;  %v3026_v56 = vrot.slane %v2949_v46, 3  ;;  %v3027_v61 = vrot.slane %v2949_v46, 4  ;;  %v3028_v10 = vrot.slane %v2949_v46, 5  ;;  %v7237_v20 = vpop.f32.mrb[29].mxu0  ;;  %v4522_v8 = vpop.f32.mrb[21].mxu1 }
 0x82e   :  { %v3029_v58 = vrot.slane %v2949_v46, 6  ;;  %v3030_v19 = vrot.slane %v2949_v46, 7  ;;  %v3031_v54 = vrot.slane %v2949_v46, 1  ;;  %v3046_v11 = vadd.f32 %v2949_v46, %v7585_v42 }
 0x82f   :  { %v3040_v21 = vadd.f32 %v3025_v55, %v7529_v5  ;;  %v3041_v14 = vadd.f32 %v3026_v56, %v6464_v22  ;;  %v3042_v48 = vadd.f32 %v3027_v61, %v6469_v28  ;;  %v3043_v63 = vadd.f32 %v3028_v10, %v6474_v31 }
 0x830   :  { %v3044_v53 = vadd.f32 %v3029_v58, %v6476_v49  ;;  %v3045_v7 = vadd.f32 %v3030_v19, %v7624_v50  ;;  %v3047_v57 = vadd.f32 %v3031_v54, %v7625_v2  ;;  %v4011_v12 = vmul.f32 -1.442695, %v3046_v11 }
 0x831   :  { %v4005_v43 = vmul.f32 -1.442695, %v3040_v21  ;;  %v4006_v39 = vmul.f32 -1.442695, %v3041_v14  ;;  %v4007_v6 = vmul.f32 -1.442695, %v3042_v48 }
 0x832   :  { %v4008_v0 = vmul.f32 -1.442695, %v3043_v63  ;;  %5685 = vpow2.f32 %v4011_v12  ;;  %v4009_v3 = vmul.f32 -1.442695, %v3044_v53  ;;  %v4010_v59 = vmul.f32 -1.442695, %v3045_v7 }
 0x833   :  { %5687 = vpow2.f32 %v4005_v43  ;;  %v4012_v29 = vmul.f32 -1.442695, %v3047_v57  ;;  %v3097_v33 = vrot.slane %v7237_v20, 2  ;;  %v3098_v52 = vrot.slane %v7237_v20, 3  ;;  %v7629_v48 = vld [vmem:[#allocation41_spill] sm:$0xff]  ;;  %v7630_v57 = vld [vmem:[#allocation42_spill] sm:$0xff] }
 0x834   :  { %5689 = vpow2.f32 %v4006_v39  ;;  %v3099_v60 = vrot.slane %v7237_v20, 4  ;;  %v3100_v55 = vrot.slane %v7237_v20, 5  ;;  %v3101_v61 = vrot.slane %v7237_v20, 6 }
 0x835   :  { %5691 = vpow2.f32 %v4007_v6  ;;  %v3112_v18 = vadd.f32 %v3097_v33, %v7626_v17  ;;  %v3113_v26 = vadd.f32 %v3098_v52, %v7627_v25  ;;  %v3102_v58 = vrot.slane %v7237_v20, 7  ;;  %v7631_v6 = vld [vmem:[#allocation43_spill] sm:$0xff] }
 0x836   :  { %5693 = vpow2.f32 %v4008_v0  ;;  %v3114_v35 = vadd.f32 %v3099_v60, %v7628_v34  ;;  %v3103_v14 = vrot.slane %v7237_v20, 1  ;;  %v3115_v63 = vadd.f32 %v3100_v55, %v7629_v48 }
 0x837   :  { %5695 = vpow2.f32 %v4009_v3  ;;  %v4013_v41 = vmul.f32 -1.442695, %v3112_v18  ;;  %v4014_v45 = vmul.f32 -1.442695, %v3113_v26  ;;  %v3116_v12 = vadd.f32 %v3101_v61, %v7630_v57  ;;  %v7633_v18 = vld [vmem:[#allocation45_spill] sm:$0xff] }
 0x838   :  { %5697 = vpow2.f32 %v4010_v59  ;;  %v4015_v46 = vmul.f32 -1.442695, %v3114_v35  ;;  %v3117_v0 = vadd.f32 %v3102_v58, %v7631_v6  ;;  %v3119_v26 = vadd.f32 %v3103_v14, %v7633_v18 }
 0x839   :  { %5699 = vpow2.f32 %v4012_v29  ;;  %v7632_v29 = vld [vmem:[#allocation44_spill] sm:$0xff]  ;;  %v4016_v35 = vmul.f32 -1.442695, %v3115_v63 }
 0x83a   :  { %5701 = vpow2.f32 %v4013_v41  ;;  %v3118_v33 = vadd.f32 %v7237_v20, %v7632_v29 }
 0x83b   :  { %5703 = vpow2.f32 %v4014_v45  ;;  %v4017_v45 = vmul.f32 -1.442695, %v3116_v12 }
 0x83c   :  { %v5686_v56 = vpop.eup %5685  ;;  %5705 = vpow2.f32 %v4015_v46  ;;  %v7263_v46 = vld [vmem:[#allocation11] ss:$0 sm:$0xff] }
 0x83d   :  { %v5688_v10 = vpop.eup %5687  ;;  %v3078_v8 = vadd.f32 1.0, %v5686_v56  ;;  %v3168_v55 = vadd.f32 %v7263_v46, %v7235_v51  ;;  %v4018_v56 = vmul.f32 -1.442695, %v3117_v0 }
 0x83e   :  { %v5690_v19 = vpop.eup %5689  ;;  %v3072_v54 = vadd.f32 1.0, %v5688_v10  ;;  %v4019_v10 = vmul.f32 -1.442695, %v3118_v33 }
 0x83f   :  { %v5692_v11 = vpop.eup %5691  ;;  %v3073_v21 = vadd.f32 1.0, %v5690_v19  ;;  %5707 = vrcp.f32 %v3078_v8  ;;  %v4020_v8 = vmul.f32 -1.442695, %v3119_v26  ;;  %v3171_v63 = vrot.slane %v3168_v55, 3 }
 0x840   :  { %v5694_v53 = vpop.eup %5693  ;;  %v3074_v7 = vadd.f32 1.0, %v5692_v11  ;;  %5709 = vrcp.f32 %v3072_v54  ;;  %v3170_v11 = vrot.slane %v3168_v55, 2  ;;  %v3172_v12 = vrot.slane %v3168_v55, 4 }
 0x841   :  { %v5696_v43 = vpop.eup %5695  ;;  %v3075_v39 = vadd.f32 1.0, %v5694_v53  ;;  %5711 = vrcp.f32 %v3073_v21  ;;  %v3173_v0 = vrot.slane %v3168_v55, 5  ;;  %v3174_v33 = vrot.slane %v3168_v55, 6 }
 0x842   :  { %v5698_v3 = vpop.eup %5697  ;;  %v3076_v59 = vadd.f32 1.0, %v5696_v43  ;;  %5713 = vrcp.f32 %v3074_v7 }
 0x843   :  { %v5700_v52 = vpop.eup %5699  ;;  %v3077_v60 = vadd.f32 1.0, %v5698_v3  ;;  %5715 = vrcp.f32 %v3075_v39 }
 0x844   :  { %v3079_v41 = vadd.f32 1.0, %v5700_v52  ;;  %5717 = vrcp.f32 %v3076_v59  ;;  %v5702_v61 = vpop.eup %5701 }
 0x845   :  { %5719 = vrcp.f32 %v3077_v60  ;;  %v5704_v20 = vpop.eup %5703  ;;  %v3144_v19 = vadd.f32 1.0, %v5702_v61  ;;  %v3176_v61 = vrot.slane %v3168_v55, 1 }
 0x846   :  { %5721 = vrcp.f32 %v3079_v41  ;;  %v5706_v58 = vpop.eup %5705  ;;  %v3145_v21 = vadd.f32 1.0, %v5704_v20  ;;  %v3175_v41 = vrot.slane %v3168_v55, 7 }
 0x847   :  { %5723 = vpow2.f32 %v4016_v35  ;;  %v3146_v53 = vadd.f32 1.0, %v5706_v58 }
 0x848   :  { %5725 = vpow2.f32 %v4017_v45 }
 0x849   :  { %v5708_v54 = vpop.eup %5707  ;;  %5727 = vpow2.f32 %v4018_v56 }
 0x84a   :  { %v5710_v14 = vpop.eup %5709  ;;  %5729 = vpow2.f32 %v4019_v10  ;;  %v3191_v7 = vmul.f32 %v5708_v54, %v3168_v55 }
 0x84b   :  { %v5712_v51 = vpop.eup %5711  ;;  %v3185_v43 = vmul.f32 %v5710_v14, %v3170_v11  ;;  %5731 = vpow2.f32 %v4020_v8 }
 0x84c   :  { %v5714_v39 = vpop.eup %5713  ;;  %v3186_v3 = vmul.f32 %v5712_v51, %v3171_v63  ;;  %5733 = vrcp.f32 %v3144_v19 }
 0x84d   :  { %v5716_v59 = vpop.eup %5715  ;;  %v3187_v52 = vmul.f32 %v5714_v39, %v3172_v12  ;;  %v3193_v60 = vadd.f32 %v3185_v43, %v7532_v15  ;;  %5735 = vrcp.f32 %v3145_v21  ;;  %v3225_v39 = vrot.slane %v7161_v37, 7 }
 0x84e   :  { %v5718_v26 = vpop.eup %5717  ;;  %v3194_v35 = vadd.f32 %v3186_v3, %v7555_v36  ;;  %5737 = vrcp.f32 %v3146_v53  ;;  %v3188_v45 = vmul.f32 %v5716_v59, %v3173_v0 }
 0x84f   :  { %v5720_v56 = vpop.eup %5719  ;;  %v3189_v10 = vmul.f32 %v5718_v26, %v3174_v33  ;;  %v3195_v20 = vadd.f32 %v3187_v52, %v7533_v24  ;;  %5739 = vtanh.f32 %v3193_v60  ;;  %v3226_v33 = vrot.slane %v7164_v38, 7 }
 0x850   :  { %v5722_v8 = vpop.eup %5721  ;;  %v3190_v58 = vmul.f32 %v5720_v56, %v3175_v41  ;;  %v3196_v19 = vadd.f32 %v3188_v45, %v7534_v30  ;;  %5741 = vtanh.f32 %v3194_v35  ;;  %v3199_v60 = vadd.f32 %v3191_v7, %v7556_v32 }
 0x851   :  { %v5724_v54 = vpop.eup %5723  ;;  %v3192_v11 = vmul.f32 %v5722_v8, %v3176_v61  ;;  %v3197_v21 = vadd.f32 %v3189_v10, %v7535_v9  ;;  %5743 = vtanh.f32 %v3195_v20  ;;  %v3227_v35 = vrot.slane %v7167_v4, 7 }
 0x852   :  { %v5726_v14 = vpop.eup %5725  ;;  %v3147_v63 = vadd.f32 1.0, %v5724_v54  ;;  %5745 = vtanh.f32 %v3196_v19  ;;  %v3198_v3 = vadd.f32 %v3190_v58, %v7536_v47 }
 0x853   :  { %v5728_v53 = vpop.eup %5727  ;;  %v3148_v51 = vadd.f32 1.0, %v5726_v14  ;;  %5747 = vtanh.f32 %v3197_v21  ;;  %v3200_v41 = vadd.f32 %v3192_v11, %v7557_v62 }
 0x854   :  { %v5730_v55 = vpop.eup %5729  ;;  %v3149_v12 = vadd.f32 1.0, %v5728_v53  ;;  %5749 = vrcp.f32 %v3147_v63  ;;  %v3228_v63 = vrot.slane %v7176_v40, 7 }
 0x855   :  { %v5732_v43 = vpop.eup %5731  ;;  %v3150_v0 = vadd.f32 1.0, %v5730_v55  ;;  %5751 = vrcp.f32 %v3148_v51  ;;  %v3229_v55 = vrot.slane %v7180_v44, 7 }
 0x856   :  { %v5734_v59 = vpop.eup %5733  ;;  %5753 = vrcp.f32 %v3149_v12  ;;  %v3151_v52 = vadd.f32 1.0, %v5732_v43 }
 0x857   :  { %v5736_v26 = vpop.eup %5735  ;;  %5755 = vrcp.f32 %v3150_v0  ;;  %v3240_v45 = vmul.f32 %v5734_v59, %v3225_v39  ;;  %v3209_v37 = vsub.f32 1.0, %v5734_v59  ;;  %v3230_v0 = vrot.slane %v7183_v13, 7 }
 0x858   :  { %v5738_v56 = vpop.eup %5737  ;;  %5757 = vrcp.f32 %v3151_v52  ;;  %v3241_v61 = vmul.f32 %v5736_v26, %v3226_v33  ;;  %v3210_v20 = vsub.f32 1.0, %v5736_v26 }
 0x859   :  { %v5740_v10 = vpop.eup %5739  ;;  %5759 = vtanh.f32 %v3198_v3  ;;  %v3242_v8 = vmul.f32 %v5738_v56, %v3227_v35  ;;  %v3211_v58 = vsub.f32 1.0, %v5738_v56 }
 0x85a   :  { %v5742_v38 = vpop.eup %5741  ;;  %5761 = vtanh.f32 %v3199_v60  ;;  %v3217_v19 = vmul.f32 %v5740_v10, %v3209_v37 }
 0x85b   :  { %v5744_v7 = vpop.eup %5743  ;;  %5763 = vtanh.f32 %v3200_v41  ;;  %v3218_v54 = vmul.f32 %v5742_v38, %v3210_v20  ;;  %v3231_v41 = vrot.slane %v7189_v23, 7 }
 0x85c   :  { %v5746_v4 = vpop.eup %5745  ;;  %v3219_v21 = vmul.f32 %v5744_v7, %v3211_v58  ;;  %v7278_v14 = vadd.f32 %v3240_v45, %v3217_v19 }
 0x85d   :  { %v5748_v11 = vpop.eup %5747  ;;  %v7281_v53 = vadd.f32 %v3241_v61, %v3218_v54 }
 0x85e   :  { %v5750_v51 = vpop.eup %5749  ;;  %v7284_v12 = vadd.f32 %v3242_v8, %v3219_v21  ;;  %v3264_v43 = vrot.slane %v7278_v14, 6 }
 0x85f   :  { %v5752_v39 = vpop.eup %5751  ;;  %v3212_v3 = vsub.f32 1.0, %v5750_v51  ;;  %v3243_v59 = vmul.f32 %v5750_v51, %v3228_v63  ;;  %v3265_v33 = vrot.slane %v7281_v53, 5 }
 0x860   :  { %v5754_v52 = vpop.eup %5753  ;;  %v3213_v60 = vsub.f32 1.0, %v5752_v39  ;;  %v3244_v26 = vmul.f32 %v5752_v39, %v3229_v55  ;;  %v3267_v40 = vrot.slane %v7284_v12, 4 }
 0x861   :  { %v5756_v35 = vpop.eup %5755  ;;  %v3220_v44 = vmul.f32 %v5746_v4, %v3212_v3  ;;  %v3245_v45 = vmul.f32 %v5754_v52, %v3230_v0  ;;  %v3266_v56 = vsel %vm882_vm1, %v3265_v33, %v3264_v43  ;;  %v3214_v61 = vsub.f32 1.0, %v5754_v52 }
 0x862   :  { %v5758_v37 = vpop.eup %5757  ;;  %v3221_v10 = vmul.f32 %v5748_v11, %v3213_v60  ;;  %v3268_v13 = vsel %vm885_vm2, %v3267_v40, %v3266_v56  ;;  %v3215_v8 = vsub.f32 1.0, %v5756_v35  ;;  %v3246_v63 = vmul.f32 %v5756_v35, %v2878_v1  ;;  %v3680_v40 = vld [vmem:[#allocation12] sm:$0xff]  ;;  %v3681_v35 = vld [vmem:[#allocation12 + $0x8] sm:$0xff] }
 0x863   :  { %v5760_v20 = vpop.eup %5759  ;;  %v3247_v38 = vmul.f32 %v5758_v37, %v3231_v41  ;;  %v7293_v58 = vadd.f32 %v3243_v59, %v3220_v44  ;;  %v3216_v7 = vsub.f32 1.0, %v5758_v37  ;;  %v3682_v41 = vld [vmem:[#allocation12 + $0x10] sm:$0xff]  ;;  %v5141_v44 = vpack.c.bf16 %v3681_v35, %v3680_v40  ;;  %v3684_v37 = vld [vmem:[#allocation12 + $0x20] sm:$0xff] }
 0x864   :  { %v5762_v19 = vpop.eup %5761  ;;  %v3222_v54 = vmul.f32 %v5760_v20, %v3214_v61  ;;  %v7295_v21 = vadd.f32 %v3244_v26, %v3221_v10  ;;  %v5855_v26 = vld [vmem:[#allocation2] sm:$0xff]  ;;  %v3685_v61 = vld [vmem:[#allocation12 + $0x28] sm:$0xff] }
 0x865   :  { %v5764_v23 = vpop.eup %5763  ;;  %v3223_v4 = vmul.f32 %v5762_v19, %v3215_v8  ;;  %v3269_v51 = vrot.slane %v7293_v58, 3  ;;  %v5147_v10 = vpack.c.bf16 %v3685_v61, %v3684_v37  ;;  %v3687_v20 = vld [vmem:[#allocation12 + $0x38] sm:$0xff]  ;;  %v3689_v19 = vld [vmem:[#allocation12 + $0x48] sm:$0xff] }
 0x866   :  { %v3224_v11 = vmul.f32 %v5764_v23, %v3216_v7  ;;  %v7300_v55 = vadd.f32 %v3245_v45, %v3222_v54  ;;  %v3271_v43 = vrot.slane %v7295_v21, 2  ;;  %v3683_v45 = vld [vmem:[#allocation12 + $0x18] sm:$0xff]  ;;  %v3690_v54 = vld [vmem:[#allocation12 + $0x50] sm:$0xff]  ;;  %v3793_v35 = vld [vmem:[#allocation15 + $0x20] sm:$0xff] }
 0x867   :  { %v7303_v39 = vadd.f32 %v3246_v63, %v3223_v4  ;;  %v3270_v0 = vsel %vm888_vm3, %v3269_v51, %v3268_v13  ;;  %v5144_v56 = vpack.c.bf16 %v3683_v45, %v3682_v41  ;;  %v3686_v13 = vld [vmem:[#allocation12 + $0x30] sm:$0xff]  ;;  %v3691_v23 = vld [vmem:[#allocation12 + $0x58] sm:$0xff]  ;;  %v3692_v63 = vld [vmem:[#allocation12 + $0x60] sm:$0xff] }
 0x868   :  { %v7306_v3 = vadd.f32 %v3247_v38, %v3224_v11  ;;  %v3272_v59 = vsel %vm891_vm4, %v3271_v43, %v3270_v0  ;;  %v3273_v33 = vrot.slane %v7300_v55, 1  ;;  %v5150_v8 = vpack.c.bf16 %v3687_v20, %v3686_v13  ;;  %v3688_v38 = vld [vmem:[#allocation12 + $0x40] sm:$0xff]  ;;  %v3693_v51 = vld [vmem:[#allocation12 + $0x68] sm:$0xff]  ;;  %v3694_v43 = vld [vmem:[#allocation12 + $0x70] sm:$0xff] }
 0x869   :  { %v5153_v7 = vpack.c.bf16 %v3689_v19, %v3688_v38  ;;  %v5156_v4 = vpack.c.bf16 %v3691_v23, %v3690_v54  ;;  %v5159_v11 = vpack.c.bf16 %v3693_v51, %v3692_v63  ;;  %v3695_v0 = vld [vmem:[#allocation12 + $0x78] sm:$0xff]  ;;  %v3794_v41 = vld [vmem:[#allocation15 + $0x28] sm:$0xff]  ;;  %v3797_v61 = vld [vmem:[#allocation15 + $0x40] sm:$0xff] }
 0x86a   :  { %v3274_v27 = vsel %vm894_vm5, %v3273_v33, %v3272_v59  ;;  %v3276_v1 = vrot.slane %v7306_v3, 7  ;;  %v3789_v59 = vld [vmem:[#allocation15] sm:$0xff]  ;;  %v3790_v33 = vld [vmem:[#allocation15 + $0x8] sm:$0xff]  ;;  %v3795_v45 = vld [vmem:[#allocation15 + $0x30] sm:$0xff] }
 0x86b   :  { %v3275_v52 = vsel %vm897_vm6, %v7303_v39, %v3274_v27  ;;  %v3791_v27 = vld [vmem:[#allocation15 + $0x10] sm:$0xff]  ;;  %v3801_v19 = vld [vmem:[#allocation15 + $0x60] sm:$0xff] }
 0x86c   :  { %v3277_v60 = vsel %vm900_vm7, %v3276_v1, %v3275_v52  ;;  %v5165_v52 = vpack.c.bf16 %v3790_v33, %v3789_v59  ;;  %v3799_v20 = vld [vmem:[#allocation15 + $0x50] sm:$0xff] }
 0x86d   :  { %3344 = vmatmul.mubr.f32.vlgmr.msra.gmra.mrb[30].mxu0 %v3277_v60  ;;  %4556 = vmatmul.mubr.f32.vlgmr.msra.gmra.mrb[22].mxu1 %v3277_v60  ;;  %v3792_v60 = vld [vmem:[#allocation15 + $0x18] sm:$0xff] }
 0x86e   :  { %4590 = vmatprep.mubr.msk.f32.mxu0 %vm6103_vm0, %v5855_v26  ;;  %4625 = vmatprep.mubr.msk.f32.mxu1 %vm6103_vm0, %v5855_v26  ;;  %v5162_v26 = vpack.c.bf16 %v3695_v0, %v3694_v43  ;;  %v5168_v40 = vpack.c.bf16 %v3792_v60, %v3791_v27 }
 0x86f   :  { %5142 = vmatpush3.bf16.msra.mxu0 %v5141_v44  ;;  %5166 = vmatpush3.bf16.msra.mxu1 %v5165_v52  ;;  %v5171_v44 = vpack.c.bf16 %v3794_v41, %v3793_v35 }
 0x870   :  { %5143 = vmatprep.subr.bf16.mxu0 %v7521_v16  ;;  %5167 = vmatprep.subr.bf16.mxu1 %v7521_v16 }
 0x873   :  { %5145 = vmatpush3.bf16.msra.mxu0 %v5144_v56  ;;  %5169 = vmatpush3.bf16.msra.mxu1 %v5168_v40  ;;  %v3796_v56 = vld [vmem:[#allocation15 + $0x38] sm:$0xff] }
 0x874   :  { %5146 = vmatprep.subr.bf16.mxu0 %v7521_v16  ;;  %5170 = vmatprep.subr.bf16.mxu1 %v7521_v16  ;;  %v5174_v37 = vpack.c.bf16 %v3796_v56, %v3795_v45 }
 0x877   :  { %5148 = vmatpush3.bf16.msra.mxu0 %v5147_v10  ;;  %5172 = vmatpush3.bf16.msra.mxu1 %v5171_v44  ;;  %v3798_v10 = vld [vmem:[#allocation15 + $0x48] sm:$0xff] }
 0x878   :  { %5149 = vmatprep.subr.bf16.mxu0 %v7521_v16  ;;  %5173 = vmatprep.subr.bf16.mxu1 %v7521_v16  ;;  %v5177_v13 = vpack.c.bf16 %v3798_v10, %v3797_v61 }
 0x87b   :  { %5151 = vmatpush3.bf16.msra.mxu0 %v5150_v8  ;;  %5175 = vmatpush3.bf16.msra.mxu1 %v5174_v37  ;;  %v3800_v8 = vld [vmem:[#allocation15 + $0x58] sm:$0xff] }
 0x87c   :  { %5152 = vmatprep.subr.bf16.mxu0 %v7521_v16  ;;  %5176 = vmatprep.subr.bf16.mxu1 %v7521_v16  ;;  %v5180_v38 = vpack.c.bf16 %v3800_v8, %v3799_v20 }
 0x87f   :  { %5154 = vmatpush3.bf16.msra.mxu0 %v5153_v7  ;;  %5178 = vmatpush3.bf16.msra.mxu1 %v5177_v13  ;;  %v3802_v7 = vld [vmem:[#allocation15 + $0x68] sm:$0xff] }
 0x880   :  { %5155 = vmatprep.subr.bf16.mxu0 %v7521_v16  ;;  %5179 = vmatprep.subr.bf16.mxu1 %v7521_v16  ;;  %v5183_v54 = vpack.c.bf16 %v3802_v7, %v3801_v19 }
 0x883   :  { %5157 = vmatpush3.bf16.msra.mxu0 %v5156_v4  ;;  %5181 = vmatpush3.bf16.msra.mxu1 %v5180_v38 }
 0x884   :  { %5158 = vmatprep.subr.bf16.mxu0 %v7521_v16  ;;  %5182 = vmatprep.subr.bf16.mxu1 %v7521_v16 }
 0x887   :  { %5160 = vmatpush3.bf16.msra.mxu0 %v5159_v11  ;;  %5184 = vmatpush3.bf16.msra.mxu1 %v5183_v54 }
 0x888   :  { %5161 = vmatprep.subr.bf16.mxu0 %v7521_v16  ;;  %5185 = vmatprep.subr.bf16.mxu1 %v7521_v16 }
 0x88b   :  { %5163 = vmatpush3.bf16.msra.mxu0 %v5162_v26 }
 0x940   :  { %v3345_v23 = vpop.f32.mrb[30].mxu0  ;;  %v7333_v4 = vpop.f32.mrb[22].mxu1 }
 0x941   :  { %v3421_v63 = vrot.slane %v3345_v23, 1  ;;  %v3422_v51 = vrot.slane %v3345_v23, 2  ;;  %v3423_v11 = vrot.slane %v3345_v23, 3  ;;  %v3424_v43 = vrot.slane %v3345_v23, 4  ;;  %v7335_v0 = vpop.f32.mrb[31].mxu0  ;;  %v4557_v59 = vpop.f32.mrb[23].mxu1 }
 0x942   :  { %v3425_v33 = vrot.slane %v3345_v23, 5  ;;  %v3426_v27 = vrot.slane %v3345_v23, 6  ;;  %v3427_v52 = vrot.slane %v3345_v23, 7  ;;  %v3443_v60 = vadd.f32 %v3345_v23, %v7625_v2 }
 0x943   :  { %v3436_v26 = vadd.f32 %v3421_v63, %v7529_v5  ;;  %v3437_v40 = vadd.f32 %v3422_v51, %v6464_v22  ;;  %v3438_v16 = vadd.f32 %v3423_v11, %v6469_v28  ;;  %v3439_v35 = vadd.f32 %v3424_v43, %v6474_v31 }
 0x944   :  { %v3440_v41 = vadd.f32 %v3425_v33, %v6476_v49  ;;  %v3441_v44 = vadd.f32 %v3426_v27, %v7624_v50  ;;  %v3442_v45 = vadd.f32 %v3427_v52, %v7585_v42  ;;  %v4028_v56 = vmul.f32 -1.442695, %v3443_v60 }
 0x945   :  { %v4021_v37 = vmul.f32 -1.442695, %v3436_v26  ;;  %v4022_v61 = vmul.f32 -1.442695, %v3437_v40  ;;  %v4023_v10 = vmul.f32 -1.442695, %v3438_v16 }
 0x946   :  { %v4024_v13 = vmul.f32 -1.442695, %v3439_v35  ;;  %5765 = vpow2.f32 %v4028_v56  ;;  %v4025_v5 = vmul.f32 -1.442695, %v3440_v41  ;;  %v4026_v22 = vmul.f32 -1.442695, %v3441_v44 }
 0x947   :  { %5767 = vpow2.f32 %v4021_v37  ;;  %v4027_v2 = vmul.f32 -1.442695, %v3442_v45  ;;  %v3493_v28 = vrot.slane %v7335_v0, 1  ;;  %v3494_v31 = vrot.slane %v7335_v0, 2 }
 0x948   :  { %5769 = vpow2.f32 %v4022_v61  ;;  %v3495_v49 = vrot.slane %v7335_v0, 3  ;;  %v3496_v7 = vrot.slane %v7335_v0, 4  ;;  %v3497_v23 = vrot.slane %v7335_v0, 5 }
 0x949   :  { %5771 = vpow2.f32 %v4023_v10  ;;  %v3508_v42 = vadd.f32 %v3493_v28, %v7626_v17  ;;  %v3509_v50 = vadd.f32 %v3494_v31, %v7627_v25  ;;  %v3498_v11 = vrot.slane %v7335_v0, 6 }
 0x94a   :  { %5773 = vpow2.f32 %v4024_v13  ;;  %v3510_v20 = vadd.f32 %v3495_v49, %v7628_v34  ;;  %v3499_v43 = vrot.slane %v7335_v0, 7  ;;  %v3511_v33 = vadd.f32 %v3496_v7, %v7629_v48 }
 0x94b   :  { %5775 = vpow2.f32 %v4025_v5  ;;  %v4029_v8 = vmul.f32 -1.442695, %v3508_v42  ;;  %v4030_v38 = vmul.f32 -1.442695, %v3509_v50  ;;  %v3512_v60 = vadd.f32 %v3497_v23, %v7630_v57 }
 0x94c   :  { %5777 = vpow2.f32 %v4026_v22  ;;  %v4031_v19 = vmul.f32 -1.442695, %v3510_v20  ;;  %v3513_v16 = vadd.f32 %v3498_v11, %v7631_v6  ;;  %v3514_v44 = vadd.f32 %v3499_v43, %v7632_v29 }
 0x94d   :  { %5779 = vpow2.f32 %v4027_v2  ;;  %v3515_v48 = vadd.f32 %v7335_v0, %v7633_v18  ;;  %v4032_v37 = vmul.f32 -1.442695, %v3511_v33  ;;  %v4033_v57 = vmul.f32 -1.442695, %v3512_v60 }
 0x94e   :  { %5781 = vpow2.f32 %v4029_v8  ;;  %v3564_v10 = vadd.f32 %v7263_v46, %v7333_v4  ;;  %v4034_v6 = vmul.f32 -1.442695, %v3513_v16  ;;  %v4035_v5 = vmul.f32 -1.442695, %v3514_v44 }
 0x94f   :  { %5783 = vpow2.f32 %v4030_v38  ;;  %v4036_v29 = vmul.f32 -1.442695, %v3515_v48  ;;  %v3621_v48 = vrot.slane %v7278_v14, 7 }
 0x950   :  { %v5766_v54 = vpop.eup %5765  ;;  %5785 = vpow2.f32 %v4031_v19  ;;  %v3566_v18 = vrot.slane %v3564_v10, 1  ;;  %v3567_v42 = vrot.slane %v3564_v10, 2  ;;  %v3568_v4 = vrot.slane %v3564_v10, 3 }
 0x951   :  { %v5768_v63 = vpop.eup %5767  ;;  %v3475_v51 = vadd.f32 1.0, %v5766_v54  ;;  %v3569_v19 = vrot.slane %v3564_v10, 4  ;;  %v3570_v23 = vrot.slane %v3564_v10, 5 }
 0x952   :  { %v5770_v17 = vpop.eup %5769  ;;  %v3468_v25 = vadd.f32 1.0, %v5768_v63 }
 0x953   :  { %v5772_v34 = vpop.eup %5771  ;;  %v3469_v59 = vadd.f32 1.0, %v5770_v17  ;;  %5787 = vrcp.f32 %v3475_v51 }
 0x954   :  { %v5774_v27 = vpop.eup %5773  ;;  %v3470_v52 = vadd.f32 1.0, %v5772_v34  ;;  %5789 = vrcp.f32 %v3468_v25  ;;  %v3571_v25 = vrot.slane %v3564_v10, 6 }
 0x955   :  { %v5776_v26 = vpop.eup %5775  ;;  %v3471_v40 = vadd.f32 1.0, %v5774_v27  ;;  %5791 = vrcp.f32 %v3469_v59  ;;  %v3572_v59 = vrot.slane %v3564_v10, 7 }
 0x956   :  { %v5778_v35 = vpop.eup %5777  ;;  %v3472_v41 = vadd.f32 1.0, %v5776_v26  ;;  %5793 = vrcp.f32 %v3470_v52 }
 0x957   :  { %v5780_v45 = vpop.eup %5779  ;;  %v3473_v56 = vadd.f32 1.0, %v5778_v35  ;;  %5795 = vrcp.f32 %v3471_v40 }
 0x958   :  { %v3474_v61 = vadd.f32 1.0, %v5780_v45  ;;  %5797 = vrcp.f32 %v3472_v41  ;;  %v5782_v13 = vpop.eup %5781 }
 0x959   :  { %5799 = vrcp.f32 %v3473_v56  ;;  %v5784_v22 = vpop.eup %5783  ;;  %v3540_v28 = vadd.f32 1.0, %v5782_v13  ;;  %v3623_v13 = vrot.slane %v7284_v12, 7 }
 0x95a   :  { %5801 = vrcp.f32 %v3474_v61  ;;  %v5786_v2 = vpop.eup %5785  ;;  %v3541_v0 = vadd.f32 1.0, %v5784_v22 }
 0x95b   :  { %5803 = vpow2.f32 %v4032_v37  ;;  %v3542_v50 = vadd.f32 1.0, %v5786_v2 }
 0x95c   :  { %5805 = vpow2.f32 %v4033_v57 }
 0x95d   :  { %v5788_v31 = vpop.eup %5787  ;;  %5807 = vpow2.f32 %v4034_v6 }
 0x95e   :  { %v5790_v49 = vpop.eup %5789  ;;  %5809 = vpow2.f32 %v4035_v5  ;;  %v3588_v20 = vmul.f32 %v5788_v31, %v3564_v10 }
 0x95f   :  { %v5792_v46 = vpop.eup %5791  ;;  %v3581_v8 = vmul.f32 %v5790_v49, %v3566_v18  ;;  %5811 = vpow2.f32 %v4036_v29 }
 0x960   :  { %v5794_v38 = vpop.eup %5793  ;;  %v3582_v7 = vmul.f32 %v5792_v46, %v3567_v42  ;;  %5813 = vrcp.f32 %v3540_v28  ;;  %v3596_v5 = vadd.f32 %v3588_v20, %v7557_v62  ;;  %v3624_v20 = vrot.slane %v7293_v58, 7 }
 0x961   :  { %v5796_v54 = vpop.eup %5795  ;;  %v3583_v63 = vmul.f32 %v5794_v38, %v3568_v4  ;;  %v3589_v51 = vadd.f32 %v3581_v8, %v7532_v15  ;;  %5815 = vrcp.f32 %v3541_v0  ;;  %v3625_v46 = vrot.slane %v7295_v21, 7 }
 0x962   :  { %v5798_v11 = vpop.eup %5797  ;;  %v3590_v17 = vadd.f32 %v3582_v7, %v7555_v36  ;;  %5817 = vrcp.f32 %v3542_v50  ;;  %v3584_v43 = vmul.f32 %v5796_v54, %v3569_v19  ;;  %v3626_v38 = vrot.slane %v7300_v55, 7 }
 0x963   :  { %v5800_v34 = vpop.eup %5799  ;;  %v3585_v33 = vmul.f32 %v5798_v11, %v3570_v23  ;;  %v3591_v27 = vadd.f32 %v3583_v63, %v7533_v24  ;;  %5819 = vtanh.f32 %v3589_v51  ;;  %v3627_v19 = vrot.slane %v7303_v39, 7 }
 0x964   :  { %v5802_v52 = vpop.eup %5801  ;;  %v3586_v60 = vmul.f32 %v5800_v34, %v3571_v25  ;;  %v3592_v26 = vadd.f32 %v3584_v43, %v7534_v30  ;;  %5821 = vtanh.f32 %v3590_v17 }
 0x965   :  { %v5804_v40 = vpop.eup %5803  ;;  %v3587_v15 = vmul.f32 %v5802_v52, %v3572_v59  ;;  %v3593_v16 = vadd.f32 %v3585_v33, %v7535_v9  ;;  %5823 = vtanh.f32 %v3591_v27  ;;  %v3622_v9 = vrot.slane %v7281_v53, 7 }
 0x966   :  { %v5806_v36 = vpop.eup %5805  ;;  %v3543_v35 = vadd.f32 1.0, %v5804_v40  ;;  %5825 = vtanh.f32 %v3592_v26  ;;  %v3594_v30 = vadd.f32 %v3586_v60, %v7536_v47 }
 0x967   :  { %v5808_v41 = vpop.eup %5807  ;;  %v3544_v44 = vadd.f32 1.0, %v5806_v36  ;;  %5827 = vtanh.f32 %v3593_v16  ;;  %v3595_v10 = vadd.f32 %v3587_v15, %v7556_v32 }
 0x968   :  { %v5810_v45 = vpop.eup %5809  ;;  %v3545_v56 = vadd.f32 1.0, %v5808_v41  ;;  %5829 = vrcp.f32 %v3543_v35 }
 0x969   :  { %v5812_v24 = vpop.eup %5811  ;;  %v3546_v37 = vadd.f32 1.0, %v5810_v45  ;;  %5831 = vrcp.f32 %v3544_v44 }
 0x96a   :  { %v5814_v61 = vpop.eup %5813  ;;  %5833 = vrcp.f32 %v3545_v56  ;;  %v3547_v57 = vadd.f32 1.0, %v5812_v24 }
 0x96b   :  { %v5816_v6 = vpop.eup %5815  ;;  %5835 = vrcp.f32 %v3546_v37  ;;  %v3636_v22 = vmul.f32 %v5814_v61, %v3621_v48  ;;  %v3605_v14 = vsub.f32 1.0, %v5814_v61 }
 0x96c   :  { %v5818_v29 = vpop.eup %5817  ;;  %5837 = vrcp.f32 %v3547_v57  ;;  %v3637_v2 = vmul.f32 %v5816_v6, %v3622_v9  ;;  %v3606_v47 = vsub.f32 1.0, %v5816_v6 }
 0x96d   :  { %v5820_v28 = vpop.eup %5819  ;;  %5839 = vtanh.f32 %v3594_v30  ;;  %v3638_v31 = vmul.f32 %v5818_v29, %v3623_v13  ;;  %v3607_v18 = vsub.f32 1.0, %v5818_v29 }
 0x96e   :  { %v5822_v53 = vpop.eup %5821  ;;  %5841 = vtanh.f32 %v3595_v10  ;;  %v3613_v0 = vmul.f32 %v5820_v28, %v3605_v14 }
 0x96f   :  { %v5824_v32 = vpop.eup %5823  ;;  %5843 = vtanh.f32 %v3596_v5  ;;  %v3614_v49 = vmul.f32 %v5822_v53, %v3606_v47 }
 0x970   :  { %v5826_v12 = vpop.eup %5825  ;;  %v3615_v42 = vmul.f32 %v5824_v32, %v3607_v18  ;;  %v3644_v50 = vadd.f32 %v3636_v22, %v3613_v0 }
 0x971   :  { %v5828_v62 = vpop.eup %5827  ;;  %v3645_v4 = vadd.f32 %v3637_v2, %v3614_v49 }
 0x972   :  { %v5830_v8 = vpop.eup %5829  ;;  %v3646_v7 = vadd.f32 %v3638_v31, %v3615_v42  ;;  %3675 = vst [vmem:[#allocation2 - $0x7] sm:$0x80] %v3644_v50  ;;  %v3703_v54 = vrot.slane %v3644_v50, 7  ;;  %v3803_v42 = vld [vmem:[#allocation15 + $0x70] sm:$0xff]  ;;  %v3804_v50 = vld [vmem:[#allocation15 + $0x78] sm:$0xff] }
 0x973   :  { %v5832_v23 = vpop.eup %5831  ;;  %v3608_v63 = vsub.f32 1.0, %v5830_v8  ;;  %v3639_v51 = vmul.f32 %v5830_v8, %v3624_v20  ;;  %v3660_v11 = vrot.slane %v3645_v4, 7  ;;  %v3704_v17 = vrot.slane %v3645_v4, 6  ;;  %v4037_v20 = vld [vmem:[#allocation14] ss:$0 sm:$0xff] }
 0x974   :  { %v5834_v25 = vpop.eup %5833  ;;  %v3609_v43 = vsub.f32 1.0, %v5832_v23  ;;  %v3640_v34 = vmul.f32 %v5832_v23, %v3625_v46  ;;  %v3661_v58 = vrot.slane %v3646_v7, 6  ;;  %v3706_v59 = vrot.slane %v3646_v7, 5 }
 0x975   :  { %v5836_v21 = vpop.eup %5835  ;;  %v3616_v33 = vmul.f32 %v5826_v12, %v3608_v63  ;;  %v3641_v27 = vmul.f32 %v5834_v25, %v3626_v38  ;;  %v3705_v55 = vsel %vm882_vm1, %v3704_v17, %v3703_v54  ;;  %v3610_v39 = vsub.f32 1.0, %v5834_v25 }
 0x976   :  { %v5838_v52 = vpop.eup %5837  ;;  %v3617_v60 = vmul.f32 %v5828_v62, %v3609_v43  ;;  %v3642_v26 = vmul.f32 %v5836_v21, %v3627_v19  ;;  %v3662_v40 = vsel %vm882_vm1, %v3661_v58, %v3660_v11  ;;  %v3611_v16 = vsub.f32 1.0, %v5836_v21  ;;  %v4038_v19 = vld [vmem:[#allocation17] ss:$0 sm:$0xff] }
 0x977   :  { %v5840_v15 = vpop.eup %5839  ;;  %v3647_v36 = vadd.f32 %v3639_v51, %v3616_v33  ;;  %v3707_v35 = vsel %vm885_vm2, %v3706_v59, %v3705_v55  ;;  %v3612_v44 = vsub.f32 1.0, %v5838_v52  ;;  %v3643_v37 = vmul.f32 %v5838_v52, %v3276_v1 }
 0x978   :  { %v5842_v41 = vpop.eup %5841  ;;  %v3618_v45 = vmul.f32 %v5840_v15, %v3610_v39  ;;  %v3648_v56 = vadd.f32 %v3640_v34, %v3617_v60  ;;  %v5186_v62 = vpack.c.bf16 %v3804_v50, %v3803_v42 }
 0x979   :  { %v5844_v24 = vpop.eup %5843  ;;  %v3619_v48 = vmul.f32 %v5842_v41, %v3611_v16  ;;  %v3663_v30 = vrot.slane %v3647_v36, 5  ;;  %v3708_v61 = vrot.slane %v3647_v36, 4 }
 0x97a   :  { %v3620_v9 = vmul.f32 %v5844_v24, %v3612_v44  ;;  %v3649_v57 = vadd.f32 %v3641_v27, %v3618_v45  ;;  %v3665_v10 = vrot.slane %v3648_v56, 4  ;;  %v3710_v6 = vrot.slane %v3648_v56, 3  ;;  %5187 = vmatpush3.bf16.msra.mxu1 %v5186_v62 }
 0x97b   :  { %v3650_v13 = vadd.f32 %v3642_v26, %v3619_v48  ;;  %v3664_v5 = vsel %vm885_vm2, %v3663_v30, %v3662_v40  ;;  %v3709_v22 = vsel %vm888_vm3, %v3708_v61, %v3707_v35 }
 0x97c   :  { %v3651_v29 = vadd.f32 %v3643_v37, %v3620_v9  ;;  %v3666_v14 = vsel %vm888_vm3, %v3665_v10, %v3664_v5  ;;  %v3667_v2 = vrot.slane %v3649_v57, 3  ;;  %v3711_v28 = vsel %vm891_vm4, %v3710_v6, %v3709_v22 }
 0x97d   :  { %v3669_v47 = vrot.slane %v3650_v13, 2  ;;  %v3712_v3 = vrot.slane %v3649_v57, 2  ;;  %v3714_v53 = vrot.slane %v3650_v13, 1 }
 0x97e   :  { %v3668_v1 = vsel %vm891_vm4, %v3667_v2, %v3666_v14  ;;  %v3671_v31 = vrot.slane %v3651_v29, 1 }
 0x97f   :  { %v3670_v18 = vsel %vm894_vm5, %v3669_v47, %v3668_v1  ;;  %v3713_v0 = vsel %vm894_vm5, %v3712_v3, %v3711_v28 }
 0x980   :  { %v3672_v32 = vsel %vm897_vm6, %v3671_v31, %v3670_v18  ;;  %v3715_v49 = vsel %vm897_vm6, %v3714_v53, %v3713_v0 }
 0x981   :  { %3676 = vst [vmem:[#allocation2 + $0x1] sm:$0x7f] %v3672_v32  ;;  %v3716_v12 = vsel %vm900_vm7, %v3651_v29, %v3715_v49 }
 0x982   :  { %4591 = vmatmul.mubr.f32.vlgmr.msra.gmra.mrb[32].mxu0 %v3716_v12 }
 0xa55   :  { %v3784_v46 = vpop.f32.mrb[32].mxu0 }
 0xa56   :  { %v3785_v4 = vadd.f32 %v4037_v20, %v3784_v46  ;;  %v4592_v8 = vpop.f32.mrb[33].mxu0 }
 0xa58   :  { %v3788_v38 = vmax.f32 %v3785_v4, 0.0 }
 0xa5a   :  { %4626 = vmatmul.mubr.f32.vlgmr.msra.gmra.mrb[24].mxu1 %v3788_v38 }
 0xb2d   :  { %v3878_v7 = vpop.f32.mrb[24].mxu1 }
 0xb2e   :  { %v3879_v54 = vadd.f32 %v4038_v19, %v3878_v7  ;;  %v4627_v23 = vpop.f32.mrb[25].mxu1 }
 0xb30   :  { %v4039_v63 = vmul.f32 -1.442695, %v3879_v54 }
 0xb32   :  { %5845 = vpow2.f32 %v4039_v63 }
 0xb3c   :  { %v5846_v51 = vpop.eup %5845 }
 0xb3d   :  { %v3885_v11 = vadd.f32 1.0, %v5846_v51 }
 0xb3f   :  { %5847 = vrcp.f32 %v3885_v11 }
 0xb49   :  { %v5848_v17 = vpop.eup %5847 }
 0xb4a   :  { %3888 = vst [vmem:[#allocation18] sm:$0xff] %v5848_v17 }
 0xb4b   :  { %6065 = shalt.err (!%p6062_p6)
}
 0xb4c   :  { %s6066_s25 = scalar_lea.hbm %s7414_s9, 128 }
 0xb4d   :  { %p6067_p7 = scmp.ne.s32.totalorder %s7414_s9, %s6066_s25  ;;  %p6070_p8 = scmp.lt.u32.totalorder %s6066_s25, %s7414_s9 }
 0xb4f   :  { %p6072_p9 = pnand %p6070_p8, %p6067_p7 }
 0xb51   :  { %6075 = shalt.err (!%p6072_p9)
}
 0xb52   :  { %3898 = dma.vmem_to_hbm [thread:$0]  %s3896_s7, 128, %s7414_s9, [#allocation5]  }
 0xb53   :  { %6086 = dma.done.wait [#allocation5], 128  }
 0xb54   :  { %6087 = vsyncadd [#allocation5], 4294967168 }
 0xb55   :  { %3902 = vsyncpa [#allocation4], 1 }
 0xb56   :  { %3903 = vsyncpa [#allocation7], 1 }
 0xb57   :  { %3904 = vsyncpa [#allocation10], 1 }
 0xb58   :  { %3905 = vsyncpa [#allocation13], 1 }
 0xb59   :  { %3906 = vsyncpa [#allocation16], 1 }
 0xb5a   :  { %3907 = vsyncpa [#allocation5], 1 }

</bundles_post_ra>
